<compile_context>
chip_gen: v5e
topology: v5e:2x2
jax: 0.10.0
libtpu: 0.0.40
codegen_flags: <defaults>
</compile_context>

<pallas_src>
import functools
import math

import jax
import jax.numpy as jnp
from jax import lax
from jax.experimental import pallas as pl
from jax.experimental.pallas import tpu as pltpu

_LN_EPS = 1e-5                        # PyTorch LayerNorm default
_NT = (((1,), (1,)), ((), ()))        # contract dim 1 of both operands: q @ k^T without a transpose


def _erf(x):
    # Abramowitz & Stegun 7.1.26 rational approximation (|err| < 1.5e-7): matches PyTorch's
    # exact erf-based GELU to fp32 noise.
    a1, a2, a3, a4, a5 = (0.254829592, -0.284496736, 1.421413741,
                          -1.453152027, 1.061405429)
    p = 0.3275911
    ax = jnp.abs(x)
    t = 1.0 / (1.0 + p * ax)
    poly = ((((a5 * t + a4) * t + a3) * t + a2) * t + a1) * t
    y = 1.0 - poly * jnp.exp(-ax * ax)
    return jnp.where(x >= 0, y, -y)


def _gelu(x):
    return 0.5 * x * (1.0 + _erf(x * (1.0 / math.sqrt(2.0))))


def _layernorm(x, gamma, beta):
    mu = jnp.mean(x, axis=-1, keepdims=True)
    var = jnp.mean((x - mu) ** 2, axis=-1, keepdims=True)
    return (x - mu) * lax.rsqrt(var + _LN_EPS) * gamma + beta


def _bf16(x):
    return x.astype(jnp.bfloat16)


# ------------------------------- fused kernel --------------------------------

def _encoder_kernel(x_ref, wemb_ref, bemb_ref,
                    wqkv_ref, bqkv_ref, wo_ref, bo_ref,
                    w1_ref, b1_ref, w2_ref, b2_ref,
                    g1_ref, be1_ref, g2_ref, be2_ref,
                    o_ref, act_ref, ctx_ref, *, num_heads):
    """Embedding (layer step 0 only) + one TransformerEncoderLayer per (batch_block, layer) step.

    The running activation lives in `act_ref` (VMEM f32, (block_b*S, E)) across the innermost
    "arbitrary" layer axis of the grid.
    """
    layer = pl.program_id(1)
    blk_b, S, Din = x_ref.shape
    R, E = act_ref.shape                      # R = blk_b * S
    dh = E // num_heads
    f32 = jnp.float32

    # --- LinearEmbeddingLayer: Linear(in_features, E) (+ Dropout, identity in eval) ---
    # TODO(synk): LinearEmbeddingLayer source not shown in the module; assumed Linear + Dropout.
    @pl.when(layer == 0)
    def _embed():
        xin = _bf16(x_ref[...].reshape(R, Din))               # leading-dim merge, layout-free
        act_ref[...] = (jnp.dot(xin, wemb_ref[...], preferred_element_type=f32)
                        + bemb_ref[...])

    x = act_ref[...]                          # (R, E) f32 — flattened (block_b*S, E) slab
    xb = _bf16(x)

    # --- fused q/k/v projection: one (R,E)@(E,3E) MXU op; 1/sqrt(dh) pre-folded into q columns ---
    qkv = jnp.dot(xb, wqkv_ref[0], preferred_element_type=f32) + bqkv_ref[0]
    qb = _bf16(qkv[:, :E])                    # lane-aligned slices (E % 128 == 0)
    kb = _bf16(qkv[:, E:2 * E])
    vb = _bf16(qkv[:, 2 * E:])

    # --- multi-head self-attention (no attn mask / padding mask). dh is lane-aligned (multiple of
    # 128) so head slices and ctx stores are full-lane accesses; blk_b*num_heads is small, so the
    # static unroll keeps live ranges short (switch to lax.fori_loop(unroll=True) if it grows >~8).
    for b in range(blk_b):
        rows = slice(b * S, (b + 1) * S)
        for h in range(num_heads):
            cols = slice(h * dh, (h + 1) * dh)
            s = lax.dot_general(qb[rows, cols], kb[rows, cols], _NT,
                                preferred_element_type=f32)            # (S, S)
            s = s - jnp.max(s, axis=-1, keepdims=True)
            p = jnp.exp(s)
            p = p / jnp.sum(p, axis=-1, keepdims=True)                 # exact normalize
            ctx_ref[rows, cols] = _bf16(
                jnp.dot(_bf16(p), vb[rows, cols], preferred_element_type=f32))

    attn = jnp.dot(ctx_ref[...], wo_ref[0], preferred_element_type=f32) + bo_ref[0]
    x1 = _layernorm(x + attn, g1_ref[0], be1_ref[0])      # post-norm (norm_first=False)

    # --- feed-forward ---
    h1 = _gelu(jnp.dot(_bf16(x1), w1_ref[0], preferred_element_type=f32) + b1_ref[0])
    h2 = jnp.dot(_bf16(h1), w2_ref[0], preferred_element_type=f32) + b2_ref[0]
    y = _layernorm(x1 + h2, g2_ref[0], be2_ref[0])

    act_ref[...] = y                                      # carry to next layer

    @pl.when(layer == pl.num_programs(1) - 1)
    def _writeback():                                     # single lane-dense store, last layer only
        o_ref[...] = y.reshape(blk_b, S, E)


# --------------------------------- wrapper ------------------------------------

_LAYER_KEYS = ("w_qkv", "b_qkv", "wo", "bo", "w1", "b1", "w2", "b2",
               "g1", "be1", "g2", "be2")


def _vmem_limit_bytes():
    # v5e/v6e: 128 MiB physical VMEM -> allow ~96-100 MiB scoped; v7x: 64 MiB -> stay near 48 MiB.
    try:
        cap = pltpu.get_tpu_info().vmem_capacity_bytes
    except Exception:
        cap = 64 * 1024 * 1024
    return min((cap * 3) // 4, 100 * 1024 * 1024)


def transformer_encoder(x, kparams, num_heads, *, block_b=1):
    """Runs the fused embedding + encoder kernel. `kparams` comes from prepare_kernel_params."""
    B, S, Din = x.shape
    L, E, _ = kparams["wo"].shape
    assert B % block_b == 0 and E % num_heads == 0
    assert (E // num_heads) % 128 == 0, "head_dim must be lane-aligned (multiple of 128)"

    def layer_spec(shape):                     # stacked (L, A, C) -> (1, A, C) block of layer l
        return pl.BlockSpec((1,) + tuple(shape[1:]), lambda b, l: (l, 0, 0))

    in_specs = [
        pl.BlockSpec((block_b, S, Din), lambda b, l: (b, 0, 0)),              # activations (l-invariant)
        pl.BlockSpec(kparams["w_emb"].shape, lambda b, l: (0, 0)),            # embedding weight
        pl.BlockSpec(kparams["b_emb"].shape, lambda b, l: (0, 0)),            # embedding bias
    ]
    in_specs += [layer_spec(kparams[k].shape) for k in _LAYER_KEYS]

    return pl.pallas_call(
        functools.partial(_encoder_kernel, num_heads=num_heads),
        out_shape=jax.ShapeDtypeStruct((B, S, E), jnp.float32),
        grid=(B // block_b, L),
        in_specs=in_specs,
        out_specs=pl.BlockSpec((block_b, S, E), lambda b, l: (b, 0, 0)),
        scratch_shapes=[pltpu.VMEM((block_b * S, E), jnp.float32),    # activation carried across layers
                        pltpu.VMEM((block_b * S, E), jnp.bfloat16)],  # per-head context assembly (bf16)
        compiler_params=pltpu.CompilerParams(
            # batch blocks shard across TensorCores; layer axis is a sequential carry
            dimension_semantics=("parallel", "arbitrary"),
            vmem_limit_bytes=_vmem_limit_bytes()),
    )(x, kparams["w_emb"], kparams["b_emb"], *[kparams[k] for k in _LAYER_KEYS])


# --------------------------- params & references ------------------------------

def init_params(key, din, E, F, num_layers):
    """fp32 parameters mirroring the PyTorch module (Linear weights pre-transposed to (in, out))."""
    def dense(k, fan_in, fan_out):
        kw, kb = jax.random.split(k)
        w = jax.random.normal(kw, (fan_in, fan_out), jnp.float32) * 0.05
        b = jax.random.normal(kb, (1, fan_out), jnp.float32) * 0.05
        return w, b

    keys = jax.random.split(key, num_layers + 1)
    w_emb, b_emb = dense(keys[0], din, E)
    layers = []
    for i in range(num_layers):
        lk = jax.random.split(keys[i + 1], 4)
        w_in, b_in = dense(lk[0], E, 3 * E)      # fused in_proj (q|k|v), PyTorch layout transposed
        w_out, b_out = dense(lk[1], E, E)
        w1, b1 = dense(lk[2], E, F)
        w2, b2 = dense(lk[3], F, E)
        layers.append(dict(
            w_in=w_in, b_in=b_in, w_out=w_out, b_out=b_out,
            w1=w1, b1=b1, w2=w2, b2=b2,
            g1=jnp.ones((1, E), jnp.float32), be1=jnp.zeros((1, E), jnp.float32),
            g2=jnp.ones((1, E), jnp.float32), be2=jnp.zeros((1, E), jnp.float32)))
    return dict(w_emb=w_emb, b_emb=b_emb, layers=layers)


def prepare_kernel_params(params, num_heads):
    """Kernel layout: keep the fused (E, 3E) in_proj, fold 1/sqrt(dh) into its q columns, stack
    layers on a leading (L, ...) axis, and store matmul weights in bf16 (biases / LN stay f32)."""
    E = params["w_emb"].shape[1]
    dh = E // num_heads
    qkv_scale = jnp.concatenate([jnp.full((E,), 1.0 / math.sqrt(dh), jnp.float32),
                                 jnp.ones((2 * E,), jnp.float32)])
    bf16 = jnp.bfloat16
    ls = params["layers"]

    def stack(fn, dtype=jnp.float32):
        return jnp.stack([fn(l) for l in ls]).astype(dtype)

    return dict(
        w_emb=params["w_emb"].astype(bf16), b_emb=params["b_emb"],
        w_qkv=stack(lambda l: l["w_in"] * qkv_scale, bf16),
        b_qkv=stack(lambda l: l["b_in"] * qkv_scale),
        wo=stack(lambda l: l["w_out"], bf16), bo=stack(lambda l: l["b_out"]),
        w1=stack(lambda l: l["w1"], bf16), b1=stack(lambda l: l["b1"]),
        w2=stack(lambda l: l["w2"], bf16), b2=stack(lambda l: l["b2"]),
        g1=stack(lambda l: l["g1"]), be1=stack(lambda l: l["be1"]),
        g2=stack(lambda l: l["g2"]), be2=stack(lambda l: l["be2"]),
    )


def reference_quantized(x, kp, num_heads):
    """Pure-JAX mirror of the kernel math: bf16 matmul inputs, f32 accumulation, f32 elementwise,
    fused qkv weight with the pre-folded scale, same erf-GELU."""
    B, S, _ = x.shape
    L, E, _ = kp["wo"].shape
    dh = E // num_heads
    bf16 = jnp.bfloat16

    def mm(a, w):
        return jnp.dot(a.astype(bf16), w, preferred_element_type=jnp.float32)

    y = mm(x, kp["w_emb"]) + kp["b_emb"]
    for l in range(L):
        qkv = mm(y, kp["w_qkv"][l]) + kp["b_qkv"][l]
        q, k, v = qkv[..., :E], qkv[..., E:2 * E], qkv[..., 2 * E:]
        qh = q.reshape(B, S, num_heads, dh).astype(bf16)
        kh = k.reshape(B, S, num_heads, dh).astype(bf16)
        vh = v.reshape(B, S, num_heads, dh).astype(bf16)
        s = jnp.einsum("bqhd,bkhd->bhqk", qh, kh, preferred_element_type=jnp.float32)
        p = jax.nn.softmax(s, axis=-1)
        ctx = jnp.einsum("bhqk,bkhd->bqhd", p.astype(bf16), vh,
                         preferred_element_type=jnp.float32).reshape(B, S, E).astype(bf16)
        attn = jnp.dot(ctx, kp["wo"][l], preferred_element_type=jnp.float32) + kp["bo"][l]
        x1 = _layernorm(y + attn, kp["g1"][l], kp["be1"][l])
        h1 = _gelu(mm(x1, kp["w1"][l]) + kp["b1"][l])
        ff = mm(h1, kp["w2"][l]) + kp["b2"][l]
        y = _layernorm(x1 + ff, kp["g2"][l], kp["be2"][l])
    return y


def reference_fp32(x, params, num_heads):
    """Pure-JAX fp32 reference mirroring PyTorch eval-mode semantics (exact gelu)."""
    B, S, _ = x.shape
    E = params["w_emb"].shape[1]
    dh = E // num_heads
    y = x @ params["w_emb"] + params["b_emb"]
    for L in params["layers"]:
        qkv = y @ L["w_in"] + L["b_in"]
        q, k, v = qkv[..., :E], qkv[..., E:2 * E], qkv[..., 2 * E:]
        q = q.reshape(B, S, num_heads, dh) / math.sqrt(dh)
        k = k.reshape(B, S, num_heads, dh)
        v = v.reshape(B, S, num_heads, dh)
        s = jnp.einsum("bqhd,bkhd->bhqk", q, k)
        p = jax.nn.softmax(s, axis=-1)
        ctx = jnp.einsum("bhqk,bkhd->bqhd", p, v).reshape(B, S, E)
        attn = ctx @ L["w_out"] + L["b_out"]
        x1 = _layernorm(y + attn, L["g1"], L["be1"])
        ff = jax.nn.gelu(x1 @ L["w1"] + L["b1"], approximate=False) @ L["w2"] + L["b2"]
        y = _layernorm(x1 + ff, L["g2"], L["be2"])
    return y


# ----------------------------------- main --------------------------------------

if __name__ == "__main__":
    # Small but lane-dense, head-aligned config: E and F are multiples of 256 and dh = E/H = 128,
    # so feature dims fill vreg lanes and per-head slices are full-lane accesses.
    in_features, embedding_size, num_heads, dim_feedforward = 4, 256, 2, 512
    num_layers = 2
    B, S = 4, 8
    # block_b=2 keeps the parallel batch-grid extent at 2 (both v7x TensorCores busy). For
    # production, raise block_b so R = block_b*S is a multiple of 256 (v6e/v7x) / 128 (v5e).
    block_b = 2

    key = jax.random.PRNGKey(0)
    kx, kp = jax.random.split(key)
    x = jax.random.normal(kx, (B, S, in_features), jnp.float32)
    params = init_params(kp, in_features, embedding_size, dim_feedforward, num_layers)
    kparams = prepare_kernel_params(params, num_heads)

    out = transformer_encoder(x, kparams, num_heads, block_b=block_b)
    out = jax.block_until_ready(out)
    assert out.shape == (B, S, embedding_size), out.shape

    ref_q = reference_quantized(x, kparams, num_heads)   # same bf16-matmul quantization as kernel
    ref_f = reference_fp32(x, params, num_heads)         # PyTorch fp32 eval-mode semantics
    err_q = float(jnp.max(jnp.abs(out - ref_q)))
    err_f = float(jnp.max(jnp.abs(out - ref_f)))
    assert err_q < 5e-3, f"mismatch vs bf16-matmul reference: {err_q}"
    assert err_f < 1e-1, f"mismatch vs fp32 reference: {err_f}"
    print("KERNEL_OK")
</pallas_src>

<mosaic_0001>
module attributes {stable_mosaic.version = 11 : i64} {
  func.func @_encoder_kernel(%arg0: i32, %arg1: i32, %arg2: memref<2x8x4xf32, #tpu.memory_space<vmem>>, %arg3: memref<4x256xbf16, #tpu.memory_space<vmem>>, %arg4: memref<1x256xf32, #tpu.memory_space<vmem>>, %arg5: memref<1x256x768xbf16, #tpu.memory_space<vmem>>, %arg6: memref<1x1x768xf32, #tpu.memory_space<vmem>>, %arg7: memref<1x256x256xbf16, #tpu.memory_space<vmem>>, %arg8: memref<1x1x256xf32, #tpu.memory_space<vmem>>, %arg9: memref<1x256x512xbf16, #tpu.memory_space<vmem>>, %arg10: memref<1x1x512xf32, #tpu.memory_space<vmem>>, %arg11: memref<1x512x256xbf16, #tpu.memory_space<vmem>>, %arg12: memref<1x1x256xf32, #tpu.memory_space<vmem>>, %arg13: memref<1x1x256xf32, #tpu.memory_space<vmem>>, %arg14: memref<1x1x256xf32, #tpu.memory_space<vmem>>, %arg15: memref<1x1x256xf32, #tpu.memory_space<vmem>>, %arg16: memref<1x1x256xf32, #tpu.memory_space<vmem>>, %arg17: memref<2x8x256xf32, #tpu.memory_space<vmem>>, %arg18: memref<16x256xf32, #tpu.memory_space<vmem>>, %arg19: memref<16x256xbf16, #tpu.memory_space<vmem>>) attributes {dimension_semantics = [#tpu.dimension_semantics<parallel>, #tpu.dimension_semantics<arbitrary>], iteration_bounds = array<i64: 2, 2>, scalar_prefetch = 0 : i64, scratch_operands = 2 : i64, tpu.core_type = #tpu.core_type<tc>, window_params = [{transform_indices = @transform_0, window_bounds = array<i64: 2, 8, 4>}, {pipeline_mode = #tpu.pipeline_mode<synchronous>, transform_indices = @transform_1, window_bounds = array<i64: 4, 256>}, {pipeline_mode = #tpu.pipeline_mode<synchronous>, transform_indices = @transform_2, window_bounds = array<i64: 1, 256>}, {transform_indices = @transform_3, window_bounds = array<i64: 1, 256, 768>}, {transform_indices = @transform_4, window_bounds = array<i64: 1, 1, 768>}, {transform_indices = @transform_5, window_bounds = array<i64: 1, 256, 256>}, {transform_indices = @transform_6, window_bounds = array<i64: 1, 1, 256>}, {transform_indices = @transform_7, window_bounds = array<i64: 1, 256, 512>}, {transform_indices = @transform_8, window_bounds = array<i64: 1, 1, 512>}, {transform_indices = @transform_9, window_bounds = array<i64: 1, 512, 256>}, {transform_indices = @transform_10, window_bounds = array<i64: 1, 1, 256>}, {transform_indices = @transform_11, window_bounds = array<i64: 1, 1, 256>}, {transform_indices = @transform_12, window_bounds = array<i64: 1, 1, 256>}, {transform_indices = @transform_13, window_bounds = array<i64: 1, 1, 256>}, {transform_indices = @transform_14, window_bounds = array<i64: 1, 1, 256>}, {transform_indices = @transform_15, window_bounds = array<i64: 2, 8, 256>}]} {
    %c0_i32 = arith.constant 0 : i32
    %0 = arith.cmpi eq, %arg1, %c0_i32 : i32
    %1 = arith.extui %0 : i1 to i32
    %c0_i32_0 = arith.constant 0 : i32
    %2 = arith.cmpi ne, %1, %c0_i32_0 : i32
    scf.if %2 {
      %c0_93 = arith.constant 0 : index
      %c0_94 = arith.constant 0 : index
      %c0_95 = arith.constant 0 : index
      %208 = vector.load %arg2[%c0_93, %c0_94, %c0_95] : memref<2x8x4xf32, #tpu.memory_space<vmem>>, vector<2x8x4xf32>
      %209 = vector.shape_cast %208 : vector<2x8x4xf32> to vector<16x4xf32>
      %210 = arith.truncf %209 : vector<16x4xf32> to vector<16x4xbf16>
      %c0_96 = arith.constant 0 : index
      %c0_97 = arith.constant 0 : index
      %211 = vector.load %arg3[%c0_96, %c0_97] : memref<4x256xbf16, #tpu.memory_space<vmem>>, vector<4x256xbf16>
      %cst_98 = arith.constant dense<0.000000e+00> : vector<16x256xf32>
      %212 = tpu.matmul %210, %211, %cst_98 {dimension_numbers = #tpu.dot_dimension_numbers<[1], [0], [0], [1], [0, 0, 1, 1], [], []>} : vector<16x4xbf16>, vector<4x256xbf16>, vector<16x256xf32> -> vector<16x256xf32>
      %c0_99 = arith.constant 0 : index
      %c0_100 = arith.constant 0 : index
      %213 = vector.load %arg4[%c0_99, %c0_100] : memref<1x256xf32, #tpu.memory_space<vmem>>, vector<1x256xf32>
      %214 = vector.broadcast %213 : vector<1x256xf32> to vector<16x256xf32>
      %215 = arith.addf %212, %214 : vector<16x256xf32>
      %c0_101 = arith.constant 0 : index
      %c0_102 = arith.constant 0 : index
      %216 = vector.load %arg18[%c0_101, %c0_102] : memref<16x256xf32, #tpu.memory_space<vmem>>, vector<16x256xf32>
      tpu.vector_store %arg18[%c0_101, %c0_102], %215 {strides = array<i32>} : memref<16x256xf32, #tpu.memory_space<vmem>>, vector<16x256xf32>,
    } else {
    }
    %c0 = arith.constant 0 : index
    %c0_1 = arith.constant 0 : index
    %3 = vector.load %arg18[%c0, %c0_1] : memref<16x256xf32, #tpu.memory_space<vmem>>, vector<16x256xf32>
    %4 = arith.truncf %3 : vector<16x256xf32> to vector<16x256xbf16>
    %c0_2 = arith.constant 0 : index
    %c0_3 = arith.constant 0 : index
    %c0_4 = arith.constant 0 : index
    %5 = vector.load %arg5[%c0_2, %c0_3, %c0_4] : memref<1x256x768xbf16, #tpu.memory_space<vmem>>, vector<1x256x768xbf16>
    %6 = vector.shape_cast %5 : vector<1x256x768xbf16> to vector<256x768xbf16>
    %cst = arith.constant dense<0.000000e+00> : vector<16x768xf32>
    %7 = tpu.matmul %4, %6, %cst {dimension_numbers = #tpu.dot_dimension_numbers<[1], [0], [0], [1], [0, 0, 1, 1], [], []>} : vector<16x256xbf16>, vector<256x768xbf16>, vector<16x768xf32> -> vector<16x768xf32>
    %c0_5 = arith.constant 0 : index
    %c0_6 = arith.constant 0 : index
    %c0_7 = arith.constant 0 : index
    %8 = vector.load %arg6[%c0_5, %c0_6, %c0_7] : memref<1x1x768xf32, #tpu.memory_space<vmem>>, vector<1x1x768xf32>
    %9 = vector.shape_cast %8 : vector<1x1x768xf32> to vector<1x768xf32>
    %10 = vector.broadcast %9 : vector<1x768xf32> to vector<16x768xf32>
    %11 = arith.addf %7, %10 : vector<16x768xf32>
    %12 = vector.extract_strided_slice %11 {offsets = [0, 0], sizes = [16, 256], strides = [1, 1]} : vector<16x768xf32> to vector<16x256xf32>
    %13 = arith.truncf %12 : vector<16x256xf32> to vector<16x256xbf16>
    %14 = vector.extract_strided_slice %11 {offsets = [0, 256], sizes = [16, 256], strides = [1, 1]} : vector<16x768xf32> to vector<16x256xf32>
    %15 = arith.truncf %14 : vector<16x256xf32> to vector<16x256xbf16>
    %16 = vector.extract_strided_slice %11 {offsets = [0, 512], sizes = [16, 256], strides = [1, 1]} : vector<16x768xf32> to vector<16x256xf32>
    %17 = arith.truncf %16 : vector<16x256xf32> to vector<16x256xbf16>
    %18 = vector.extract_strided_slice %13 {offsets = [0, 0], sizes = [8, 128], strides = [1, 1]} : vector<16x256xbf16> to vector<8x128xbf16>
    %19 = vector.extract_strided_slice %15 {offsets = [0, 0], sizes = [8, 128], strides = [1, 1]} : vector<16x256xbf16> to vector<8x128xbf16>
    %cst_8 = arith.constant dense<0.000000e+00> : vector<8x8xf32>
    %20 = tpu.matmul %18, %19, %cst_8 {dimension_numbers = #tpu.dot_dimension_numbers<[1], [1], [0], [0], [0, 0, 1, 0], [], []>} : vector<8x128xbf16>, vector<8x128xbf16>, vector<8x8xf32> -> vector<8x8xf32>
    %cst_9 = arith.constant dense<0xFF800000> : vector<8xf32>
    %21 = vector.multi_reduction <maximumf>, %20, %cst_9 [1] : vector<8x8xf32> to vector<8xf32>
    %22 = vector.shape_cast %21 : vector<8xf32> to vector<8x1xf32>
    %23 = vector.broadcast %22 : vector<8x1xf32> to vector<8x8xf32>
    %24 = arith.subf %20, %23 : vector<8x8xf32>
    %25 = math.exp %24 : vector<8x8xf32>
    %cst_10 = arith.constant dense<0.000000e+00> : vector<8xf32>
    %26 = vector.multi_reduction <add>, %25, %cst_10 [1] : vector<8x8xf32> to vector<8xf32>
    %27 = vector.shape_cast %26 : vector<8xf32> to vector<8x1xf32>
    %28 = vector.broadcast %27 : vector<8x1xf32> to vector<8x8xf32>
    %29 = arith.divf %25, %28 : vector<8x8xf32>
    %30 = arith.truncf %29 : vector<8x8xf32> to vector<8x8xbf16>
    %31 = vector.extract_strided_slice %17 {offsets = [0, 0], sizes = [8, 128], strides = [1, 1]} : vector<16x256xbf16> to vector<8x128xbf16>
    %cst_11 = arith.constant dense<0.000000e+00> : vector<8x128xf32>
    %32 = tpu.matmul %30, %31, %cst_11 {dimension_numbers = #tpu.dot_dimension_numbers<[1], [0], [0], [1], [0, 0, 1, 1], [], []>} : vector<8x8xbf16>, vector<8x128xbf16>, vector<8x128xf32> -> vector<8x128xf32>
    %33 = arith.truncf %32 : vector<8x128xf32> to vector<8x128xbf16>
    %c0_12 = arith.constant 0 : index
    %c0_13 = arith.constant 0 : index
    %34 = vector.load %arg19[%c0_12, %c0_13] : memref<16x256xbf16, #tpu.memory_space<vmem>>, vector<8x128xbf16>
    tpu.vector_store %arg19[%c0_12, %c0_13], %33 {strides = array<i32>} : memref<16x256xbf16, #tpu.memory_space<vmem>>, vector<8x128xbf16>,
    %35 = vector.extract_strided_slice %13 {offsets = [0, 128], sizes = [8, 128], strides = [1, 1]} : vector<16x256xbf16> to vector<8x128xbf16>
    %36 = vector.extract_strided_slice %15 {offsets = [0, 128], sizes = [8, 128], strides = [1, 1]} : vector<16x256xbf16> to vector<8x128xbf16>
    %cst_14 = arith.constant dense<0.000000e+00> : vector<8x8xf32>
    %37 = tpu.matmul %35, %36, %cst_14 {dimension_numbers = #tpu.dot_dimension_numbers<[1], [1], [0], [0], [0, 0, 1, 0], [], []>} : vector<8x128xbf16>, vector<8x128xbf16>, vector<8x8xf32> -> vector<8x8xf32>
    %cst_15 = arith.constant dense<0xFF800000> : vector<8xf32>
    %38 = vector.multi_reduction <maximumf>, %37, %cst_15 [1] : vector<8x8xf32> to vector<8xf32>
    %39 = vector.shape_cast %38 : vector<8xf32> to vector<8x1xf32>
    %40 = vector.broadcast %39 : vector<8x1xf32> to vector<8x8xf32>
    %41 = arith.subf %37, %40 : vector<8x8xf32>
    %42 = math.exp %41 : vector<8x8xf32>
    %cst_16 = arith.constant dense<0.000000e+00> : vector<8xf32>
    %43 = vector.multi_reduction <add>, %42, %cst_16 [1] : vector<8x8xf32> to vector<8xf32>
    %44 = vector.shape_cast %43 : vector<8xf32> to vector<8x1xf32>
    %45 = vector.broadcast %44 : vector<8x1xf32> to vector<8x8xf32>
    %46 = arith.divf %42, %45 : vector<8x8xf32>
    %47 = arith.truncf %46 : vector<8x8xf32> to vector<8x8xbf16>
    %48 = vector.extract_strided_slice %17 {offsets = [0, 128], sizes = [8, 128], strides = [1, 1]} : vector<16x256xbf16> to vector<8x128xbf16>
    %cst_17 = arith.constant dense<0.000000e+00> : vector<8x128xf32>
    %49 = tpu.matmul %47, %48, %cst_17 {dimension_numbers = #tpu.dot_dimension_numbers<[1], [0], [0], [1], [0, 0, 1, 1], [], []>} : vector<8x8xbf16>, vector<8x128xbf16>, vector<8x128xf32> -> vector<8x128xf32>
    %50 = arith.truncf %49 : vector<8x128xf32> to vector<8x128xbf16>
    %c0_18 = arith.constant 0 : index
    %c128 = arith.constant 128 : index
    %51 = vector.load %arg19[%c0_18, %c128] : memref<16x256xbf16, #tpu.memory_space<vmem>>, vector<8x128xbf16>
    tpu.vector_store %arg19[%c0_18, %c128], %50 {strides = array<i32>} : memref<16x256xbf16, #tpu.memory_space<vmem>>, vector<8x128xbf16>,
    %52 = vector.extract_strided_slice %13 {offsets = [8, 0], sizes = [8, 128], strides = [1, 1]} : vector<16x256xbf16> to vector<8x128xbf16>
    %53 = vector.extract_strided_slice %15 {offsets = [8, 0], sizes = [8, 128], strides = [1, 1]} : vector<16x256xbf16> to vector<8x128xbf16>
    %cst_19 = arith.constant dense<0.000000e+00> : vector<8x8xf32>
    %54 = tpu.matmul %52, %53, %cst_19 {dimension_numbers = #tpu.dot_dimension_numbers<[1], [1], [0], [0], [0, 0, 1, 0], [], []>} : vector<8x128xbf16>, vector<8x128xbf16>, vector<8x8xf32> -> vector<8x8xf32>
    %cst_20 = arith.constant dense<0xFF800000> : vector<8xf32>
    %55 = vector.multi_reduction <maximumf>, %54, %cst_20 [1] : vector<8x8xf32> to vector<8xf32>
    %56 = vector.shape_cast %55 : vector<8xf32> to vector<8x1xf32>
    %57 = vector.broadcast %56 : vector<8x1xf32> to vector<8x8xf32>
    %58 = arith.subf %54, %57 : vector<8x8xf32>
    %59 = math.exp %58 : vector<8x8xf32>
    %cst_21 = arith.constant dense<0.000000e+00> : vector<8xf32>
    %60 = vector.multi_reduction <add>, %59, %cst_21 [1] : vector<8x8xf32> to vector<8xf32>
    %61 = vector.shape_cast %60 : vector<8xf32> to vector<8x1xf32>
    %62 = vector.broadcast %61 : vector<8x1xf32> to vector<8x8xf32>
    %63 = arith.divf %59, %62 : vector<8x8xf32>
    %64 = arith.truncf %63 : vector<8x8xf32> to vector<8x8xbf16>
    %65 = vector.extract_strided_slice %17 {offsets = [8, 0], sizes = [8, 128], strides = [1, 1]} : vector<16x256xbf16> to vector<8x128xbf16>
    %cst_22 = arith.constant dense<0.000000e+00> : vector<8x128xf32>
    %66 = tpu.matmul %64, %65, %cst_22 {dimension_numbers = #tpu.dot_dimension_numbers<[1], [0], [0], [1], [0, 0, 1, 1], [], []>} : vector<8x8xbf16>, vector<8x128xbf16>, vector<8x128xf32> -> vector<8x128xf32>
    %67 = arith.truncf %66 : vector<8x128xf32> to vector<8x128xbf16>
    %c8 = arith.constant 8 : index
    %c0_23 = arith.constant 0 : index
    %68 = vector.load %arg19[%c8, %c0_23] : memref<16x256xbf16, #tpu.memory_space<vmem>>, vector<8x128xbf16>
    tpu.vector_store %arg19[%c8, %c0_23], %67 {strides = array<i32>} : memref<16x256xbf16, #tpu.memory_space<vmem>>, vector<8x128xbf16>,
    %69 = vector.extract_strided_slice %13 {offsets = [8, 128], sizes = [8, 128], strides = [1, 1]} : vector<16x256xbf16> to vector<8x128xbf16>
    %70 = vector.extract_strided_slice %15 {offsets = [8, 128], sizes = [8, 128], strides = [1, 1]} : vector<16x256xbf16> to vector<8x128xbf16>
    %cst_24 = arith.constant dense<0.000000e+00> : vector<8x8xf32>
    %71 = tpu.matmul %69, %70, %cst_24 {dimension_numbers = #tpu.dot_dimension_numbers<[1], [1], [0], [0], [0, 0, 1, 0], [], []>} : vector<8x128xbf16>, vector<8x128xbf16>, vector<8x8xf32> -> vector<8x8xf32>
    %cst_25 = arith.constant dense<0xFF800000> : vector<8xf32>
    %72 = vector.multi_reduction <maximumf>, %71, %cst_25 [1] : vector<8x8xf32> to vector<8xf32>
    %73 = vector.shape_cast %72 : vector<8xf32> to vector<8x1xf32>
    %74 = vector.broadcast %73 : vector<8x1xf32> to vector<8x8xf32>
    %75 = arith.subf %71, %74 : vector<8x8xf32>
    %76 = math.exp %75 : vector<8x8xf32>
    %cst_26 = arith.constant dense<0.000000e+00> : vector<8xf32>
    %77 = vector.multi_reduction <add>, %76, %cst_26 [1] : vector<8x8xf32> to vector<8xf32>
    %78 = vector.shape_cast %77 : vector<8xf32> to vector<8x1xf32>
    %79 = vector.broadcast %78 : vector<8x1xf32> to vector<8x8xf32>
    %80 = arith.divf %76, %79 : vector<8x8xf32>
    %81 = arith.truncf %80 : vector<8x8xf32> to vector<8x8xbf16>
    %82 = vector.extract_strided_slice %17 {offsets = [8, 128], sizes = [8, 128], strides = [1, 1]} : vector<16x256xbf16> to vector<8x128xbf16>
    %cst_27 = arith.constant dense<0.000000e+00> : vector<8x128xf32>
    %83 = tpu.matmul %81, %82, %cst_27 {dimension_numbers = #tpu.dot_dimension_numbers<[1], [0], [0], [1], [0, 0, 1, 1], [], []>} : vector<8x8xbf16>, vector<8x128xbf16>, vector<8x128xf32> -> vector<8x128xf32>
    %84 = arith.truncf %83 : vector<8x128xf32> to vector<8x128xbf16>
    %c8_28 = arith.constant 8 : index
    %c128_29 = arith.constant 128 : index
    %85 = vector.load %arg19[%c8_28, %c128_29] : memref<16x256xbf16, #tpu.memory_space<vmem>>, vector<8x128xbf16>
    tpu.vector_store %arg19[%c8_28, %c128_29], %84 {strides = array<i32>} : memref<16x256xbf16, #tpu.memory_space<vmem>>, vector<8x128xbf16>,
    %c0_30 = arith.constant 0 : index
    %c0_31 = arith.constant 0 : index
    %86 = vector.load %arg19[%c0_30, %c0_31] : memref<16x256xbf16, #tpu.memory_space<vmem>>, vector<16x256xbf16>
    %c0_32 = arith.constant 0 : index
    %c0_33 = arith.constant 0 : index
    %c0_34 = arith.constant 0 : index
    %87 = vector.load %arg7[%c0_32, %c0_33, %c0_34] : memref<1x256x256xbf16, #tpu.memory_space<vmem>>, vector<1x256x256xbf16>
    %88 = vector.shape_cast %87 : vector<1x256x256xbf16> to vector<256x256xbf16>
    %cst_35 = arith.constant dense<0.000000e+00> : vector<16x256xf32>
    %89 = tpu.matmul %86, %88, %cst_35 {dimension_numbers = #tpu.dot_dimension_numbers<[1], [0], [0], [1], [0, 0, 1, 1], [], []>} : vector<16x256xbf16>, vector<256x256xbf16>, vector<16x256xf32> -> vector<16x256xf32>
    %c0_36 = arith.constant 0 : index
    %c0_37 = arith.constant 0 : index
    %c0_38 = arith.constant 0 : index
    %90 = vector.load %arg8[%c0_36, %c0_37, %c0_38] : memref<1x1x256xf32, #tpu.memory_space<vmem>>, vector<1x1x256xf32>
    %91 = vector.shape_cast %90 : vector<1x1x256xf32> to vector<1x256xf32>
    %92 = vector.broadcast %91 : vector<1x256xf32> to vector<16x256xf32>
    %93 = arith.addf %89, %92 : vector<16x256xf32>
    %94 = arith.addf %3, %93 : vector<16x256xf32>
    %c0_39 = arith.constant 0 : index
    %c0_40 = arith.constant 0 : index
    %c0_41 = arith.constant 0 : index
    %95 = vector.load %arg13[%c0_39, %c0_40, %c0_41] : memref<1x1x256xf32, #tpu.memory_space<vmem>>, vector<1x1x256xf32>
    %96 = vector.shape_cast %95 : vector<1x1x256xf32> to vector<1x256xf32>
    %c0_42 = arith.constant 0 : index
    %c0_43 = arith.constant 0 : index
    %c0_44 = arith.constant 0 : index
    %97 = vector.load %arg14[%c0_42, %c0_43, %c0_44] : memref<1x1x256xf32, #tpu.memory_space<vmem>>, vector<1x1x256xf32>
    %98 = vector.shape_cast %97 : vector<1x1x256xf32> to vector<1x256xf32>
    %cst_45 = arith.constant dense<0.000000e+00> : vector<16xf32>
    %99 = vector.multi_reduction <add>, %94, %cst_45 [1] : vector<16x256xf32> to vector<16xf32>
    %100 = vector.shape_cast %99 : vector<16xf32> to vector<16x1xf32>
    %cst_46 = arith.constant 2.560000e+02 : f32
    %101 = vector.broadcast %cst_46 : f32 to vector<16x1xf32>
    %102 = arith.divf %100, %101 : vector<16x1xf32>
    %103 = vector.broadcast %102 : vector<16x1xf32> to vector<16x256xf32>
    %104 = arith.subf %94, %103 : vector<16x256xf32>
    %105 = arith.mulf %104, %104 : vector<16x256xf32>
    %cst_47 = arith.constant dense<0.000000e+00> : vector<16xf32>
    %106 = vector.multi_reduction <add>, %105, %cst_47 [1] : vector<16x256xf32> to vector<16xf32>
    %107 = vector.shape_cast %106 : vector<16xf32> to vector<16x1xf32>
    %cst_48 = arith.constant 2.560000e+02 : f32
    %108 = vector.broadcast %cst_48 : f32 to vector<16x1xf32>
    %109 = arith.divf %107, %108 : vector<16x1xf32>
    %110 = vector.broadcast %102 : vector<16x1xf32> to vector<16x256xf32>
    %111 = arith.subf %94, %110 : vector<16x256xf32>
    %cst_49 = arith.constant 9.99999974E-6 : f32
    %112 = vector.broadcast %cst_49 : f32 to vector<16x1xf32>
    %113 = arith.addf %109, %112 : vector<16x1xf32>
    %114 = math.rsqrt %113 : vector<16x1xf32>
    %115 = vector.broadcast %114 : vector<16x1xf32> to vector<16x256xf32>
    %116 = arith.mulf %111, %115 : vector<16x256xf32>
    %117 = vector.broadcast %96 : vector<1x256xf32> to vector<16x256xf32>
    %118 = arith.mulf %116, %117 : vector<16x256xf32>
    %119 = vector.broadcast %98 : vector<1x256xf32> to vector<16x256xf32>
    %120 = arith.addf %118, %119 : vector<16x256xf32>
    %121 = arith.truncf %120 : vector<16x256xf32> to vector<16x256xbf16>
    %c0_50 = arith.constant 0 : index
    %c0_51 = arith.constant 0 : index
    %c0_52 = arith.constant 0 : index
    %122 = vector.load %arg9[%c0_50, %c0_51, %c0_52] : memref<1x256x512xbf16, #tpu.memory_space<vmem>>, vector<1x256x512xbf16>
    %123 = vector.shape_cast %122 : vector<1x256x512xbf16> to vector<256x512xbf16>
    %cst_53 = arith.constant dense<0.000000e+00> : vector<16x512xf32>
    %124 = tpu.matmul %121, %123, %cst_53 {dimension_numbers = #tpu.dot_dimension_numbers<[1], [0], [0], [1], [0, 0, 1, 1], [], []>} : vector<16x256xbf16>, vector<256x512xbf16>, vector<16x512xf32> -> vector<16x512xf32>
    %c0_54 = arith.constant 0 : index
    %c0_55 = arith.constant 0 : index
    %c0_56 = arith.constant 0 : index
    %125 = vector.load %arg10[%c0_54, %c0_55, %c0_56] : memref<1x1x512xf32, #tpu.memory_space<vmem>>, vector<1x1x512xf32>
    %126 = vector.shape_cast %125 : vector<1x1x512xf32> to vector<1x512xf32>
    %127 = vector.broadcast %126 : vector<1x512xf32> to vector<16x512xf32>
    %128 = arith.addf %124, %127 : vector<16x512xf32>
    %cst_57 = arith.constant 5.000000e-01 : f32
    %129 = vector.broadcast %cst_57 : f32 to vector<16x512xf32>
    %130 = arith.mulf %129, %128 : vector<16x512xf32>
    %cst_58 = arith.constant 0.707106769 : f32
    %131 = vector.broadcast %cst_58 : f32 to vector<16x512xf32>
    %132 = arith.mulf %128, %131 : vector<16x512xf32>
    %133 = math.absf %132 : vector<16x512xf32>
    %cst_59 = arith.constant 0.327591091 : f32
    %134 = vector.broadcast %cst_59 : f32 to vector<16x512xf32>
    %135 = arith.mulf %134, %133 : vector<16x512xf32>
    %cst_60 = arith.constant 1.000000e+00 : f32
    %136 = vector.broadcast %cst_60 : f32 to vector<16x512xf32>
    %137 = arith.addf %136, %135 : vector<16x512xf32>
    %cst_61 = arith.constant 1.000000e+00 : f32
    %138 = vector.broadcast %cst_61 : f32 to vector<16x512xf32>
    %139 = arith.divf %138, %137 : vector<16x512xf32>
    %cst_62 = arith.constant 1.06140542 : f32
    %140 = vector.broadcast %cst_62 : f32 to vector<16x512xf32>
    %141 = arith.mulf %140, %139 : vector<16x512xf32>
    %cst_63 = arith.constant -1.45315206 : f32
    %142 = vector.broadcast %cst_63 : f32 to vector<16x512xf32>
    %143 = arith.addf %141, %142 : vector<16x512xf32>
    %144 = arith.mulf %143, %139 : vector<16x512xf32>
    %cst_64 = arith.constant 1.42141378 : f32
    %145 = vector.broadcast %cst_64 : f32 to vector<16x512xf32>
    %146 = arith.addf %144, %145 : vector<16x512xf32>
    %147 = arith.mulf %146, %139 : vector<16x512xf32>
    %cst_65 = arith.constant -0.284496725 : f32
    %148 = vector.broadcast %cst_65 : f32 to vector<16x512xf32>
    %149 = arith.addf %147, %148 : vector<16x512xf32>
    %150 = arith.mulf %149, %139 : vector<16x512xf32>
    %cst_66 = arith.constant 0.254829586 : f32
    %151 = vector.broadcast %cst_66 : f32 to vector<16x512xf32>
    %152 = arith.addf %150, %151 : vector<16x512xf32>
    %153 = arith.mulf %152, %139 : vector<16x512xf32>
    %cst_67 = arith.constant 0.000000e+00 : f32
    %154 = vector.broadcast %cst_67 : f32 to vector<16x512xf32>
    %155 = arith.subf %154, %133 : vector<16x512xf32>
    %156 = arith.mulf %155, %133 : vector<16x512xf32>
    %157 = math.exp %156 : vector<16x512xf32>
    %158 = arith.mulf %153, %157 : vector<16x512xf32>
    %cst_68 = arith.constant 1.000000e+00 : f32
    %159 = vector.broadcast %cst_68 : f32 to vector<16x512xf32>
    %160 = arith.subf %159, %158 : vector<16x512xf32>
    %cst_69 = arith.constant 0.000000e+00 : f32
    %161 = vector.broadcast %cst_69 : f32 to vector<16x512xf32>
    %162 = arith.cmpf oge, %132, %161 : vector<16x512xf32>
    %cst_70 = arith.constant 0.000000e+00 : f32
    %163 = vector.broadcast %cst_70 : f32 to vector<16x512xf32>
    %164 = arith.subf %163, %160 : vector<16x512xf32>
    %165 = arith.select %162, %160, %164 : vector<16x512xi1>, vector<16x512xf32>
    %cst_71 = arith.constant 1.000000e+00 : f32
    %166 = vector.broadcast %cst_71 : f32 to vector<16x512xf32>
    %167 = arith.addf %166, %165 : vector<16x512xf32>
    %168 = arith.mulf %130, %167 : vector<16x512xf32>
    %169 = arith.truncf %168 : vector<16x512xf32> to vector<16x512xbf16>
    %c0_72 = arith.constant 0 : index
    %c0_73 = arith.constant 0 : index
    %c0_74 = arith.constant 0 : index
    %170 = vector.load %arg11[%c0_72, %c0_73, %c0_74] : memref<1x512x256xbf16, #tpu.memory_space<vmem>>, vector<1x512x256xbf16>
    %171 = vector.shape_cast %170 : vector<1x512x256xbf16> to vector<512x256xbf16>
    %cst_75 = arith.constant dense<0.000000e+00> : vector<16x256xf32>
    %172 = tpu.matmul %169, %171, %cst_75 {dimension_numbers = #tpu.dot_dimension_numbers<[1], [0], [0], [1], [0, 0, 1, 1], [], []>} : vector<16x512xbf16>, vector<512x256xbf16>, vector<16x256xf32> -> vector<16x256xf32>
    %c0_76 = arith.constant 0 : index
    %c0_77 = arith.constant 0 : index
    %c0_78 = arith.constant 0 : index
    %173 = vector.load %arg12[%c0_76, %c0_77, %c0_78] : memref<1x1x256xf32, #tpu.memory_space<vmem>>, vector<1x1x256xf32>
    %174 = vector.shape_cast %173 : vector<1x1x256xf32> to vector<1x256xf32>
    %175 = vector.broadcast %174 : vector<1x256xf32> to vector<16x256xf32>
    %176 = arith.addf %172, %175 : vector<16x256xf32>
    %177 = arith.addf %120, %176 : vector<16x256xf32>
    %c0_79 = arith.constant 0 : index
    %c0_80 = arith.constant 0 : index
    %c0_81 = arith.constant 0 : index
    %178 = vector.load %arg15[%c0_79, %c0_80, %c0_81] : memref<1x1x256xf32, #tpu.memory_space<vmem>>, vector<1x1x256xf32>
    %179 = vector.shape_cast %178 : vector<1x1x256xf32> to vector<1x256xf32>
    %c0_82 = arith.constant 0 : index
    %c0_83 = arith.constant 0 : index
    %c0_84 = arith.constant 0 : index
    %180 = vector.load %arg16[%c0_82, %c0_83, %c0_84] : memref<1x1x256xf32, #tpu.memory_space<vmem>>, vector<1x1x256xf32>
    %181 = vector.shape_cast %180 : vector<1x1x256xf32> to vector<1x256xf32>
    %cst_85 = arith.constant dense<0.000000e+00> : vector<16xf32>
    %182 = vector.multi_reduction <add>, %177, %cst_85 [1] : vector<16x256xf32> to vector<16xf32>
    %183 = vector.shape_cast %182 : vector<16xf32> to vector<16x1xf32>
    %cst_86 = arith.constant 2.560000e+02 : f32
    %184 = vector.broadcast %cst_86 : f32 to vector<16x1xf32>
    %185 = arith.divf %183, %184 : vector<16x1xf32>
    %186 = vector.broadcast %185 : vector<16x1xf32> to vector<16x256xf32>
    %187 = arith.subf %177, %186 : vector<16x256xf32>
    %188 = arith.mulf %187, %187 : vector<16x256xf32>
    %cst_87 = arith.constant dense<0.000000e+00> : vector<16xf32>
    %189 = vector.multi_reduction <add>, %188, %cst_87 [1] : vector<16x256xf32> to vector<16xf32>
    %190 = vector.shape_cast %189 : vector<16xf32> to vector<16x1xf32>
    %cst_88 = arith.constant 2.560000e+02 : f32
    %191 = vector.broadcast %cst_88 : f32 to vector<16x1xf32>
    %192 = arith.divf %190, %191 : vector<16x1xf32>
    %193 = vector.broadcast %185 : vector<16x1xf32> to vector<16x256xf32>
    %194 = arith.subf %177, %193 : vector<16x256xf32>
    %cst_89 = arith.constant 9.99999974E-6 : f32
    %195 = vector.broadcast %cst_89 : f32 to vector<16x1xf32>
    %196 = arith.addf %192, %195 : vector<16x1xf32>
    %197 = math.rsqrt %196 : vector<16x1xf32>
    %198 = vector.broadcast %197 : vector<16x1xf32> to vector<16x256xf32>
    %199 = arith.mulf %194, %198 : vector<16x256xf32>
    %200 = vector.broadcast %179 : vector<1x256xf32> to vector<16x256xf32>
    %201 = arith.mulf %199, %200 : vector<16x256xf32>
    %202 = vector.broadcast %181 : vector<1x256xf32> to vector<16x256xf32>
    %203 = arith.addf %201, %202 : vector<16x256xf32>
    %c0_90 = arith.constant 0 : index
    %c0_91 = arith.constant 0 : index
    %204 = vector.load %arg18[%c0_90, %c0_91] : memref<16x256xf32, #tpu.memory_space<vmem>>, vector<16x256xf32>
    tpu.vector_store %arg18[%c0_90, %c0_91], %203 {strides = array<i32>} : memref<16x256xf32, #tpu.memory_space<vmem>>, vector<16x256xf32>,
    %c1_i32 = arith.constant 1 : i32
    %205 = arith.cmpi eq, %arg1, %c1_i32 : i32
    %206 = arith.extui %205 : i1 to i32
    %c0_i32_92 = arith.constant 0 : i32
    %207 = arith.cmpi ne, %206, %c0_i32_92 : i32
    scf.if %207 {
      %208 = vector.shape_cast %203 : vector<16x256xf32> to vector<2x8x256xf32>
      %c0_93 = arith.constant 0 : index
      %c0_94 = arith.constant 0 : index
      %c0_95 = arith.constant 0 : index
      %209 = vector.load %arg17[%c0_93, %c0_94, %c0_95] : memref<2x8x256xf32, #tpu.memory_space<vmem>>, vector<2x8x256xf32>
      tpu.vector_store %arg17[%c0_93, %c0_94, %c0_95], %208 {strides = array<i32>} : memref<2x8x256xf32, #tpu.memory_space<vmem>>, vector<2x8x256xf32>,
    } else {
    }
    return
  }
  func.func @transform_0(%arg0: i32, %arg1: i32) -> (i32, i32, i32) {
    %c0_i32 = arith.constant 0 : i32
    %c0_i32_0 = arith.constant 0 : i32
    %c0_i32_1 = arith.constant 0 : i32
    return %arg0, %c0_i32, %c0_i32_0 : i32, i32, i32
  }
  func.func @transform_1(%arg0: i32, %arg1: i32) -> (i32, i32) {
    %c0_i32 = arith.constant 0 : i32
    %c0_i32_0 = arith.constant 0 : i32
    %c0_i32_1 = arith.constant 0 : i32
    return %c0_i32, %c0_i32_0 : i32, i32
  }
  func.func @transform_2(%arg0: i32, %arg1: i32) -> (i32, i32) {
    %c0_i32 = arith.constant 0 : i32
    %c0_i32_0 = arith.constant 0 : i32
    %c0_i32_1 = arith.constant 0 : i32
    return %c0_i32, %c0_i32_0 : i32, i32
  }
  func.func @transform_3(%arg0: i32, %arg1: i32) -> (i32, i32, i32) {
    %c0_i32 = arith.constant 0 : i32
    %c0_i32_0 = arith.constant 0 : i32
    %c0_i32_1 = arith.constant 0 : i32
    return %arg1, %c0_i32, %c0_i32_0 : i32, i32, i32
  }
  func.func @transform_4(%arg0: i32, %arg1: i32) -> (i32, i32, i32) {
    %c0_i32 = arith.constant 0 : i32
    %c0_i32_0 = arith.constant 0 : i32
    %c0_i32_1 = arith.constant 0 : i32
    return %arg1, %c0_i32, %c0_i32_0 : i32, i32, i32
  }
  func.func @transform_5(%arg0: i32, %arg1: i32) -> (i32, i32, i32) {
    %c0_i32 = arith.constant 0 : i32
    %c0_i32_0 = arith.constant 0 : i32
    %c0_i32_1 = arith.constant 0 : i32
    return %arg1, %c0_i32, %c0_i32_0 : i32, i32, i32
  }
  func.func @transform_6(%arg0: i32, %arg1: i32) -> (i32, i32, i32) {
    %c0_i32 = arith.constant 0 : i32
    %c0_i32_0 = arith.constant 0 : i32
    %c0_i32_1 = arith.constant 0 : i32
    return %arg1, %c0_i32, %c0_i32_0 : i32, i32, i32
  }
  func.func @transform_7(%arg0: i32, %arg1: i32) -> (i32, i32, i32) {
    %c0_i32 = arith.constant 0 : i32
    %c0_i32_0 = arith.constant 0 : i32
    %c0_i32_1 = arith.constant 0 : i32
    return %arg1, %c0_i32, %c0_i32_0 : i32, i32, i32
  }
  func.func @transform_8(%arg0: i32, %arg1: i32) -> (i32, i32, i32) {
    %c0_i32 = arith.constant 0 : i32
    %c0_i32_0 = arith.constant 0 : i32
    %c0_i32_1 = arith.constant 0 : i32
    return %arg1, %c0_i32, %c0_i32_0 : i32, i32, i32
  }
  func.func @transform_9(%arg0: i32, %arg1: i32) -> (i32, i32, i32) {
    %c0_i32 = arith.constant 0 : i32
    %c0_i32_0 = arith.constant 0 : i32
    %c0_i32_1 = arith.constant 0 : i32
    return %arg1, %c0_i32, %c0_i32_0 : i32, i32, i32
  }
  func.func @transform_10(%arg0: i32, %arg1: i32) -> (i32, i32, i32) {
    %c0_i32 = arith.constant 0 : i32
    %c0_i32_0 = arith.constant 0 : i32
    %c0_i32_1 = arith.constant 0 : i32
    return %arg1, %c0_i32, %c0_i32_0 : i32, i32, i32
  }
  func.func @transform_11(%arg0: i32, %arg1: i32) -> (i32, i32, i32) {
    %c0_i32 = arith.constant 0 : i32
    %c0_i32_0 = arith.constant 0 : i32
    %c0_i32_1 = arith.constant 0 : i32
    return %arg1, %c0_i32, %c0_i32_0 : i32, i32, i32
  }
  func.func @transform_12(%arg0: i32, %arg1: i32) -> (i32, i32, i32) {
    %c0_i32 = arith.constant 0 : i32
    %c0_i32_0 = arith.constant 0 : i32
    %c0_i32_1 = arith.constant 0 : i32
    return %arg1, %c0_i32, %c0_i32_0 : i32, i32, i32
  }
  func.func @transform_13(%arg0: i32, %arg1: i32) -> (i32, i32, i32) {
    %c0_i32 = arith.constant 0 : i32
    %c0_i32_0 = arith.constant 0 : i32
    %c0_i32_1 = arith.constant 0 : i32
    return %arg1, %c0_i32, %c0_i32_0 : i32, i32, i32
  }
  func.func @transform_14(%arg0: i32, %arg1: i32) -> (i32, i32, i32) {
    %c0_i32 = arith.constant 0 : i32
    %c0_i32_0 = arith.constant 0 : i32
    %c0_i32_1 = arith.constant 0 : i32
    return %arg1, %c0_i32, %c0_i32_0 : i32, i32, i32
  }
  func.func @transform_15(%arg0: i32, %arg1: i32) -> (i32, i32, i32) {
    %c0_i32 = arith.constant 0 : i32
    %c0_i32_0 = arith.constant 0 : i32
    %c0_i32_1 = arith.constant 0 : i32
    return %arg0, %c0_i32, %c0_i32_0 : i32, i32, i32
  }
}

</mosaic_0001>

<bundles_post_ra>
// kernel: tpu_custom_call.1
= control target key start
LH: loop header
LB: loop body
LE: loop exit
PB: predicated region body
PF: predicated region fallthrough
CT: control target
= control target key end

     0   :  { %s7174_s0 = inlined_call_operand.vmem [shape: f32[4,8,4], index: 0, kind: input, shape index: {}]   ;;  %s7175_s1 = inlined_call_operand.vmem [shape: bf16[4,256], index: 1, kind: input, shape index: {}]   ;;  %s7176_s2 = inlined_call_operand.hbm [shape: f32[1,256], index: 2, kind: input, shape index: {}]   ;;  %s7177_s3 = inlined_call_operand.hbm [shape: bf16[2,256,768], index: 3, kind: input, shape index: {}]   ;;  %s7178_s4 = inlined_call_operand.vmem [shape: f32[2,1,768], index: 4, kind: input, shape index: {}]   ;;  %s7179_s5 = inlined_call_operand.hbm [shape: bf16[2,256,256], index: 5, kind: input, shape index: {}]   ;;  %s7180_s6 = inlined_call_operand.vmem [shape: f32[2,1,256], index: 6, kind: input, shape index: {}]   ;;  %s7181_s7 = inlined_call_operand.hbm [shape: bf16[2,256,512], index: 7, kind: input, shape index: {}]   ;;  %s7182_s8 = inlined_call_operand.vmem [shape: f32[2,1,512], index: 8, kind: input, shape index: {}]   ;;  %s7183_s9 = inlined_call_operand.hbm [shape: bf16[2,512,256], index: 9, kind: input, shape index: {}]   ;;  %s7184_s10 = inlined_call_operand.vmem [shape: f32[2,1,256], index: 10, kind: input, shape index: {}]   ;;  %s7185_s11 = inlined_call_operand.vmem [shape: f32[2,1,256], index: 11, kind: input, shape index: {}]   ;;  %s7186_s12 = inlined_call_operand.vmem [shape: f32[2,1,256], index: 12, kind: input, shape index: {}]   ;;  %s7187_s13 = inlined_call_operand.vmem [shape: f32[2,1,256], index: 13, kind: input, shape index: {}]   ;;  %s7188_s14 = inlined_call_operand.vmem [shape: f32[2,1,256], index: 14, kind: input, shape index: {}]   ;;  %s7189_s15 = inlined_call_operand.hbm [shape: f32[4,8,256], index: 15, kind: output, shape index: {}]  }
   0x1   :  { %7208 = sst [smem:[#allocation34_spill]] %s7174_s0 }
   0x2   :  { %7209 = sst [smem:[#allocation35_spill]] %s7175_s1 }
   0x3   :  { %7210 = sst [smem:[#allocation36_spill]] %s7176_s2 }
   0x4   :  { %7211 = sst [smem:[#allocation37_spill]] %s7177_s3 }
   0x5   :  { %7212 = sst [smem:[#allocation38_spill]] %s7178_s4 }
   0x6   :  { %7213 = sst [smem:[#allocation39_spill]] %s7179_s5 }
   0x7   :  { %7214 = sst [smem:[#allocation40_spill]] %s7180_s6 }
   0x8   :  { %7215 = sst [smem:[#allocation41_spill]] %s7181_s7 }
   0x9   :  { %7216 = sst [smem:[#allocation42_spill]] %s7182_s8 }
   0xa   :  { %7217 = sst [smem:[#allocation43_spill]] %s7183_s9 }
   0xb   :  { %7218 = sst [smem:[#allocation44_spill]] %s7184_s10 }
   0xc   :  { %7219 = sst [smem:[#allocation45_spill]] %s7185_s11 }
   0xd   :  { %7220 = sst [smem:[#allocation46_spill]] %s7186_s12 }
   0xe   :  { %7221 = sst [smem:[#allocation47_spill]] %s7187_s13 }
   0xf   :  { %7222 = sst [smem:[#allocation48_spill]] %s7188_s14 }
  0x10   :  { %7223 = sst [smem:[#allocation49_spill]] %s7189_s15 }
  0x11   :  { %20 = vsyncpa [#allocation5], 0 }
  0x12   :  { %21 = vsyncpa [#allocation8], 0 }
  0x13   :  { %23 = vsyncpa [#allocation8 + $0x1], 0 }
  0x14   :  { %24 = vsyncpa [#allocation11], 0 }
  0x15   :  { %26 = vsyncpa [#allocation11 + $0x1], 0 }
  0x16   :  { %27 = vsyncpa [#allocation6], 0 }
  0x17   :  { %29 = vsyncpa [#allocation6 + $0x1], 0  ;;  %s5876_s18 = smov 0   ;;  %s5878_s19 = smov 0  }
  0x18   :  { %s5880_s20 = smov 0   ;;  %s5882_s21 = smov 0  }
  0x19   :  { %s5884_s22 = smov 0   ;;  %s5886_s23 = smov 0  }
  0x1a   :  { %s5888_s24 = smov 0   ;;  %s5890_s25 = smov 0  }
  0x1b   :  { %s5892_s26 = smov 0   ;;  %s5894_s27 = smov 0  }
  0x1c   :  { %s5896_s28 = smov 0  }
  0x1d LB: > { %7224 = sst [smem:[#allocation18_spill]] %s5744_s18  ;;  %s44_s29 = sadd.s32 1, %s5776_s26  ;;  %s5784_s28 = sphi %s5896_s28, %s35_s28   ;;  %s5780_s27 = sphi %s5894_s27, %s7289_s27   ;;  %s5776_s26 = sphi %s5892_s26, %s7288_s26   ;;  %s5772_s25 = sphi %s5890_s25, %s7287_s25   ;;  %s5768_s24 = sphi %s5888_s24, %s7286_s24   ;;  %s5764_s23 = sphi %s5886_s23, %s7285_s23   ;;  %s5760_s22 = sphi %s5884_s22, %s7284_s22   ;;  %s5756_s21 = sphi %s5882_s21, %s7283_s21   ;;  %s5752_s20 = sphi %s5880_s20, %s7282_s20   ;;  %s5748_s19 = sphi %s5878_s19, %s7281_s19   ;;  %s5744_s18 = sphi %s5876_s18, %s7280_s18  }
  0x1e   : > { %7225 = sst [smem:[#allocation19_spill]] %s5748_s19  ;;  %s122_s30 = sadd.s32 1, %s5764_s23 }
  0x1f   : > { %7226 = sst [smem:[#allocation20_spill]] %s5752_s20  ;;  %p5933_p0 = scmp.ge.s32.totalorder %s44_s29, 2 }
  0x20   : > { %7227 = sst [smem:[#allocation21_spill]] %s5760_s22  ;;  %p129_p1 = scmp.ne.s32.totalorder %s5764_s23, %s5760_s22 }
  0x21   : > { %7228 = sst [smem:[#allocation22_spill]] %s5764_s23  ;;  %p130_p2 = scmp.eq.s32.totalorder %s5784_s28, 0 }
  0x22   : > { %7229 = sst [smem:[#allocation23_spill]] %s5768_s24  ;;  %s7291_s29 = smov (%p5933_p0, %s44_s29), 0 }
  0x23   : > { %7230 = sst [smem:[#allocation24_spill]] %s5772_s25  ;;  %p131_p3 = por %p130_p2, %p129_p1 }
  0x24   : > { %7231 = sst [smem:[#allocation25_spill]] %s5776_s26  ;;  %p5341_p4 = scmp.lt.s32.totalorder %s5784_s28, 4 }
  0x25   : > { %7232 = sst [smem:[#allocation26_spill]] %s5780_s27  ;;  %s119_s17 = ssub.s32 %s5776_s26, %s7291_s29 }
  0x26   : > { %7233 = sst [smem:[#allocation27_spill]] %s5784_s28  ;;  %s495_s15 = sand.u32 1, %s5784_s28  }
  0x27   : > { %7235 = sst [smem:[#allocation28_spill]] %s7291_s29  ;;  %p120_p5 = scmp.eq.s32.totalorder %s119_s17, 0 }
  0x28   : > { %s5949_s1 = sand.u32 1, %s5764_s23   ;;  %s5302_s14 = smul.u32 768, %s5776_s26 }
  0x29   : > { %s5953_s13 = scalar_select %p120_p5, %s5764_s23, %s122_s30  }
  0x2a   : > { %s5301_s12 = smul.u32 768, %s5949_s1  ;;  %s7237_s3 = sld [smem:[#allocation37_spill]] }
  0x2b   : > { %7236 = sst [smem:[#allocation29_spill]] %s5953_s13  ;;  %p5959_p6 = pnand %p5341_p4, %p131_p3 }
  0x2c   : > { %s499_s17 = scalar_lea.vmem [#allocation7], %s5301_s12  ;;  %s5963_s0 = scalar_lea.sflag [#allocation8], %s495_s15 }
  0x2d   : > { %s507_s29 = sshll.u32 %s499_s17, 4  ;;  %s5786_s30 = smov 384   ;;  %s508_s29 = int_to_ptr.vmem [resolvable:$true] %s507_s29 }
  0x2e   : > { %s5787_s13 = smov 24   ;;  %s3971_s10 = sshll.u32 %s5949_s1, 9 }
  0x2f   : > { %s5039_s11 = sshll.u32 %s5776_s26, 9  ;;  %s7239_s7 = sld [smem:[#allocation41_spill]] }
  0x30   : > { %s504_s8 = scalar_lea.hbm %s7237_s3, %s5302_s14  ;;  %s557_s12 = scalar_lea.vmem [#allocation10], %s3971_s10 }
  0x31   : > { %s505_s6 = sshll.u32 %s504_s8, 4  ;;  %s565_s17 = sshll.u32 %s557_s12, 4  ;;  %s506_s6 = int_to_ptr.hbm [resolvable:$true] %s505_s6  ;;  %s566_s17 = int_to_ptr.vmem [resolvable:$true] %s565_s17 }
  0x32   : > { %5326 = dma.hbm_to_vmem [thread:$0]  (!%p5959_p6), %s506_s6, 12288, %s508_s29, %s5963_s0, %s5786_s30, %s5786_s30, %s5787_s13  }
  0x33   : > { %s5973_s24 = scalar_lea.sflag [#allocation11], %s495_s15  ;;  %s5788_s6 = smov 256  }
  0x34   : > { %s5789_s13 = smov 16   ;;  %s7240_s9 = sld [smem:[#allocation43_spill]] }
  0x35   : > { %s562_s3 = scalar_lea.hbm %s7239_s7, %s5039_s11  ;;  %s586_s14 = scalar_lea.vmem [#allocation12], %s3971_s10 }
  0x36   : > { %s563_s23 = sshll.u32 %s562_s3, 4  ;;  %s594_s12 = sshll.u32 %s586_s14, 4  ;;  %s564_s23 = int_to_ptr.hbm [resolvable:$true] %s563_s23  ;;  %s5983_s12 = int_to_ptr.vmem [resolvable:$true] %s594_s12 }
  0x37   : > { %5332 = dma.hbm_to_vmem [thread:$0]  (!%p5959_p6), %s564_s23, 8192, %s566_s17, %s5973_s24, %s5788_s6, %s5788_s6, %s5789_s13  }
  0x38   : > { %s5986_s15 = sadd.s32 4294967295, %s5784_s28   ;;  %s3963_s23 = sadd.s32 4294967294, %s5784_s28  }
  0x39   : > { %s47_s17 = sadd.s32 1, %s5780_s27  ;;  %p135_p7 = scmp.ne.s32.totalorder %s5760_s22, %s5756_s21 }
  0x3a   : > { %s591_s30 = scalar_lea.hbm %s7240_s9, %s5039_s11  ;;  %s7293_s17 = smov (!%p5933_p0, %s47_s17), %s5780_s27 }
  0x3b   : > { %s592_s8 = sshll.u32 %s591_s30, 4  ;;  %p136_p8 = scmp.eq.s32.totalorder %s5986_s15, 0  ;;  %s5981_s8 = int_to_ptr.hbm [resolvable:$true] %s592_s8 }
  0x3c   : > { %s434_s10 = sadd.s32 1, %s5752_s20  ;;  %p49_p9 = scmp.ge.s32.totalorder %s7293_s17, 2 }
  0x3d   : > { %p444_p10 = scmp.ne.s32.totalorder %s5752_s20, %s5748_s19  ;;  %p6001_p11 = por %p136_p8, %p135_p7 }
  0x3e   : > { %p445_p12 = scmp.eq.s32.totalorder %s5986_s15, 3  ;;  %s7295_s17 = smov (%p49_p9, %s7293_s17), 0 }
  0x3f   : > { %7242 = sst [smem:[#allocation30_spill]] %s7295_s17  ;;  %p450_p0 = scmp.ne.s32.totalorder %s5748_s19, %s5744_s18 }
  0x40   : > { %p6008_p13 = por %p445_p12, %p444_p10  ;;  %s431_s16 = ssub.s32 %s5780_s27, %s7295_s17 }
  0x41   : > { %p451_p1 = scmp.eq.s32.totalorder %s3963_s23, 3  ;;  %p432_p2 = scmp.eq.s32.totalorder %s431_s16, 0 }
  0x42   : > { %s7243_s21 = scalar_select %p6008_p13, 1, 0 }
  0x43   : > { %p3964_p3 = scmp.ge.s32.totalorder %s5784_s28, 1  ;;  %p6017_p4 = por %p451_p1, %p450_p0 }
  0x44   : > { %7244 = sst [smem:[#allocation31_spill]] %s7243_s21  ;;  %p458_p5 = scmp.lt.s32.totalorder %s5784_s28, 5 }
  0x45   : > { %s7245_s6 = scalar_select %p6017_p4, 1, 0 }
  0x46   : > { %s6023_s13 = scalar_select %p432_p2, %s5752_s20, %s434_s10  }
  0x47   : > { %7246 = sst [smem:[#allocation32_spill]] %s7245_s6  ;;  %p6025_p7 = pnand %p3964_p3, %p458_p5 }
  0x48   : > { %7247 = sst [smem:[#allocation33_spill]] %s6023_s13  ;;  %s5790_s23 = smov [#allocation4]  }
  0x49   : > { %s7249_s2 = sld [smem:[#allocation36_spill]]  ;;  %p5319_p9 = pneg %p6025_p7 }
  0x4a   : > { %s475_s10 = sshll.u32 %s5790_s23, 4  ;;  %s3968_s16 = sshll.u32 %s5949_s1, 8  ;;  %s476_s10 = int_to_ptr.vmem [resolvable:$true] %s475_s10 }
  0x4b   : > { %p5320_p10 = pnand %p5319_p9, %p136_p8  ;;  %s5038_s7 = sshll.u32 %s5776_s26, 8 }
  0x4c   : > { %s7250_s5 = sld [smem:[#allocation39_spill]]  ;;  %s528_s17 = scalar_lea.vmem [#allocation9], %s3968_s16 }
  0x4d   : > { %s536_s27 = sshll.u32 %s528_s17, 4  ;;  %s5791_s13 = smov 128   ;;  %s537_s27 = int_to_ptr.vmem [resolvable:$true] %s536_s27 }
  0x4e   : > { %s5792_s20 = smov 8  }
  0x4f   : > { %s473_s14 = sshll.u32 %s7249_s2, 4  ;;  %s474_s14 = int_to_ptr.hbm [resolvable:$true] %s473_s14 }
  0x50   : > { %5322 = dma.hbm_to_vmem [thread:$0]  (!%p5320_p10), %s474_s14, 32, %s476_s10, [#allocation5]  }
  0x51   : > { %5335 = dma.hbm_to_vmem [thread:$0]  (!%p5959_p6), %s5981_s8, 8192, %s5983_s12, %s5973_s24, %s5791_s13, %s5791_s13, %s5792_s20  }
  0x52   : > { %s533_s30 = scalar_lea.hbm %s7250_s5, %s5038_s7  ;;  %641 = sbr.rel (%p6025_p7) target bundleno = 2178 (0x882), region = 80 }
  0x53   : > { %s534_s2 = sshll.u32 %s533_s30, 4  ;;  %s535_s2 = int_to_ptr.hbm [resolvable:$true] %s534_s2 }
  0x54   : > { %5329 = dma.hbm_to_vmem [thread:$0]  (!%p5959_p6), %s535_s2, 4096, %s537_s27, %s5963_s0, %s5791_s13, %s5791_s13, %s5792_s20  }
  0x57   : > { %5727 = dma.done.wait (%p136_p8), [#allocation5], 32  }
  0x58   : > { %5729 = vsyncadd (%p136_p8), [#allocation5], 4294967264  ;;  %s648_s1 = sand.u32 1, %s5986_s15   ;;  %s6057_s7 = sand.u32 1, %s5760_s22  }
  0x59   : > { %s5303_s9 = smul.u32 768, %s6057_s7  ;;  %s649_s0 = scalar_lea.sflag [#allocation8], %s648_s1 }
  0x5b   : > { %s6060_s2 = scalar_lea.vmem [#allocation7], %s5303_s9 }
  0x5c   : > { %5731 = dma.done.wait (%p6001_p11), %s649_s0, 16384  }
  0x5d   : > { %5733 = vsyncadd (%p6001_p11), %s649_s0, 4294950912  ;;  %s3979_s4 = sshll.u32 %s6057_s7, 8  ;;  %s3980_s20 = sshll.u32 %s6057_s7, 9 }
  0x5e   : > { %s6068_s24 = scalar_lea.vmem [#allocation9], %s3979_s4  ;;  %s669_s27 = scalar_lea.sflag [#allocation11], %s648_s1 }
  0x5f   : > { %s6070_s8 = scalar_lea.vmem [#allocation10], %s3980_s20 }
  0x60   : > { %5735 = dma.done.wait (%p6001_p11), %s669_s27, 16384  }
  0x61   : > { %5737 = vsyncadd (%p6001_p11), %s669_s27, 4294950912  ;;  %s7251_s12 = sld [smem:[#allocation23_spill]]  ;;  %s7197_s15 = sand.u32 1, %s5748_s19  }
  0x62   : > { %s3982_s17 = sshll.u32 %s7197_s15, 5  ;;  %s3983_s13 = sshll.u32 %s5772_s25, 1 }
  0x63   : > { %p783_p6 = scmp.lt.s32.totalorder %s3983_s13, 3  ;;  %s7252_s16 = sld [smem:[#allocation34_spill]] }
  0x64   : > { %s7253_s0 = sld [smem:[#allocation38_spill]]  ;;  %s6123_s22 = scalar_lea.vmem [#allocation13], %s3982_s17 }
  0x65   : > { %s7297_s13 = smov (!%p783_p6, %s3983_s13), 3  ;;  %s7256_s6 = sld [smem:[#allocation44_spill]] }
  0x66   : > { %s3984_s14 = sshll.u32 %s7297_s13, 3  ;;  %s7257_s21 = sld [smem:[#allocation45_spill]] }
  0x67   : > { %p788_p8 = scmp.lt.s32.totalorder %s7251_s12, 1  ;;  %s7258_s9 = sld [smem:[#allocation46_spill]] }
  0x68   : > { %s7259_s15 = sld [smem:[#allocation47_spill]]  ;;  %p3992_p11 = scmp.ne.s32.totalorder %s7251_s12, 0 }
  0x69   : > { %s789_s3 = scalar_select %p788_p8, %s7251_s12, 1 }
  0x6a   : > { %s786_s29 = scalar_lea.vmem %s7252_s16, %s3984_s14  ;;  %s7255_s16 = sld [smem:[#allocation42_spill]] }
  0x6b   : > { %s5304_s11 = smul.u32 6, %s789_s3  ;;  %s6085_s30 = sshll.u32 %s789_s3, 1 }
  0x6c   : > { %s3986_s1 = sshll.u32 %s789_s3, 2  ;;  %s803_s18 = scalar_lea.vmem %s7256_s6, %s6085_s30 }
  0x6d   : > { %s6090_s4 = scalar_lea.vmem %s7253_s0, %s5304_s11  ;;  %s807_s19 = scalar_lea.vmem %s7257_s21, %s6085_s30 }
  0x6e   : > { %s811_s0 = scalar_lea.vmem %s7258_s9, %s6085_s30  ;;  %s815_s13 = scalar_lea.vmem %s7259_s15, %s6085_s30 }
  0x6f   : > { %s7261_s21 = sld [smem:[#allocation35_spill]] (!%p3992_p11) }
  0x70   : > { %s6099_s5 = scalar_lea.vmem %s7255_s16, %s3986_s1  ;;  %s7260_s1 = sld [smem:[#allocation48_spill]] }
  0x71   : > { %s6121_s16 = scalar_lea.vmem [#allocation12], %s3980_s20 }
  0x72   : > { %825 = sbr.rel (%p3992_p11) target bundleno = 270 (0x10e), region = 104 }
  0x76   : > { %s819_s10 = scalar_lea.vmem %s7260_s1, %s6085_s30 }
  0x77   : > { %v829_v0 = vld [vmem:[%s7261_s21] sm:$0xf]  ;;  %vm844_vm0 = vcmask 1041408   ;;  %v827_v2 = vld [vmem:[%s786_s29 + $0x8] sm:$0xff]  ;;  %vm840_vm1 = vcmask 31744  }
  0x78   : > { %837 = vst [vmem:[#allocation1] ss:$4 sm:$0xff] %v829_v0  ;;  %v826_v1 = vld [vmem:[%s786_s29] sm:$0xff]  ;;  %v830_v8 = vld [vmem:[#allocation4] sm:$0x3] }
  0x79   : > { %v828_v7 = vpack.c.bf16 %v827_v2, %v826_v1  ;;  %v832_v9 = vperm.slane %v830_v8, 0  ;;  %v833_v10 = vperm.slane %v830_v8, 1 }
  0x7f   : > { %v838_v3 = vld.sshfl [vmem:[#allocation1] sm:$0xff pattern:$0x73625140]  ;;  %v839_v4 = vld.sshfl [vmem:[#allocation1 + $0x8] sm:$0xff pattern:$0x73625140] }
  0x80   : > { %v845_v5 = vsel %vm844_vm0, %v838_v3, 0  ;;  %v847_v6 = vsel %vm844_vm0, %v839_v4, 0 }
  0x81   : > { %856 = vmatpush.bf16.msra.mxu0 %v845_v5  ;;  %870 = vmatpush.bf16.msra.mxu1 %v847_v6 }
  0x84   : > { %3993 = vmatmul.msk.bf16.vlgmr.msra.gmra.mxu0 %vm840_vm1, %v828_v7  ;;  %3994 = vmatmul.msk.bf16.vlgmr.msra.gmra.mxu1 %vm840_vm1, %v828_v7 }
 0x101   : > { %v858_v11 = vpop.f32.mrf.mxu0  ;;  %v872_v12 = vpop.f32.mrf.mxu1 }
 0x102   : > { %v859_v13 = vadd.f32 %v858_v11, %v832_v9  ;;  %v873_v14 = vadd.f32 %v872_v12, %v833_v10 }
 0x104   : > { %877 = vst [vmem:[#allocation2 + $0x10] sm:$0xff] %v859_v13 }
 0x105   : > { %878 = vst [vmem:[#allocation2] sm:$0xff] %v873_v14 }
 0x109   : > { %v860_v15 = vpop.f32.mrf.mxu0  ;;  %v874_v16 = vpop.f32.mrf.mxu1 }
 0x10a   : > { %v861_v17 = vadd.f32 %v860_v15, %v832_v9  ;;  %v875_v18 = vadd.f32 %v874_v16, %v833_v10 }
 0x10c   : > { %879 = vst [vmem:[#allocation2 + $0x18] sm:$0xff] %v861_v17 }
 0x10d   : > { %880 = vst [vmem:[#allocation2 + $0x8] sm:$0xff] %v875_v18 }
 0x10e PF: > { %v4165_v19 = vld [vmem:[%s6060_s2 + $0x150] sm:$0xf]  ;;  %v5086_v20 = vld [vmem:[%s6060_s2 + $0x164] sm:$0xf0]  ;;  %v5083_v24 = vld [vmem:[%s6060_s2 + $0x154] sm:$0xf] }
 0x10f   : > { %v4357_v21 = vld [vmem:[%s6060_s2 + $0x2d0] sm:$0xf]  ;;  %v4166_v22 = vor.u32 %v5086_v20, %v4165_v19  ;;  %v5134_v23 = vld [vmem:[%s6060_s2 + $0x2e4] sm:$0xf0]  ;;  %v4167_v25 = vld [vmem:[%s6060_s2 + $0x168] sm:$0xf0] }
 0x110   : > { %v4358_v26 = vor.u32 %v5134_v23, %v4357_v21  ;;  %v4170_v27 = vor.u32 %v5083_v24, %v4167_v25  ;;  %v5131_v28 = vld [vmem:[%s6060_s2 + $0x2d4] sm:$0xf]  ;;  %v4359_v29 = vld [vmem:[%s6060_s2 + $0x2e8] sm:$0xf0]  ;;  %v4141_v30 = vld [vmem:[%s6060_s2 + $0x120] sm:$0xf] }
 0x111   : > { %1477 = vmatpush.bf16.msra.mxu0 %v4166_v22  ;;  %v4362_v31 = vor.u32 %v5131_v28, %v4359_v29  ;;  %v5080_v32 = vld [vmem:[%s6060_s2 + $0x134] sm:$0xf0]  ;;  %v4333_v33 = vld [vmem:[%s6060_s2 + $0x2a0] sm:$0xf]  ;;  %v5077_v37 = vld [vmem:[%s6060_s2 + $0x124] sm:$0xf] }
 0x112   : > { %v5128_v34 = vld [vmem:[%s6060_s2 + $0x2b4] sm:$0xf0]  ;;  %1491 = vmatpush.bf16.msra.mxu1 %v4358_v26  ;;  %1505 = vmatpush.bf16.msra.mxu2 %v4170_v27  ;;  %v4142_v35 = vor.u32 %v5080_v32, %v4141_v30  ;;  %v4143_v38 = vld [vmem:[%s6060_s2 + $0x138] sm:$0xf0]  ;;  %v5125_v39 = vld [vmem:[%s6060_s2 + $0x2a4] sm:$0xf] }
 0x113   : > { %v4334_v36 = vor.u32 %v5128_v34, %v4333_v33  ;;  %1519 = vmatpush.bf16.msra.mxu3 %v4362_v31  ;;  %v4146_v40 = vor.u32 %v5077_v37, %v4143_v38  ;;  %v4335_v41 = vld [vmem:[%s6060_s2 + $0x2b8] sm:$0xf0]  ;;  %v4117_v42 = vld [vmem:[%s6060_s2 + $0xf0] sm:$0xf]  ;;  %v5074_v43 = vld [vmem:[%s6060_s2 + $0x104] sm:$0xf0] }
 0x114   : > { %v4338_v44 = vor.u32 %v5125_v39, %v4335_v41  ;;  %v4309_v45 = vld [vmem:[%s6060_s2 + $0x270] sm:$0xf]  ;;  %v5122_v46 = vld [vmem:[%s6060_s2 + $0x284] sm:$0xf0]  ;;  %v5071_v47 = vld [vmem:[%s6060_s2 + $0xf4] sm:$0xf]  ;;  %v4118_v48 = vor.u32 %v5074_v43, %v4117_v42 }
 0x115   : > { %1478 = vmatpush.bf16.msra.mxu0 %v4142_v35  ;;  %v4119_v49 = vld [vmem:[%s6060_s2 + $0x108] sm:$0xf0]  ;;  %v5119_v50 = vld [vmem:[%s6060_s2 + $0x274] sm:$0xf]  ;;  %v4310_v52 = vor.u32 %v5122_v46, %v4309_v45  ;;  %v4093_v54 = vld [vmem:[%s6060_s2 + $0xc0] sm:$0xf] }
 0x116   : > { %v4311_v51 = vld [vmem:[%s6060_s2 + $0x288] sm:$0xf0]  ;;  %1492 = vmatpush.bf16.msra.mxu1 %v4334_v36  ;;  %1506 = vmatpush.bf16.msra.mxu2 %v4146_v40  ;;  %v4122_v53 = vor.u32 %v5071_v47, %v4119_v49  ;;  %v5068_v55 = vld [vmem:[%s6060_s2 + $0xd4] sm:$0xf0]  ;;  %v4285_v56 = vld [vmem:[%s6060_s2 + $0x240] sm:$0xf] }
 0x117   : > { %1520 = vmatpush.bf16.msra.mxu3 %v4338_v44  ;;  %v4314_v57 = vor.u32 %v5119_v50, %v4311_v51  ;;  %v5116_v58 = vld [vmem:[%s6060_s2 + $0x254] sm:$0xf0]  ;;  %v5065_v59 = vld [vmem:[%s6060_s2 + $0xc4] sm:$0xf]  ;;  %v4095_v60 = vld [vmem:[%s6060_s2 + $0xd8] sm:$0xf0]  ;;  %v4094_v63 = vor.u32 %v5068_v55, %v4093_v54 }
 0x118   : > { %v5113_v61 = vld [vmem:[%s6060_s2 + $0x244] sm:$0xf]  ;;  %v4287_v62 = vld [vmem:[%s6060_s2 + $0x258] sm:$0xf0]  ;;  %v4286_v0 = vor.u32 %v5116_v58, %v4285_v56  ;;  %v4098_v1 = vor.u32 %v5065_v59, %v4095_v60  ;;  %v4069_v2 = vld [vmem:[%s6060_s2 + $0x90] sm:$0xf] }
 0x119   : > { %1479 = vmatpush.bf16.msra.mxu0 %v4118_v48  ;;  %v5062_v3 = vld [vmem:[%s6060_s2 + $0xa4] sm:$0xf0]  ;;  %v4261_v4 = vld [vmem:[%s6060_s2 + $0x210] sm:$0xf]  ;;  %v4290_v5 = vor.u32 %v5113_v61, %v4287_v62  ;;  %v5059_v7 = vld [vmem:[%s6060_s2 + $0x94] sm:$0xf] }
 0x11a   : > { %1493 = vmatpush.bf16.msra.mxu1 %v4310_v52  ;;  %1507 = vmatpush.bf16.msra.mxu2 %v4122_v53  ;;  %v5110_v6 = vld [vmem:[%s6060_s2 + $0x224] sm:$0xf0]  ;;  %v4071_v8 = vld [vmem:[%s6060_s2 + $0xa8] sm:$0xf0]  ;;  %v5107_v9 = vld [vmem:[%s6060_s2 + $0x214] sm:$0xf]  ;;  %v4070_v11 = vor.u32 %v5062_v3, %v4069_v2 }
 0x11b   : > { %1521 = vmatpush.bf16.msra.mxu3 %v4314_v57  ;;  %v4263_v10 = vld [vmem:[%s6060_s2 + $0x228] sm:$0xf0]  ;;  %v4262_v12 = vor.u32 %v5110_v6, %v4261_v4  ;;  %v4074_v13 = vor.u32 %v5059_v7, %v4071_v8  ;;  %v4045_v14 = vld [vmem:[%s6060_s2 + $0x60] sm:$0xf]  ;;  %v5056_v15 = vld [vmem:[%s6060_s2 + $0x74] sm:$0xf0] }
 0x11c   : > { %v4237_v16 = vld [vmem:[%s6060_s2 + $0x1e0] sm:$0xf]  ;;  %v4266_v17 = vor.u32 %v5107_v9, %v4263_v10  ;;  %v5104_v18 = vld [vmem:[%s6060_s2 + $0x1f4] sm:$0xf0]  ;;  %v5053_v19 = vld [vmem:[%s6060_s2 + $0x64] sm:$0xf]  ;;  %v4046_v23 = vor.u32 %v5056_v15, %v4045_v14 }
 0x11d   : > { %1480 = vmatpush.bf16.msra.mxu0 %v4094_v63  ;;  %v4047_v20 = vld [vmem:[%s6060_s2 + $0x78] sm:$0xf0]  ;;  %v5101_v21 = vld [vmem:[%s6060_s2 + $0x1e4] sm:$0xf]  ;;  %v4238_v24 = vor.u32 %v5104_v18, %v4237_v16  ;;  %v4021_v26 = vld [vmem:[%s6060_s2 + $0x30] sm:$0xf] }
 0x11e   : > { %1494 = vmatpush.bf16.msra.mxu1 %v4286_v0  ;;  %1508 = vmatpush.bf16.msra.mxu2 %v4098_v1  ;;  %v4239_v22 = vld [vmem:[%s6060_s2 + $0x1f8] sm:$0xf0]  ;;  %v4050_v25 = vor.u32 %v5053_v19, %v4047_v20  ;;  %v5050_v27 = vld [vmem:[%s6060_s2 + $0x44] sm:$0xf0]  ;;  %v4213_v28 = vld [vmem:[%s6060_s2 + $0x1b0] sm:$0xf] }
 0x11f   : > { %1522 = vmatpush.bf16.msra.mxu3 %v4290_v5  ;;  %v4242_v29 = vor.u32 %v5101_v21, %v4239_v22  ;;  %v5098_v30 = vld [vmem:[%s6060_s2 + $0x1c4] sm:$0xf0]  ;;  %v5047_v31 = vld [vmem:[%s6060_s2 + $0x34] sm:$0xf]  ;;  %v4023_v32 = vld [vmem:[%s6060_s2 + $0x48] sm:$0xf0]  ;;  %v4022_v35 = vor.u32 %v5050_v27, %v4021_v26 }
 0x120   : > { %v5095_v33 = vld [vmem:[%s6060_s2 + $0x1b4] sm:$0xf]  ;;  %v4215_v34 = vld [vmem:[%s6060_s2 + $0x1c8] sm:$0xf0]  ;;  %v3997_v36 = vld [vmem:[%s6060_s2] sm:$0xf]  ;;  %v4214_v39 = vor.u32 %v5098_v30, %v4213_v28  ;;  %v4026_v40 = vor.u32 %v5047_v31, %v4023_v32 }
 0x121   : > { %1481 = vmatpush.bf16.msra.mxu0 %v4070_v11  ;;  %v5044_v37 = vld [vmem:[%s6060_s2 + $0x14] sm:$0xf0]  ;;  %v4189_v38 = vld [vmem:[%s6060_s2 + $0x180] sm:$0xf]  ;;  %v5041_v42 = vld [vmem:[%s6060_s2 + $0x4] sm:$0xf]  ;;  %v4218_v44 = vor.u32 %v5095_v33, %v4215_v34 }
 0x122   : > { %1495 = vmatpush.bf16.msra.mxu1 %v4262_v12  ;;  %1509 = vmatpush.bf16.msra.mxu2 %v4074_v13  ;;  %v5092_v41 = vld [vmem:[%s6060_s2 + $0x194] sm:$0xf0]  ;;  %v3999_v43 = vld [vmem:[%s6060_s2 + $0x18] sm:$0xf0]  ;;  %v5089_v45 = vld [vmem:[%s6060_s2 + $0x184] sm:$0xf]  ;;  %v3998_v51 = vor.u32 %v5044_v37, %v3997_v36 }
 0x123   : > { %1523 = vmatpush.bf16.msra.mxu3 %v4266_v17  ;;  %v4191_v46 = vld [vmem:[%s6060_s2 + $0x198] sm:$0xf0]  ;;  %v4173_v47 = vld [vmem:[%s6060_s2 + $0x158] sm:$0xf]  ;;  %v5087_v48 = vld [vmem:[%s6060_s2 + $0x16c] sm:$0xf0]  ;;  %v4190_v55 = vor.u32 %v5092_v41, %v4189_v38  ;;  %v4002_v56 = vor.u32 %v5041_v42, %v3999_v43 }
 0x124   : > { %v4365_v49 = vld [vmem:[%s6060_s2 + $0x2d8] sm:$0xf]  ;;  %v5135_v50 = vld [vmem:[%s6060_s2 + $0x2ec] sm:$0xf0]  ;;  %v5084_v52 = vld [vmem:[%s6060_s2 + $0x15c] sm:$0xf]  ;;  %v4194_v60 = vor.u32 %v5089_v45, %v4191_v46  ;;  %v4174_v61 = vor.u32 %v5087_v48, %v4173_v47 }
 0x125   : > { %1482 = vmatpush.bf16.msra.mxu0 %v4046_v23  ;;  %v4175_v53 = vld [vmem:[%s6060_s2 + $0x170] sm:$0xf0]  ;;  %v5132_v54 = vld [vmem:[%s6060_s2 + $0x2dc] sm:$0xf]  ;;  %v883_v59 = vld [vmem:[#allocation2 + $0x18] sm:$0xff]  ;;  %v4366_v0 = vor.u32 %v5135_v50, %v4365_v49  ;;  %vm1693_vm2 = vcmask 1043456  }
 0x126   : > { %1496 = vmatpush.bf16.msra.mxu1 %v4238_v24  ;;  %1510 = vmatpush.bf16.msra.mxu2 %v4050_v25  ;;  %v4367_v57 = vld [vmem:[%s6060_s2 + $0x2f0] sm:$0xf0]  ;;  %v881_v58 = vld [vmem:[#allocation2 + $0x10] sm:$0xff]  ;;  %v4149_v62 = vld [vmem:[%s6060_s2 + $0x128] sm:$0xf]  ;;  %v4178_v1 = vor.u32 %v5084_v52, %v4175_v53  ;;  %vm1664_vm3 = vcmask 64512  }
 0x127   : > { %1524 = vmatpush.bf16.msra.mxu3 %v4242_v29  ;;  %v5081_v63 = vld [vmem:[%s6060_s2 + $0x13c] sm:$0xf0]  ;;  %v4341_v2 = vld [vmem:[%s6060_s2 + $0x2a8] sm:$0xf]  ;;  %v882_v3 = vld [vmem:[#allocation2] sm:$0xff]  ;;  %v4370_v5 = vor.u32 %v5132_v54, %v4367_v57  ;;  %v6207_v9 = vpack.c.bf16 %v883_v59, %v881_v58 }
 0x128   : > { %v884_v4 = vld [vmem:[#allocation2 + $0x8] sm:$0xff]  ;;  %v5129_v6 = vld [vmem:[%s6060_s2 + $0x2bc] sm:$0xf0]  ;;  %v5078_v7 = vld [vmem:[%s6060_s2 + $0x12c] sm:$0xf]  ;;  %v4150_v13 = vor.u32 %v5081_v63, %v4149_v62 }
 0x129   : > { %1483 = vmatpush.bf16.msra.mxu0 %v4022_v35  ;;  %v4151_v8 = vld [vmem:[%s6060_s2 + $0x140] sm:$0xf0]  ;;  %v5126_v10 = vld [vmem:[%s6060_s2 + $0x2ac] sm:$0xf]  ;;  %v6211_v12 = vpack.c.bf16 %v884_v4, %v882_v3  ;;  %v4342_v14 = vor.u32 %v5129_v6, %v4341_v2  ;;  %v4125_v16 = vld [vmem:[%s6060_s2 + $0xf8] sm:$0xf] }
 0x12a   : > { %1497 = vmatpush.bf16.msra.mxu1 %v4214_v39  ;;  %1511 = vmatpush.bf16.msra.mxu2 %v4026_v40  ;;  %v4343_v11 = vld [vmem:[%s6060_s2 + $0x2c0] sm:$0xf0]  ;;  %v4154_v15 = vor.u32 %v5078_v7, %v4151_v8  ;;  %v5075_v17 = vld [vmem:[%s6060_s2 + $0x10c] sm:$0xf0]  ;;  %v4317_v18 = vld [vmem:[%s6060_s2 + $0x278] sm:$0xf] }
 0x12b   : > { %1525 = vmatpush.bf16.msra.mxu3 %v4218_v44  ;;  %v4346_v19 = vor.u32 %v5126_v10, %v4343_v11  ;;  %v5123_v20 = vld [vmem:[%s6060_s2 + $0x28c] sm:$0xf0]  ;;  %v5072_v21 = vld [vmem:[%s6060_s2 + $0xfc] sm:$0xf]  ;;  %v4127_v22 = vld [vmem:[%s6060_s2 + $0x110] sm:$0xf0]  ;;  %v4126_v25 = vor.u32 %v5075_v17, %v4125_v16 }
 0x12c   : > { %v5120_v23 = vld [vmem:[%s6060_s2 + $0x27c] sm:$0xf]  ;;  %v4319_v24 = vld [vmem:[%s6060_s2 + $0x290] sm:$0xf0]  ;;  %v4318_v26 = vor.u32 %v5123_v20, %v4317_v18  ;;  %v4130_v27 = vor.u32 %v5072_v21, %v4127_v22  ;;  %v4101_v28 = vld [vmem:[%s6060_s2 + $0xc8] sm:$0xf] }
 0x12d   : > { %1484 = vmatpush.bf16.msra.mxu0 %v3998_v51  ;;  %v5069_v29 = vld [vmem:[%s6060_s2 + $0xdc] sm:$0xf0]  ;;  %v4293_v30 = vld [vmem:[%s6060_s2 + $0x248] sm:$0xf]  ;;  %v4322_v31 = vor.u32 %v5120_v23, %v4319_v24  ;;  %v5066_v33 = vld [vmem:[%s6060_s2 + $0xcc] sm:$0xf] }
 0x12e   : > { %1498 = vmatpush.bf16.msra.mxu1 %v4190_v55  ;;  %1512 = vmatpush.bf16.msra.mxu2 %v4002_v56  ;;  %v5117_v32 = vld [vmem:[%s6060_s2 + $0x25c] sm:$0xf0]  ;;  %v4103_v34 = vld [vmem:[%s6060_s2 + $0xe0] sm:$0xf0]  ;;  %v5114_v35 = vld [vmem:[%s6060_s2 + $0x24c] sm:$0xf]  ;;  %v4102_v37 = vor.u32 %v5069_v29, %v4101_v28 }
 0x12f   : > { %1526 = vmatpush.bf16.msra.mxu3 %v4194_v60  ;;  %v4295_v36 = vld [vmem:[%s6060_s2 + $0x260] sm:$0xf0]  ;;  %v4294_v38 = vor.u32 %v5117_v32, %v4293_v30  ;;  %v4106_v39 = vor.u32 %v5066_v33, %v4103_v34  ;;  %v4077_v40 = vld [vmem:[%s6060_s2 + $0x98] sm:$0xf]  ;;  %v5063_v41 = vld [vmem:[%s6060_s2 + $0xac] sm:$0xf0] }
 0x130   : > { %1485 = vmatmul.bf16.vlgmr.msra.gmra.mxu0 %v6207_v9  ;;  %v4269_v42 = vld [vmem:[%s6060_s2 + $0x218] sm:$0xf]  ;;  %v4298_v43 = vor.u32 %v5114_v35, %v4295_v36  ;;  %v5111_v44 = vld [vmem:[%s6060_s2 + $0x22c] sm:$0xf0]  ;;  %v5060_v45 = vld [vmem:[%s6060_s2 + $0x9c] sm:$0xf]  ;;  %v4078_v49 = vor.u32 %v5063_v41, %v4077_v40 }
 0x131   : > { %1533 = vmatpush.bf16.msrb.mxu0 %v4174_v61  ;;  %1513 = vmatmul.bf16.vlgmr.msra.gmra.mxu2 %v6207_v9  ;;  %v4079_v46 = vld [vmem:[%s6060_s2 + $0xb0] sm:$0xf0]  ;;  %v5108_v47 = vld [vmem:[%s6060_s2 + $0x21c] sm:$0xf]  ;;  %v4270_v50 = vor.u32 %v5111_v44, %v4269_v42  ;;  %v4053_v52 = vld [vmem:[%s6060_s2 + $0x68] sm:$0xf] }
 0x132   : > { %1547 = vmatpush.bf16.msrb.mxu1 %v4366_v0  ;;  %1561 = vmatpush.bf16.msrb.mxu2 %v4178_v1  ;;  %v4271_v48 = vld [vmem:[%s6060_s2 + $0x230] sm:$0xf0]  ;;  %v4082_v51 = vor.u32 %v5060_v45, %v4079_v46  ;;  %v5057_v53 = vld [vmem:[%s6060_s2 + $0x7c] sm:$0xf0]  ;;  %v4245_v54 = vld [vmem:[%s6060_s2 + $0x1e8] sm:$0xf] }
 0x133   : > { %1575 = vmatpush.bf16.msrb.mxu3 %v4370_v5  ;;  %1499 = vmatmul.bf16.vlgmr.msra.gmra.mxu1 %v6211_v12  ;;  %v4274_v55 = vor.u32 %v5108_v47, %v4271_v48  ;;  %v5105_v56 = vld [vmem:[%s6060_s2 + $0x1fc] sm:$0xf0]  ;;  %v5054_v57 = vld [vmem:[%s6060_s2 + $0x6c] sm:$0xf]  ;;  %v4055_v58 = vld [vmem:[%s6060_s2 + $0x80] sm:$0xf0]  ;;  %v4054_v61 = vor.u32 %v5057_v53, %v4053_v52 }
 0x134   : > { %1527 = vmatmul.bf16.vlgmr.msra.gmra.mxu3 %v6211_v12  ;;  %v5102_v59 = vld [vmem:[%s6060_s2 + $0x1ec] sm:$0xf]  ;;  %v4247_v60 = vld [vmem:[%s6060_s2 + $0x200] sm:$0xf0]  ;;  %v4246_v62 = vor.u32 %v5105_v56, %v4245_v54  ;;  %v4058_v63 = vor.u32 %v5054_v57, %v4055_v58  ;;  %v4029_v0 = vld [vmem:[%s6060_s2 + $0x38] sm:$0xf] }
 0x135   : > { %1534 = vmatpush.bf16.msrb.mxu0 %v4150_v13  ;;  %v5051_v1 = vld [vmem:[%s6060_s2 + $0x4c] sm:$0xf0]  ;;  %v4221_v2 = vld [vmem:[%s6060_s2 + $0x1b8] sm:$0xf]  ;;  %v4250_v3 = vor.u32 %v5102_v59, %v4247_v60  ;;  %v5048_v5 = vld [vmem:[%s6060_s2 + $0x3c] sm:$0xf] }
 0x136   : > { %1548 = vmatpush.bf16.msrb.mxu1 %v4342_v14  ;;  %1562 = vmatpush.bf16.msrb.mxu2 %v4154_v15  ;;  %v5099_v4 = vld [vmem:[%s6060_s2 + $0x1cc] sm:$0xf0]  ;;  %v4031_v6 = vld [vmem:[%s6060_s2 + $0x50] sm:$0xf0]  ;;  %v5096_v7 = vld [vmem:[%s6060_s2 + $0x1bc] sm:$0xf]  ;;  %v4030_v10 = vor.u32 %v5051_v1, %v4029_v0 }
 0x137   : > { %1576 = vmatpush.bf16.msrb.mxu3 %v4346_v19  ;;  %v4223_v8 = vld [vmem:[%s6060_s2 + $0x1d0] sm:$0xf0]  ;;  %v4005_v11 = vld [vmem:[%s6060_s2 + $0x8] sm:$0xf]  ;;  %v4222_v13 = vor.u32 %v5099_v4, %v4221_v2  ;;  %v4034_v14 = vor.u32 %v5048_v5, %v4031_v6  ;;  %v5045_v15 = vld [vmem:[%s6060_s2 + $0x1c] sm:$0xf0] }
 0x138   : > { %v4197_v16 = vld [vmem:[%s6060_s2 + $0x188] sm:$0xf]  ;;  %v5093_v17 = vld [vmem:[%s6060_s2 + $0x19c] sm:$0xf0]  ;;  %v4226_v18 = vor.u32 %v5096_v7, %v4223_v8  ;;  %v5042_v19 = vld [vmem:[%s6060_s2 + $0xc] sm:$0xf] }
 0x139   : > { %1535 = vmatpush.bf16.msrb.mxu0 %v4126_v25  ;;  %v4007_v20 = vld [vmem:[%s6060_s2 + $0x20] sm:$0xf0]  ;;  %v5090_v21 = vld [vmem:[%s6060_s2 + $0x18c] sm:$0xf]  ;;  %v4181_v23 = vld [vmem:[%s6060_s2 + $0x160] sm:$0xf]  ;;  %v4006_v25 = vor.u32 %v5045_v15, %v4005_v11  ;;  %v4198_v28 = vor.u32 %v5093_v17, %v4197_v16 }
 0x13a   : > { %1549 = vmatpush.bf16.msrb.mxu1 %v4318_v26  ;;  %1563 = vmatpush.bf16.msrb.mxu2 %v4130_v27  ;;  %v4199_v22 = vld [vmem:[%s6060_s2 + $0x1a0] sm:$0xf0]  ;;  %v5088_v24 = vld [vmem:[%s6060_s2 + $0x174] sm:$0xf0]  ;;  %v4183_v27 = vld [vmem:[%s6060_s2 + $0x178] sm:$0xf0]  ;;  %v4010_v29 = vor.u32 %v5042_v19, %v4007_v20 }
 0x13b   : > { %1577 = vmatpush.bf16.msrb.mxu3 %v4322_v31  ;;  %v5085_v26 = vld [vmem:[%s6060_s2 + $0x164] sm:$0xf]  ;;  %v4202_v30 = vor.u32 %v5090_v21, %v4199_v22  ;;  %v4182_v31 = vor.u32 %v5088_v24, %v4181_v23  ;;  %v4157_v32 = vld [vmem:[%s6060_s2 + $0x130] sm:$0xf]  ;;  %v5082_v33 = vld [vmem:[%s6060_s2 + $0x144] sm:$0xf0] }
 0x13c   : > { %v4186_v34 = vor.u32 %v5085_v26, %v4183_v27  ;;  %v5133_v35 = vld [vmem:[%s6060_s2 + $0x2e4] sm:$0xf]  ;;  %v4375_v36 = vld [vmem:[%s6060_s2 + $0x2f8] sm:$0xf0]  ;;  %v4133_v41 = vld [vmem:[%s6060_s2 + $0x100] sm:$0xf] }
 0x13d   : > { %1536 = vmatpush.bf16.msrb.mxu0 %v4102_v37  ;;  %v5079_v37 = vld [vmem:[%s6060_s2 + $0x134] sm:$0xf]  ;;  %v4378_v40 = vor.u32 %v5133_v35, %v4375_v36  ;;  %v5076_v42 = vld [vmem:[%s6060_s2 + $0x114] sm:$0xf0]  ;;  %v4351_v46 = vld [vmem:[%s6060_s2 + $0x2c8] sm:$0xf0] }
 0x13e   : > { %1550 = vmatpush.bf16.msrb.mxu1 %v4294_v38  ;;  %1564 = vmatpush.bf16.msrb.mxu2 %v4106_v39  ;;  %v4159_v38 = vld [vmem:[%s6060_s2 + $0x148] sm:$0xf0]  ;;  %v4158_v39 = vor.u32 %v5082_v33, %v4157_v32  ;;  %v4134_v44 = vor.u32 %v5076_v42, %v4133_v41  ;;  %v5127_v45 = vld [vmem:[%s6060_s2 + $0x2b4] sm:$0xf]  ;;  %v5073_v48 = vld [vmem:[%s6060_s2 + $0x104] sm:$0xf] }
 0x13f   : > { %1578 = vmatpush.bf16.msrb.mxu3 %v4298_v43  ;;  %v4162_v43 = vor.u32 %v5079_v37, %v4159_v38  ;;  %v4354_v47 = vor.u32 %v5127_v45, %v4351_v46  ;;  %v5136_v52 = vld [vmem:[%s6060_s2 + $0x2f4] sm:$0xf0]  ;;  %v5121_v54 = vld [vmem:[%s6060_s2 + $0x284] sm:$0xf]  ;;  %v5067_v57 = vld [vmem:[%s6060_s2 + $0xd4] sm:$0xf] }
 0x140   : > { %v4111_v58 = vld [vmem:[%s6060_s2 + $0xe8] sm:$0xf0]  ;;  %v4349_v59 = vld [vmem:[%s6060_s2 + $0x2b0] sm:$0xf]  ;;  %v5061_v4 = vld [vmem:[%s6060_s2 + $0xa4] sm:$0xf] }
 0x141   : > { %1537 = vmatpush.bf16.msrb.mxu0 %v4078_v49  ;;  %v4135_v49 = vld [vmem:[%s6060_s2 + $0x118] sm:$0xf0]  ;;  %v4114_v60 = vor.u32 %v5067_v57, %v4111_v58  ;;  %v4303_v0 = vld [vmem:[%s6060_s2 + $0x268] sm:$0xf0]  ;;  %v4109_v2 = vld [vmem:[%s6060_s2 + $0xd0] sm:$0xf] }
 0x142   : > { %1551 = vmatpush.bf16.msrb.mxu1 %v4270_v50  ;;  %1565 = vmatpush.bf16.msrb.mxu2 %v4082_v51  ;;  %v4373_v50 = vld [vmem:[%s6060_s2 + $0x2e0] sm:$0xf]  ;;  %v4138_v51 = vor.u32 %v5073_v48, %v4135_v49  ;;  %v4087_v6 = vld [vmem:[%s6060_s2 + $0xb8] sm:$0xf0]  ;;  %v5124_v8 = vld [vmem:[%s6060_s2 + $0x294] sm:$0xf0] }
 0x143   : > { %1579 = vmatpush.bf16.msrb.mxu3 %v4274_v55  ;;  %v4374_v53 = vor.u32 %v5136_v52, %v4373_v50  ;;  %v4327_v55 = vld [vmem:[%s6060_s2 + $0x298] sm:$0xf0]  ;;  %v4325_v7 = vld [vmem:[%s6060_s2 + $0x280] sm:$0xf]  ;;  %v5064_v11 = vld [vmem:[%s6060_s2 + $0xb4] sm:$0xf0] }
 0x144   : > { %v4330_v56 = vor.u32 %v5121_v54, %v4327_v55  ;;  %v5109_v15 = vld [vmem:[%s6060_s2 + $0x224] sm:$0xf]  ;;  %v4279_v17 = vld [vmem:[%s6060_s2 + $0x238] sm:$0xf0]  ;;  %v5055_v19 = vld [vmem:[%s6060_s2 + $0x74] sm:$0xf] }
 0x145   : > { %1538 = vmatpush.bf16.msrb.mxu0 %v4054_v61  ;;  %v5130_v61 = vld [vmem:[%s6060_s2 + $0x2c4] sm:$0xf0]  ;;  %v4063_v20 = vld [vmem:[%s6060_s2 + $0x88] sm:$0xf0]  ;;  %v4301_v21 = vld [vmem:[%s6060_s2 + $0x250] sm:$0xf] }
 0x146   : > { %1552 = vmatpush.bf16.msrb.mxu1 %v4246_v62  ;;  %1566 = vmatpush.bf16.msrb.mxu2 %v4058_v63  ;;  %v4350_v62 = vor.u32 %v5130_v61, %v4349_v59  ;;  %v5115_v63 = vld [vmem:[%s6060_s2 + $0x254] sm:$0xf]  ;;  %v4066_v22 = vor.u32 %v5055_v19, %v4063_v20  ;;  %v5118_v23 = vld [vmem:[%s6060_s2 + $0x264] sm:$0xf0]  ;;  %v4255_v26 = vld [vmem:[%s6060_s2 + $0x208] sm:$0xf0] }
 0x147   : > { %1580 = vmatpush.bf16.msrb.mxu3 %v4250_v3  ;;  %v4306_v1 = vor.u32 %v5115_v63, %v4303_v0  ;;  %v5070_v3 = vld [vmem:[%s6060_s2 + $0xe4] sm:$0xf0]  ;;  %v4302_v24 = vor.u32 %v5118_v23, %v4301_v21  ;;  %v4039_v32 = vld [vmem:[%s6060_s2 + $0x58] sm:$0xf0]  ;;  %v4277_v33 = vld [vmem:[%s6060_s2 + $0x220] sm:$0xf] }
 0x148   : > { %v4110_v5 = vor.u32 %v5070_v3, %v4109_v2  ;;  %v4037_v35 = vld [vmem:[%s6060_s2 + $0x40] sm:$0xf]  ;;  %v5052_v36 = vld [vmem:[%s6060_s2 + $0x54] sm:$0xf0]  ;;  %v4231_v41 = vld [vmem:[%s6060_s2 + $0x1d8] sm:$0xf0] }
 0x149   : > { %1539 = vmatpush.bf16.msrb.mxu0 %v4030_v10  ;;  %v4085_v10 = vld [vmem:[%s6060_s2 + $0xa0] sm:$0xf]  ;;  %v4253_v45 = vld [vmem:[%s6060_s2 + $0x1f0] sm:$0xf]  ;;  %v5091_v49 = vld [vmem:[%s6060_s2 + $0x194] sm:$0xf] }
 0x14a   : > { %1553 = vmatpush.bf16.msrb.mxu1 %v4222_v13  ;;  %1567 = vmatpush.bf16.msrb.mxu2 %v4034_v14  ;;  %v4090_v13 = vor.u32 %v5061_v4, %v4087_v6  ;;  %v4326_v14 = vor.u32 %v5124_v8, %v4325_v7  ;;  %v4086_v16 = vor.u32 %v5064_v11, %v4085_v10  ;;  %v4207_v50 = vld [vmem:[%s6060_s2 + $0x1a8] sm:$0xf0]  ;;  %v4013_v52 = vld [vmem:[%s6060_s2 + $0x10] sm:$0xf]  ;;  %v4229_v54 = vld [vmem:[%s6060_s2 + $0x1c0] sm:$0xf] }
 0x14b   : > { %1581 = vmatpush.bf16.msrb.mxu3 %v4226_v18  ;;  %v4282_v18 = vor.u32 %v5109_v15, %v4279_v17  ;;  %v4205_v58 = vld [vmem:[%s6060_s2 + $0x190] sm:$0xf]  ;;  %v5094_v59 = vld [vmem:[%s6060_s2 + $0x1a4] sm:$0xf0] }
 0x14c   : > { %v6338_v3 = vld [vmem:[%s6090_s4] sm:$0x3f] }
 0x14d   : > { %1540 = vmatpush.bf16.msrb.mxu0 %v4006_v25  ;;  %v5103_v25 = vld [vmem:[%s6060_s2 + $0x1f4] sm:$0xf]  ;;  %v987_v6 = vperm.slane %v6338_v3, 2  ;;  %v985_v8 = vperm.slane %v6338_v3, 0 }
 0x14e   : > { %1554 = vmatpush.bf16.msrb.mxu1 %v4198_v28  ;;  %1568 = vmatpush.bf16.msrb.mxu2 %v4010_v29  ;;  %v4258_v27 = vor.u32 %v5103_v25, %v4255_v26  ;;  %v4061_v28 = vld [vmem:[%s6060_s2 + $0x70] sm:$0xf]  ;;  %v5058_v29 = vld [vmem:[%s6060_s2 + $0x84] sm:$0xf0] }
 0x14f   : > { %1582 = vmatpush.bf16.msrb.mxu3 %v4202_v30  ;;  %v5049_v30 = vld [vmem:[%s6060_s2 + $0x44] sm:$0xf] }
 0x150   : > { %1541 = vmatmul.bf16.vlgmr.msrb.gmra.mxu0 %v6207_v9  ;;  %v4042_v37 = vor.u32 %v5049_v30, %v4039_v32 }
 0x151   : > { %1589 = vmatpush.bf16.msra.mxu0 %v4182_v31  ;;  %1555 = vmatmul.bf16.vlgmr.msrb.gmra.mxu1 %v6211_v12  ;;  %v4062_v31 = vor.u32 %v5058_v29, %v4061_v28 }
 0x152   : > { %1617 = vmatpush.bf16.msra.mxu2 %v4186_v34  ;;  %1583 = vmatmul.bf16.vlgmr.msrb.gmra.mxu3 %v6211_v12  ;;  %v5112_v34 = vld [vmem:[%s6060_s2 + $0x234] sm:$0xf0] }
 0x153   : > { %1569 = vmatmul.bf16.vlgmr.msrb.gmra.mxu2 %v6207_v9  ;;  %1631 = vmatpush.bf16.msra.mxu3 %v4378_v40  ;;  %v4278_v38 = vor.u32 %v5112_v34, %v4277_v33  ;;  %v5097_v40 = vld [vmem:[%s6060_s2 + $0x1c4] sm:$0xf] }
 0x154   : > { %1603 = vmatpush.bf16.msra.mxu1 %v4374_v53  ;;  %v4234_v42 = vor.u32 %v5097_v40, %v4231_v41  ;;  %v5046_v53 = vld [vmem:[%s6060_s2 + $0x24] sm:$0xf0] }
 0x155   : > { %1590 = vmatpush.bf16.msra.mxu0 %v4158_v39  ;;  %v4038_v39 = vor.u32 %v5052_v36, %v4037_v35  ;;  %v4014_v55 = vor.u32 %v5046_v53, %v4013_v52 }
 0x156   : > { %1618 = vmatpush.bf16.msra.mxu2 %v4162_v43  ;;  %v5043_v43 = vld [vmem:[%s6060_s2 + $0x14] sm:$0xf] }
 0x157   : > { %1632 = vmatpush.bf16.msra.mxu3 %v4354_v47  ;;  %v5106_v47 = vld [vmem:[%s6060_s2 + $0x204] sm:$0xf0] }
 0x158   : > { %1604 = vmatpush.bf16.msra.mxu1 %v4350_v62  ;;  %v4254_v48 = vor.u32 %v5106_v47, %v4253_v45 }
 0x159   : > { %1591 = vmatpush.bf16.msra.mxu0 %v4134_v44  ;;  %v4015_v44 = vld [vmem:[%s6060_s2 + $0x28] sm:$0xf0] }
 0x15a   : > { %1619 = vmatpush.bf16.msra.mxu2 %v4138_v51  ;;  %v4018_v46 = vor.u32 %v5043_v43, %v4015_v44  ;;  %v4210_v51 = vor.u32 %v5091_v49, %v4207_v50 }
 0x15b   : > { %1633 = vmatpush.bf16.msra.mxu3 %v4330_v56  ;;  %v5100_v56 = vld [vmem:[%s6060_s2 + $0x1d4] sm:$0xf0]  ;;  %s7262_s2 = sld [smem:[#allocation40_spill]] }
 0x15c   : > { %1605 = vmatpush.bf16.msra.mxu1 %v4326_v14  ;;  %v4230_v57 = vor.u32 %v5100_v56, %v4229_v54 }
 0x15d   : > { %1592 = vmatpush.bf16.msra.mxu0 %v4110_v5 }
 0x15e   : > { %1620 = vmatpush.bf16.msra.mxu2 %v4114_v60  ;;  %v4206_v60 = vor.u32 %v5094_v59, %v4205_v58 }
 0x15f   : > { %1634 = vmatpush.bf16.msra.mxu3 %v4306_v1 }
 0x160   : > { %1606 = vmatpush.bf16.msra.mxu1 %v4302_v24 }
 0x161   : > { %1593 = vmatpush.bf16.msra.mxu0 %v4086_v16  ;;  %s7263_s20 = scalar_lea.vmem %s7262_s2, %s6085_s30  ;;  %s7271_s30 = sld [smem:[#allocation23_spill]] }
 0x162   : > { %1621 = vmatpush.bf16.msra.mxu2 %v4090_v13 }
 0x163   : > { %1635 = vmatpush.bf16.msra.mxu3 %v4282_v18 }
 0x164   : > { %1607 = vmatpush.bf16.msra.mxu1 %v4278_v38 }
 0x165   : > { %1594 = vmatpush.bf16.msra.mxu0 %v4062_v31 }
 0x166   : > { %1622 = vmatpush.bf16.msra.mxu2 %v4066_v22 }
 0x167   : > { %1636 = vmatpush.bf16.msra.mxu3 %v4258_v27  ;;  %p5031_p12 = scmp.ne.s32.totalorder %s7271_s30, 1 }
 0x168   : > { %1608 = vmatpush.bf16.msra.mxu1 %v4254_v48  ;;  %v990_v48 = vperm.slane %v6338_v3, 5 }
 0x169   : > { %1595 = vmatpush.bf16.msra.mxu0 %v4038_v39 }
 0x16a   : > { %1623 = vmatpush.bf16.msra.mxu2 %v4042_v37 }
 0x16b   : > { %1637 = vmatpush.bf16.msra.mxu3 %v4234_v42 }
 0x16c   : > { %1609 = vmatpush.bf16.msra.mxu1 %v4230_v57 }
 0x16d   : > { %1596 = vmatpush.bf16.msra.mxu0 %v4014_v55 }
 0x16e   : > { %1624 = vmatpush.bf16.msra.mxu2 %v4018_v46  ;;  %v989_v46 = vperm.slane %v6338_v3, 4 }
 0x16f   : > { %1638 = vmatpush.bf16.msra.mxu3 %v4210_v51 }
 0x170   : > { %1597 = vmatmul.bf16.vlgmr.msra.gmra.mxu0 %v6207_v9  ;;  %1610 = vmatpush.bf16.msra.mxu1 %v4206_v60 }
 0x171   : > { %1625 = vmatmul.bf16.vlgmr.msra.gmra.mxu2 %v6207_v9  ;;  %v986_v9 = vperm.slane %v6338_v3, 1 }
 0x172   : > { %1639 = vmatmul.bf16.vlgmr.msra.gmra.mxu3 %v6211_v12 }
 0x173   : > { %1611 = vmatmul.bf16.vlgmr.msra.gmra.mxu1 %v6211_v12  ;;  %v988_v12 = vperm.slane %v6338_v3, 3 }
 0x1ad   : > { %v1486_v61 = vpop.f32.mrf.mxu0 }
 0x1ae   : > { %v1487_v11 = vadd.f32 %v1486_v61, %v985_v8 }
 0x1b0   : > { %v1500_v62 = vpop.f32.mrf.mxu1 }
 0x1b1   : > { %v1501_v20 = vadd.f32 %v1500_v62, %v1487_v11 }
 0x1b4   : > { %v1514_v63 = vpop.f32.mrf.mxu2 }
 0x1b5   : > { %v1488_v1 = vpop.f32.mrf.mxu0  ;;  %v1515_v13 = vadd.f32 %v1514_v63, %v986_v9 }
 0x1b6   : > { %v1489_v38 = vadd.f32 %v1488_v1, %v985_v8 }
 0x1b7   : > { %v1528_v0 = vpop.f32.mrf.mxu3 }
 0x1b8   : > { %v1502_v2 = vpop.f32.mrf.mxu1  ;;  %v1529_v21 = vadd.f32 %v1528_v0, %v1515_v13 }
 0x1b9   : > { %v1503_v41 = vadd.f32 %v1502_v2, %v1489_v38 }
 0x1ba   : > { %v1645_v26 = vpack.c.bf16 %v1529_v21, %v1501_v20 }
 0x1bc   : > { %v1516_v4 = vpop.f32.mrf.mxu2  ;;  %v1713_v34 = vunpack.c.h.b16 %v1645_v26 }
 0x1bd   : > { %v1517_v39 = vadd.f32 %v1516_v4, %v986_v9 }
 0x1be   : > { %v1714_v37 = vpack.c.b16 %v1713_v34, %v1713_v34 }
 0x1bf   : > { %v1530_v5 = vpop.f32.mrf.mxu3 }
 0x1c0   : > { %v1531_v42 = vadd.f32 %v1530_v5, %v1517_v39 }
 0x1c2   : > { %v1646_v43 = vpack.c.bf16 %v1531_v42, %v1503_v41 }
 0x1c4   : > { %v1842_v44 = vunpack.c.h.b16 %v1646_v43 }
 0x1c6   : > { %v1843_v45 = vpack.c.b16 %v1842_v44, %v1842_v44 }
 0x1cd   : > { %v1542_v7 = vpop.f32.mrf.mxu0 }
 0x1ce   : > { %v1543_v10 = vadd.f32 %v1542_v7, %v987_v6  ;;  %v1556_v14 = vpop.f32.mrf.mxu1 }
 0x1d0   : > { %v1557_v16 = vadd.f32 %v1556_v14, %v1543_v10 }
 0x1d5   : > { %v1584_v18 = vpop.f32.mrf.mxu3  ;;  %v1544_v22 = vpop.f32.mrf.mxu0 }
 0x1d6   : > { %v1570_v15 = vpop.f32.mrf.mxu2  ;;  %v1545_v25 = vadd.f32 %v1544_v22, %v987_v6  ;;  %v1558_v30 = vpop.f32.mrf.mxu1 }
 0x1d7   : > { %v1571_v17 = vadd.f32 %v1570_v15, %v988_v12 }
 0x1d8   : > { %v1559_v32 = vadd.f32 %v1558_v30, %v1545_v25 }
 0x1d9   : > { %v1585_v19 = vadd.f32 %v1584_v18, %v1571_v17 }
 0x1db   : > { %v1647_v23 = vpack.c.bf16 %v1585_v19, %v1557_v16 }
 0x1dd   : > { %v1717_v24 = vunpack.c.h.b16 %v1647_v23  ;;  %1658 = vmatpush.bf16.xpose.msrb.mxu0 %v1647_v23  ;;  %v1586_v31 = vpop.f32.mrf.mxu3 }
 0x1de   : > { %v1572_v27 = vpop.f32.mrf.mxu2 }
 0x1df   : > { %v1718_v28 = vpack.c.b16 %v1717_v24, %v1717_v24  ;;  %v1573_v29 = vadd.f32 %v1572_v27, %v988_v12 }
 0x1e1   : > { %v1587_v33 = vadd.f32 %v1586_v31, %v1573_v29  ;;  %1727 = vmatpush.bf16.xpose.msrb.mxu2 %v1718_v28 }
 0x1e3   : > { %v1648_v35 = vpack.c.bf16 %v1587_v33, %v1559_v32 }
 0x1e4   : > { %1659 = vmatmul.bf16.vlgmr.msrb.gmra.mxu0 %v1645_v26 }
 0x1e5   : > { %v1846_v36 = vunpack.c.h.b16 %v1648_v35  ;;  %1789 = vmatpush.bf16.xpose.msra.mxu0 %v1648_v35 }
 0x1e7   : > { %v1847_v40 = vpack.c.b16 %v1846_v36, %v1846_v36 }
 0x1e8   : > { %1728 = vmatmul.bf16.vlgmr.msrb.gmra.mxu2 %v1714_v37 }
 0x1e9   : > { %1856 = vmatpush.bf16.xpose.msra.mxu2 %v1847_v40 }
 0x1ed   : > { %v1598_v47 = vpop.f32.mrf.mxu0 }
 0x1ee   : > { %v1599_v49 = vadd.f32 %v1598_v47, %v989_v46 }
 0x1f0   : > { %v1612_v52 = vpop.f32.mrf.mxu1 }
 0x1f1   : > { %v1613_v54 = vadd.f32 %v1612_v52, %v1599_v49 }
 0x1f4   : > { %1790 = vmatmul.bf16.vlgmr.msra.gmra.mxu0 %v1646_v43  ;;  %v1626_v50 = vpop.f32.mrf.mxu2 }
 0x1f5   : > { %v1627_v51 = vadd.f32 %v1626_v50, %v990_v48  ;;  %v1640_v53 = vpop.f32.mrf.mxu3  ;;  %v1600_v57 = vpop.f32.mrf.mxu0 }
 0x1f6   : > { %v1601_v58 = vadd.f32 %v1600_v57, %v989_v46  ;;  %v4515_v57 = vld [vmem:[%s6068_s24 + $0xf8] sm:$0xf0] }
 0x1f7   : > { %v1641_v55 = vadd.f32 %v1640_v53, %v1627_v51 }
 0x1f8   : > { %1857 = vmatmul.bf16.vlgmr.msra.gmra.mxu2 %v1843_v45  ;;  %v1614_v62 = vpop.f32.mrf.mxu1 }
 0x1f9   : > { %v1649_v56 = vpack.c.bf16 %v1641_v55, %v1613_v54  ;;  %v1615_v0 = vadd.f32 %v1614_v62, %v1601_v58 }
 0x1fb   : > { %v1759_v60 = vunpack.c.h.b16 %v1649_v56  ;;  %v1695_v4 = vsel %vm1693_vm2, %v1649_v56, 0  ;;  %v5169_v56 = vld [vmem:[%s6068_s24 + $0xf4] sm:$0xf] }
 0x1fc   : > { %v1628_v59 = vpop.f32.mrf.mxu2  ;;  %1704 = vmatpush.bf16.msrb.mxu1 %v1695_v4  ;;  %v4518_v62 = vor.u32 %v5169_v56, %v4515_v57  ;;  %v5165_v56 = vld [vmem:[%s6068_s24 + $0xd4] sm:$0xf] }
 0x1fd   : > { %v1629_v61 = vadd.f32 %v1628_v59, %v990_v48  ;;  %v1642_v63 = vpop.f32.mrf.mxu3  ;;  %v1760_v2 = vpack.c.b16 %v1759_v60, %v1759_v60 }
 0x1ff   : > { %v1643_v1 = vadd.f32 %v1642_v63, %v1629_v61  ;;  %v1765_v8 = vsel %vm1693_vm2, %v1760_v2, 0 }
 0x200   : > { %1774 = vmatpush.bf16.msrb.mxu3 %v1765_v8  ;;  %v4513_v8 = vld [vmem:[%s6068_s24 + $0xf0] sm:$0xf] }
 0x201   : > { %v1650_v3 = vpack.c.bf16 %v1643_v1, %v1615_v0 }
 0x203   : > { %v1888_v5 = vunpack.c.h.b16 %v1650_v3  ;;  %v1824_v6 = vsel %vm1693_vm2, %v1650_v3, 0 }
 0x204   : > { %1833 = vmatpush.bf16.msra.mxu1 %v1824_v6 }
 0x205   : > { %v1889_v7 = vpack.c.b16 %v1888_v5, %v1888_v5 }
 0x207   : > { %v1894_v9 = vsel %vm1693_vm2, %v1889_v7, 0 }
 0x208   : > { %1903 = vmatpush.bf16.msra.mxu3 %v1894_v9  ;;  %v5170_v9 = vld [vmem:[%s6068_s24 + $0xf4] sm:$0xf0] }
 0x261   : > { %v1660_v10 = vpop.f32.mrf.mxu0 }
 0x262   : > { %v1665_v16 = vsel %vm1664_vm3, %v1660_v10, -inf }
 0x269   : > { %v1662_v12 = vpop.f32.mrf.mxu0 }
 0x26b   : > { %v1729_v11 = vpop.f32.mrf.mxu2 }
 0x26c   : > { %v1733_v13 = vsel %vm1664_vm3, %v1729_v11, -inf }
 0x26d   : > { %1734 = vmax.xlane.f32.xlu0 %v1733_v13 }
 0x271   : > { %v1791_v14 = vpop.f32.mrf.mxu0 }
 0x272   : > { %v1795_v21 = vsel %vm1664_vm3, %v1791_v14, -inf }
 0x273   : > { %v1731_v15 = vpop.f32.mrf.mxu2 }
 0x275   : > { %1666 = vmax.xlane.f32.xlu0 %v1665_v16 }
 0x279   : > { %v1793_v17 = vpop.f32.mrf.mxu0 }
 0x27b   : > { %v1858_v18 = vpop.f32.mrf.mxu2 }
 0x27c   : > { %v1862_v19 = vsel %vm1664_vm3, %v1858_v18, -inf }
 0x27d   : > { %1863 = vmax.xlane.f32.xlu1 %v1862_v19 }
 0x283   : > { %v1860_v20 = vpop.f32.mrf.mxu2 }
 0x285   : > { %1796 = vmax.xlane.f32.xlu1 %v1795_v21 }
 0x2e0   : > { %v1735_v22 = vpop.xlane.xlu0 %1734 }
 0x2e1   : > { %v1736_v23 = vsub.f32 %v1729_v11, %v1735_v22 }
 0x2e3   : > { %v1737_v24 = vmul.f32 1.442695, %v1736_v23 }
 0x2e5   : > { %5442 = vpow2.f32 %v1737_v24 }
 0x2e8   : > { %v1667_v25 = vpop.xlane.xlu0 %1666 }
 0x2e9   : > { %v1668_v26 = vsub.f32 %v1660_v10, %v1667_v25 }
 0x2eb   : > { %v5443_v27 = vpop.eup %5442  ;;  %v1669_v28 = vmul.f32 1.442695, %v1668_v26 }
 0x2ec   : > { %v1739_v29 = vsel %vm1664_vm3, %v5443_v27, 0.0 }
 0x2ed   : > { %5444 = vpow2.f32 %v1669_v28  ;;  %1740 = vadd.xlane.f32.xlu2 %v1739_v29 }
 0x2f0   : > { %v1864_v30 = vpop.xlane.xlu1 %1863 }
 0x2f1   : > { %v1865_v31 = vsub.f32 %v1858_v18, %v1864_v30 }
 0x2f3   : > { %v5445_v32 = vpop.eup %5444  ;;  %v1866_v33 = vmul.f32 1.442695, %v1865_v31 }
 0x2f4   : > { %v1671_v34 = vsel %vm1664_vm3, %v5445_v32, 0.0 }
 0x2f5   : > { %5446 = vpow2.f32 %v1866_v33  ;;  %1672 = vadd.xlane.f32.xlu2 %v1671_v34 }
 0x2f8   : > { %v1797_v35 = vpop.xlane.xlu1 %1796 }
 0x2f9   : > { %v1798_v36 = vsub.f32 %v1791_v14, %v1797_v35  ;;  %v4514_v14 = vor.u32 %v5170_v9, %v4513_v8  ;;  %v4425_v8 = vld [vmem:[%s6068_s24 + $0x40] sm:$0xf]  ;;  %v5148_v9 = vld [vmem:[%s6068_s24 + $0x44] sm:$0xf0] }
 0x2fb   : > { %v6352_v37 = vpop.eup %5446  ;;  %v1799_v38 = vmul.f32 1.442695, %v1798_v36  ;;  %v4449_v36 = vld [vmem:[%s6068_s24 + $0x70] sm:$0xf] }
 0x2fc   : > { %v1868_v39 = vsel %vm1664_vm3, %v6352_v37, 0.0 }
 0x2fd   : > { %5448 = vpow2.f32 %v1799_v38  ;;  %1869 = vadd.xlane.f32.xlu0 %v1868_v39  ;;  %v5153_v38 = vld [vmem:[%s6068_s24 + $0x74] sm:$0xf] }
 0x303   : > { %v6356_v40 = vpop.eup %5448 }
 0x304   : > { %v1801_v41 = vsel %vm1664_vm3, %v6356_v40, 0.0 }
 0x305   : > { %1802 = vadd.xlane.f32.xlu1 %v1801_v41  ;;  %v4451_v41 = vld [vmem:[%s6068_s24 + $0x78] sm:$0xf0] }
 0x360   : > { %v1741_v42 = vpop.xlane.xlu2 %1740 }
 0x361   : > { %5450 = vrcp.f32 %v1741_v42  ;;  %v1753_v47 = vand.u32 2147483648, %v1741_v42  ;;  %v1751_v49 = vand.u32 2147483647, %v1741_v42  ;;  %vm1747_vm5 = vweird.f32 %v1741_v42 }
 0x363   : > { %v1754_v52 = vor.u32 1.1754944e-38, %v1753_v47  ;;  %vm1752_vm7 = vcmp.eq.f32.partialorder %v1751_v49, 8.507059e+37  ;;  %v5152_v49 = vld [vmem:[%s6068_s24 + $0x64] sm:$0xf0] }
 0x367   : > { %v5451_v43 = vpop.eup %5450 }
 0x368   : > { %v1743_v44 = vmul.f32 %v5451_v43, %v1741_v42  ;;  %v1673_v45 = vpop.xlane.xlu2 %1672  ;;  %vm1748_vm4 = vweird.f32 %v5451_v43  ;;  %v4454_v42 = vor.u32 %v5153_v38, %v4451_v41  ;;  %v4465_v38 = vld [vmem:[%s6068_s24 + $0x90] sm:$0xf]  ;;  %v5157_v41 = vld [vmem:[%s6068_s24 + $0x94] sm:$0xf] }
 0x369   : > { %5452 = vrcp.f32 %v1673_v45  ;;  %vm1749_vm6 = vmor %vm1747_vm5, %vm1748_vm4  ;;  %v1685_v61 = vand.u32 2147483648, %v1673_v45  ;;  %v1683_v0 = vand.u32 2147483647, %v1673_v45  ;;  %vm1679_vm9 = vweird.f32 %v1673_v45 }
 0x36a   : > { %v1744_v46 = vsub.f32 1.0, %v1743_v44  ;;  %v5168_v44 = vld [vmem:[%s6068_s24 + $0xe4] sm:$0xf0]  ;;  %2149 = vmatpush.bf16.msrb.mxu2 %v4454_v42 }
 0x36b   : > { %v1686_v4 = vor.u32 1.1754944e-38, %v1685_v61  ;;  %vm1684_vm11 = vcmp.eq.f32.partialorder %v1683_v0, 8.507059e+37  ;;  %v5150_v61 = vld [vmem:[%s6068_s24 + $0x54] sm:$0xf0]  ;;  %v4435_v0 = vld [vmem:[%s6068_s24 + $0x58] sm:$0xf0] }
 0x36c   : > { %v1745_v48 = vmul.f32 %v5451_v43, %v1744_v46  ;;  %v4507_v46 = vld [vmem:[%s6068_s24 + $0xe8] sm:$0xf0] }
 0x36e   : > { %v1746_v50 = vadd.f32 %v5451_v43, %v1745_v48  ;;  %v4441_v48 = vld [vmem:[%s6068_s24 + $0x60] sm:$0xf] }
 0x36f   : > { %v5453_v51 = vpop.eup %5452 }
 0x370   : > { %v1750_v53 = vsel %vm1749_vm6, %v5451_v43, %v1746_v50  ;;  %v1675_v54 = vmul.f32 %v5453_v51, %v1673_v45  ;;  %v1870_v55 = vpop.xlane.xlu0 %1869  ;;  %vm1680_vm8 = vweird.f32 %v5453_v51  ;;  %v4505_v43 = vld [vmem:[%s6068_s24 + $0xe0] sm:$0xf]  ;;  %v5167_v45 = vld [vmem:[%s6068_s24 + $0xe4] sm:$0xf] }
 0x371   : > { %v1755_v58 = vsel %vm1752_vm7, %v1754_v52, %v1750_v53  ;;  %5454 = vrcp.f32 %v1870_v55  ;;  %vm1681_vm10 = vmor %vm1679_vm9, %vm1680_vm8  ;;  %v1882_v13 = vand.u32 2147483648, %v1870_v55  ;;  %v1880_v16 = vand.u32 2147483647, %v1870_v55  ;;  %v5151_v50 = vld [vmem:[%s6068_s24 + $0x64] sm:$0xf] }
 0x372   : > { %v1756_v59 = vmul.f32 %v5443_v27, %v1755_v58  ;;  %v1676_v60 = vsub.f32 1.0, %v1675_v54  ;;  %vm1876_vm13 = vweird.f32 %v1870_v55  ;;  %v4510_v47 = vor.u32 %v5167_v45, %v4507_v46  ;;  %v4443_v52 = vld [vmem:[%s6068_s24 + $0x68] sm:$0xf0]  ;;  %v4497_v54 = vld [vmem:[%s6068_s24 + $0xd0] sm:$0xf] }
 0x373   : > { %v1883_v20 = vor.u32 1.1754944e-38, %v1882_v13  ;;  %vm1881_vm15 = vcmp.eq.f32.partialorder %v1880_v16, 8.507059e+37  ;;  %v4446_v53 = vor.u32 %v5151_v50, %v4443_v52  ;;  %v4499_v58 = vld [vmem:[%s6068_s24 + $0xd8] sm:$0xf0]  ;;  %v4481_v13 = vld [vmem:[%s6068_s24 + $0xb0] sm:$0xf] }
 0x374   : > { %v1677_v63 = vmul.f32 %v5453_v51, %v1676_v60  ;;  %v1757_v1 = vpack.c.bf16 %v1756_v59, %v1756_v59  ;;  %v4502_v59 = vor.u32 %v5165_v56, %v4499_v58  ;;  %v4433_v60 = vld [vmem:[%s6068_s24 + $0x50] sm:$0xf]  ;;  %v5141_v46 = vld [vmem:[%s6068_s24 + $0x14] sm:$0xf]  ;;  %v4457_v50 = vld [vmem:[%s6068_s24 + $0x80] sm:$0xf] }
 0x375   : > { %2150 = vmatpush.bf16.msrb.mxu2 %v4446_v53  ;;  %v4401_v45 = vld [vmem:[%s6068_s24 + $0x10] sm:$0xf]  ;;  %v5155_v52 = vld [vmem:[%s6068_s24 + $0x84] sm:$0xf]  ;;  %v4393_v56 = vld [vmem:[%s6068_s24] sm:$0xf] }
 0x376   : > { %v1678_v2 = vadd.f32 %v5453_v51, %v1677_v63  ;;  %4380 = vmatmul.msk.bf16.vlgmr.msrb.gmra.mxu3 %vm1664_vm3, %v1757_v1  ;;  %v4434_v63 = vor.u32 %v5150_v61, %v4433_v60  ;;  %v5139_v58 = vld [vmem:[%s6068_s24 + $0x4] sm:$0xf]  ;;  %v4395_v60 = vld [vmem:[%s6068_s24 + $0x8] sm:$0xf0] }
 0x377   : > { %v5455_v3 = vpop.eup %5454  ;;  %2163 = vmatpush.bf16.msrb.mxu3 %v4518_v62  ;;  %v5149_v62 = vld [vmem:[%s6068_s24 + $0x54] sm:$0xf]  ;;  %v4398_v61 = vor.u32 %v5139_v58, %v4395_v60  ;;  %v5231_v58 = vld [vmem:[%s6070_s8 + $0x1e4] sm:$0xf]  ;;  %v4617_v60 = vld [vmem:[%s6070_s8 + $0xc0] sm:$0xf] }
 0x378   : > { %v1682_v5 = vsel %vm1681_vm10, %v5453_v51, %v1678_v2  ;;  %v1872_v6 = vmul.f32 %v5455_v3, %v1870_v55  ;;  %v1803_v7 = vpop.xlane.xlu1 %1802  ;;  %vm1877_vm12 = vweird.f32 %v5455_v3  ;;  %v4442_v51 = vor.u32 %v5152_v49, %v4441_v48  ;;  %v5166_v55 = vld [vmem:[%s6068_s24 + $0xd4] sm:$0xf0]  ;;  %v4489_v2 = vld [vmem:[%s6068_s24 + $0xc0] sm:$0xf]  ;;  %v4403_v48 = vld [vmem:[%s6068_s24 + $0x18] sm:$0xf0] }
 0x379   : > { %v1687_v10 = vsel %vm1684_vm11, %v1686_v4, %v1682_v5  ;;  %5456 = vrcp.f32 %v1803_v7  ;;  %vm1878_vm14 = vmor %vm1876_vm13, %vm1877_vm12  ;;  %v1815_v26 = vand.u32 2147483648, %v1803_v7  ;;  %v1813_v28 = vand.u32 2147483647, %v1803_v7  ;;  %v5163_v4 = vld [vmem:[%s6068_s24 + $0xc4] sm:$0xf] }
 0x37a   : > { %v1688_v12 = vmul.f32 %v5445_v32, %v1687_v10  ;;  %v1873_v11 = vsub.f32 1.0, %v1872_v6  ;;  %vm1809_vm1 = vweird.f32 %v1803_v7  ;;  %v4498_v57 = vor.u32 %v5166_v55, %v4497_v54  ;;  %v4491_v6 = vld [vmem:[%s6068_s24 + $0xc8] sm:$0xf0]  ;;  %v5147_v10 = vld [vmem:[%s6068_s24 + $0x44] sm:$0xf] }
 0x37b   : > { %v1816_v31 = vor.u32 1.1754944e-38, %v1815_v26  ;;  %vm1814_vm4 = vcmp.eq.f32.partialorder %v1813_v28, 8.507059e+37  ;;  %2164 = vmatpush.bf16.msrb.mxu3 %v4510_v47  ;;  %v4438_v1 = vor.u32 %v5149_v62, %v4435_v0  ;;  %v4473_v26 = vld [vmem:[%s6068_s24 + $0xa0] sm:$0xf]  ;;  %v5159_v28 = vld [vmem:[%s6068_s24 + $0xa4] sm:$0xf]  ;;  %v4406_v49 = vor.u32 %v5141_v46, %v4403_v48 }
 0x37c   : > { %v1874_v15 = vmul.f32 %v5455_v3, %v1873_v11  ;;  %v1689_v17 = vpack.c.bf16 %v1688_v12, %v1688_v12  ;;  %v4426_v12 = vor.u32 %v5148_v9, %v4425_v8  ;;  %v4427_v11 = vld [vmem:[%s6068_s24 + $0x48] sm:$0xf0] }
 0x37d   : > { %2151 = vmatpush.bf16.msrb.mxu2 %v4438_v1  ;;  %v4459_v54 = vld [vmem:[%s6068_s24 + $0x88] sm:$0xf0] }
 0x37e   : > { %v1875_v18 = vadd.f32 %v5455_v3, %v1874_v15  ;;  %4379 = vmatmul.msk.bf16.vlgmr.msrb.gmra.mxu1 %vm1664_vm3, %v1689_v17  ;;  %v4430_v15 = vor.u32 %v5147_v10, %v4427_v11  ;;  %v5161_v17 = vld [vmem:[%s6068_s24 + $0xb4] sm:$0xf]  ;;  %v4462_v55 = vor.u32 %v5155_v52, %v4459_v54  ;;  %v5199_v54 = vld [vmem:[%s6070_s8 + $0xe4] sm:$0xf] }
 0x37f   : > { %v5457_v19 = vpop.eup %5456  ;;  %2135 = vmatpush.bf16.msrb.mxu1 %v4514_v14  ;;  %2165 = vmatpush.bf16.msrb.mxu3 %v4502_v59  ;;  %v5162_v14 = vld [vmem:[%s6068_s24 + $0xb4] sm:$0xf0] }
 0x380   : > { %v1879_v21 = vsel %vm1878_vm14, %v5455_v3, %v1875_v18  ;;  %v1805_v22 = vmul.f32 %v5457_v19, %v1803_v7  ;;  %vm1810_vm0 = vweird.f32 %v5457_v19  ;;  %v5164_v3 = vld [vmem:[%s6068_s24 + $0xc4] sm:$0xf0]  ;;  %v4494_v7 = vor.u32 %v5163_v4, %v4491_v6  ;;  %v4483_v18 = vld [vmem:[%s6068_s24 + $0xb8] sm:$0xf0] }
 0x381   : > { %v1884_v23 = vsel %vm1881_vm15, %v1883_v20, %v1879_v21  ;;  %vm1811_vm2 = vmor %vm1809_vm1, %vm1810_vm0  ;;  %v4490_v5 = vor.u32 %v5164_v3, %v4489_v2  ;;  %v4482_v16 = vor.u32 %v5162_v14, %v4481_v13  ;;  %2152 = vmatpush.bf16.msrb.mxu2 %v4430_v15  ;;  %v4417_v20 = vld [vmem:[%s6068_s24 + $0x30] sm:$0xf]  ;;  %v5146_v21 = vld [vmem:[%s6068_s24 + $0x34] sm:$0xf0] }
 0x382   : > { %v1885_v24 = vmul.f32 %v6352_v37, %v1884_v23  ;;  %v1806_v25 = vsub.f32 1.0, %v1805_v22  ;;  %v5154_v37 = vld [vmem:[%s6068_s24 + $0x74] sm:$0xf0]  ;;  %v5145_v22 = vld [vmem:[%s6068_s24 + $0x34] sm:$0xf]  ;;  %v4418_v23 = vor.u32 %v5146_v21, %v4417_v20 }
 0x383   : > { %v4450_v39 = vor.u32 %v5154_v37, %v4449_v36  ;;  %2166 = vmatpush.bf16.msrb.mxu3 %v4494_v7  ;;  %v4411_v36 = vld [vmem:[%s6068_s24 + $0x28] sm:$0xf0] }
 0x384   : > { %v1807_v27 = vmul.f32 %v5457_v19, %v1806_v25  ;;  %v1886_v29 = vpack.c.bf16 %v1885_v24, %v1885_v24  ;;  %v4419_v24 = vld [vmem:[%s6068_s24 + $0x38] sm:$0xf0] }
 0x385   : > { %2121 = vmatpush.bf16.msrb.mxu0 %v4450_v39  ;;  %v4422_v25 = vor.u32 %v5145_v22, %v4419_v24  ;;  %v5158_v39 = vld [vmem:[%s6068_s24 + $0x94] sm:$0xf0] }
 0x386   : > { %v1808_v30 = vadd.f32 %v5457_v19, %v1807_v27  ;;  %4382 = vmatmul.msk.bf16.vlgmr.msra.gmra.mxu3 %vm1664_vm3, %v1886_v29  ;;  %v5160_v27 = vld [vmem:[%s6068_s24 + $0xa4] sm:$0xf0]  ;;  %v4466_v42 = vor.u32 %v5158_v39, %v4465_v38 }
 0x387   : > { %v4474_v29 = vor.u32 %v5160_v27, %v4473_v26  ;;  %2153 = vmatpush.bf16.msrb.mxu2 %v4422_v25 }
 0x388   : > { %v1812_v32 = vsel %vm1811_vm2, %v5457_v19, %v1808_v30  ;;  %v4486_v19 = vor.u32 %v5161_v17, %v4483_v18  ;;  %v4475_v30 = vld [vmem:[%s6068_s24 + $0xa8] sm:$0xf0] }
 0x389   : > { %v1817_v33 = vsel %vm1814_vm4, %v1816_v31, %v1812_v32  ;;  %2122 = vmatpush.bf16.msrb.mxu0 %v4442_v51  ;;  %v4478_v31 = vor.u32 %v5159_v28, %v4475_v30  ;;  %v4409_v32 = vld [vmem:[%s6068_s24 + $0x20] sm:$0xf]  ;;  %v5156_v51 = vld [vmem:[%s6068_s24 + $0x84] sm:$0xf0] }
 0x38a   : > { %v1818_v34 = vmul.f32 %v6356_v40, %v1817_v33  ;;  %v4506_v40 = vor.u32 %v5168_v44, %v4505_v43  ;;  %2167 = vmatpush.bf16.msrb.mxu3 %v4486_v19  ;;  %v5144_v33 = vld [vmem:[%s6068_s24 + $0x24] sm:$0xf0]  ;;  %v4467_v43 = vld [vmem:[%s6068_s24 + $0x98] sm:$0xf0]  ;;  %v4458_v53 = vor.u32 %v5156_v51, %v4457_v50  ;;  %v5201_v50 = vld [vmem:[%s6070_s8 + $0xec] sm:$0xf0] }
 0x38b   : > { %v4470_v44 = vor.u32 %v5157_v41, %v4467_v43  ;;  %v5502_v41 = vld [vmem:[#allocation2 + $0x18] sm:$0xff]  ;;  %v5503_v43 = vld [vmem:[#allocation2 + $0x8] sm:$0xff]  ;;  %v4761_v51 = vld [vmem:[%s6070_s8 + $0x1e0] sm:$0xf] }
 0x38c   : > { %v1819_v35 = vpack.c.bf16 %v1818_v34, %v1818_v34  ;;  %2136 = vmatpush.bf16.msrb.mxu1 %v4506_v40  ;;  %v5143_v34 = vld [vmem:[%s6068_s24 + $0x24] sm:$0xf]  ;;  %v5142_v40 = vld [vmem:[%s6068_s24 + $0x14] sm:$0xf0] }
 0x38d   : > { %2123 = vmatpush.bf16.msrb.mxu0 %v4434_v63  ;;  %v4414_v37 = vor.u32 %v5143_v34, %v4411_v36  ;;  %v4402_v47 = vor.u32 %v5142_v40, %v4401_v45  ;;  %v5793_v40 = vmov 256.0  }
 0x38e   : > { %4381 = vmatmul.msk.bf16.vlgmr.msra.gmra.mxu1 %vm1664_vm3, %v1819_v35  ;;  %v4410_v35 = vor.u32 %v5144_v33, %v4409_v32  ;;  %2168 = vmatpush.bf16.msrb.mxu3 %v4478_v31  ;;  %v5501_v31 = vld [vmem:[#allocation2] sm:$0xff]  ;;  %5458 = vrcp.f32 %v5793_v40 }
 0x38f   : > { %2154 = vmatpush.bf16.msrb.mxu2 %v4414_v37 }
 0x390   : > { %2137 = vmatpush.bf16.msrb.mxu1 %v4498_v57  ;;  %v5140_v57 = vld [vmem:[%s6068_s24 + $0x4] sm:$0xf0] }
 0x391   : > { %2124 = vmatpush.bf16.msrb.mxu0 %v4426_v12  ;;  %v4394_v59 = vor.u32 %v5140_v57, %v4393_v56 }
 0x392   : > { %2169 = vmatpush.bf16.msrb.mxu3 %v4470_v44 }
 0x393   : > { %2155 = vmatpush.bf16.msrb.mxu2 %v4406_v49  ;;  %v4633_v49 = vld [vmem:[%s6070_s8 + $0xe0] sm:$0xf] }
 0x394   : > { %2138 = vmatpush.bf16.msrb.mxu1 %v4490_v5  ;;  %v5459_v46 = vpop.eup %5458  ;;  %v4634_v52 = vor.u32 %v5201_v50, %v4633_v49  ;;  %v4569_v50 = vld [vmem:[%s6070_s8 + $0x60] sm:$0xf] }
 0x395   : > { %2125 = vmatpush.bf16.msrb.mxu0 %v4418_v23  ;;  %vm2194_vm3 = vweird.f32 %v5459_v46 }
 0x396   : > { %2170 = vmatpush.bf16.msrb.mxu3 %v4462_v55  ;;  %v4635_v55 = vld [vmem:[%s6070_s8 + $0xf0] sm:$0xf0] }
 0x397   : > { %2156 = vmatpush.bf16.msrb.mxu2 %v4398_v61  ;;  %v4638_v57 = vor.u32 %v5199_v54, %v4635_v55  ;;  %v5217_v54 = vld [vmem:[%s6070_s8 + $0x16c] sm:$0xf0]  ;;  %v5183_v55 = vld [vmem:[%s6070_s8 + $0x64] sm:$0xf] }
 0x398   : > { %2139 = vmatpush.bf16.msrb.mxu1 %v4482_v16  ;;  %v1945_v16 = vld [vmem:[%s7263_s20] sm:$0x3] }
 0x399   : > { %2126 = vmatpush.bf16.msrb.mxu0 %v4410_v35  ;;  %v1947_v17 = vperm.slane %v1945_v16, 0  ;;  %v1948_v20 = vperm.slane %v1945_v16, 1 }
 0x39b   : > { %2682 = vmatpush.bf16.msra.mxu2 %v4638_v57 }
 0x39c   : > { %2140 = vmatpush.bf16.msrb.mxu1 %v4474_v29  ;;  %v5500_v29 = vld [vmem:[#allocation2 + $0x10] sm:$0xff] }
 0x39d   : > { %2127 = vmatpush.bf16.msrb.mxu0 %v4402_v47  ;;  %v2190_v47 = vmul.f32 256.0, %v5459_v46 }
 0x39f   : > { %v2191_v48 = vsub.f32 1.0, %v2190_v47  ;;  %v5219_v47 = vld [vmem:[%s6070_s8 + $0x184] sm:$0xf] }
 0x3a0   : > { %2141 = vmatpush.bf16.msrb.mxu1 %v4466_v42 }
 0x3a1   : > { %2128 = vmatpush.bf16.msrb.mxu0 %v4394_v59  ;;  %v4763_v59 = vld [vmem:[%s6070_s8 + $0x1f0] sm:$0xf0] }
 0x3a2   : > { %v4766_v61 = vor.u32 %v5231_v58, %v4763_v59  ;;  %v5215_v59 = vld [vmem:[%s6070_s8 + $0x164] sm:$0xf] }
 0x3a4   : > { %2142 = vmatpush.bf16.msrb.mxu1 %v4458_v53  ;;  %v5233_v53 = vld [vmem:[%s6070_s8 + $0x1ec] sm:$0xf0]  ;;  %2696 = vmatpush.bf16.msra.mxu3 %v4766_v61 }
 0x3a5   : > { %v4762_v56 = vor.u32 %v5233_v53, %v4761_v51  ;;  %2654 = vmatpush.bf16.msra.mxu0 %v4634_v52  ;;  %v5185_v51 = vld [vmem:[%s6070_s8 + $0x6c] sm:$0xf0]  ;;  %v4697_v52 = vld [vmem:[%s6070_s8 + $0x160] sm:$0xf] }
 0x3a6   : > { %v4570_v53 = vor.u32 %v5185_v51, %v4569_v50  ;;  %v4698_v57 = vor.u32 %v5217_v54, %v4697_v52  ;;  %v4625_v50 = vld [vmem:[%s6070_s8 + $0xc8] sm:$0xf]  ;;  %v5198_v51 = vld [vmem:[%s6070_s8 + $0xd4] sm:$0xf0] }
 0x3a7   : > { %v4753_v54 = vld [vmem:[%s6070_s8 + $0x1c8] sm:$0xf] }
 0x3a8   : > { %2668 = vmatpush.bf16.msra.mxu1 %v4762_v56  ;;  %v4571_v56 = vld [vmem:[%s6070_s8 + $0x70] sm:$0xf0] }
 0x3a9   : > { %v4574_v58 = vor.u32 %v5183_v55, %v4571_v56  ;;  %v5230_v55 = vld [vmem:[%s6070_s8 + $0x1d4] sm:$0xf0]  ;;  %v5196_v56 = vld [vmem:[%s6070_s8 + $0xcc] sm:$0xf] }
 0x3f9   : > { %v1776_v62 = vpop.f32.mrf.mxu3 }
 0x3fa   : > { %v1780_v63 = vpack.c.bf16 %v1776_v62, %v1776_v62  ;;  %v5197_v62 = vld [vmem:[%s6070_s8 + $0xcc] sm:$0xf0] }
 0x3fb   : > { %v1706_v0 = vpop.f32.mrf.mxu1 }
 0x3fc   : > { %1781 = vst [vmem:[#allocation3 + $0x4] sm:$0xf] %v1780_v63  ;;  %v1710_v1 = vpack.c.bf16 %v1706_v0, %v1706_v0  ;;  %v4745_v63 = vld [vmem:[%s6070_s8 + $0x1c0] sm:$0xf]  ;;  %v5229_v0 = vld [vmem:[%s6070_s8 + $0x1cc] sm:$0xf0] }
 0x3fe   : > { %1711 = vst [vmem:[#allocation3] sm:$0xf] %v1710_v1  ;;  %v4618_v1 = vor.u32 %v5197_v62, %v4617_v60  ;;  %v4699_v60 = vld [vmem:[%s6070_s8 + $0x170] sm:$0xf0]  ;;  %v4553_v62 = vld [vmem:[%s6070_s8 + $0x40] sm:$0xf] }
 0x3ff   : > { %v4702_v61 = vor.u32 %v5215_v59, %v4699_v60  ;;  %v5228_v59 = vld [vmem:[%s6070_s8 + $0x1cc] sm:$0xf]  ;;  %v4755_v60 = vld [vmem:[%s6070_s8 + $0x1d8] sm:$0xf0] }
 0x400   : > { %2655 = vmatpush.bf16.msra.mxu0 %v4618_v1 }
 0x401   : > { %v1778_v2 = vpop.f32.mrf.mxu3 }
 0x402   : > { %v4746_v2 = vor.u32 %v5229_v0, %v4745_v63  ;;  %v5181_v63 = vld [vmem:[%s6070_s8 + $0x4c] sm:$0xf0]  ;;  %v4681_v0 = vld [vmem:[%s6070_s8 + $0x140] sm:$0xf] }
 0x403   : > { %v1708_v3 = vpop.f32.mrf.mxu1  ;;  %v5137_v10 = vld [vmem:[#allocation3 + $0x4] sm:$0xf]  ;;  %v4554_v1 = vor.u32 %v5181_v63, %v4553_v62  ;;  %v4758_v62 = vor.u32 %v5228_v59, %v4755_v60  ;;  %v4609_v63 = vld [vmem:[%s6070_s8 + $0xa8] sm:$0xf]  ;;  %v5178_v60 = vld [vmem:[%s6070_s8 + $0x34] sm:$0xf0] }
 0x404   : > { %v5195_v3 = vld [vmem:[%s6070_s8 + $0xc4] sm:$0xf]  ;;  %2669 = vmatpush.bf16.msra.mxu1 %v4746_v2  ;;  %v5213_v2 = vld [vmem:[%s6070_s8 + $0x14c] sm:$0xf0] }
 0x405   : > { %v4385_v13 = vld [vmem:[#allocation3] sm:$0xf] }
 0x409   : > { %v1905_v4 = vpop.f32.mrf.mxu3 }
 0x40a   : > { %v1909_v5 = vpack.c.bf16 %v1905_v4, %v1905_v4  ;;  %v4619_v4 = vld [vmem:[%s6070_s8 + $0xd0] sm:$0xf0] }
 0x40b   : > { %v1835_v6 = vpop.f32.mrf.mxu1 }
 0x40c   : > { %1910 = vst [vmem:[#allocation3 + $0xc] sm:$0xf] %v1909_v5  ;;  %v1839_v7 = vpack.c.bf16 %v1835_v6, %v1835_v6  ;;  %v5227_v5 = vld [vmem:[%s6070_s8 + $0x1c4] sm:$0xf]  ;;  %v2192_v6 = vmul.f32 %v5459_v46, %v2191_v48  ;;  %v4715_v48 = vld [vmem:[%s6070_s8 + $0x190] sm:$0xf0] }
 0x40d   : > { %v4718_v49 = vor.u32 %v5219_v47, %v4715_v48  ;;  %v5232_v47 = vld [vmem:[%s6070_s8 + $0x1ec] sm:$0xf] }
 0x40e   : > { %1840 = vst [vmem:[#allocation3 + $0x8] sm:$0xf] %v1839_v7  ;;  %v4622_v7 = vor.u32 %v5195_v3, %v4619_v4  ;;  %v5179_v3 = vld [vmem:[%s6070_s8 + $0x44] sm:$0xf]  ;;  %v4555_v4 = vld [vmem:[%s6070_s8 + $0x50] sm:$0xf0] }
 0x410   : > { %2683 = vmatpush.bf16.msra.mxu2 %v4622_v7  ;;  %v5211_v7 = vld [vmem:[%s6070_s8 + $0x144] sm:$0xf] }
 0x411   : > { %v1907_v8 = vpop.f32.mrf.mxu3 }
 0x412   : > { %v4747_v8 = vld [vmem:[%s6070_s8 + $0x1d0] sm:$0xf0] }
 0x413   : > { %v1837_v9 = vpop.f32.mrf.mxu1  ;;  %v4387_v12 = vld [vmem:[#allocation3 + $0x8] sm:$0xf0] }
 0x414   : > { %v4390_v11 = vor.u32 %v5137_v10, %v4387_v12  ;;  %v4750_v9 = vor.u32 %v5227_v5, %v4747_v8  ;;  %v2193_v10 = vadd.f32 %v5459_v46, %v2192_v6  ;;  %v4682_v5 = vor.u32 %v5213_v2, %v4681_v0  ;;  %v4683_v8 = vld [vmem:[%s6070_s8 + $0x150] sm:$0xf0]  ;;  %v5194_v0 = vld [vmem:[%s6070_s8 + $0xb4] sm:$0xf0] }
 0x415   : > { %v5138_v14 = vld [vmem:[#allocation3 + $0x4] sm:$0xf0]  ;;  %v4558_v6 = vor.u32 %v5179_v3, %v4555_v4  ;;  %v4610_v2 = vor.u32 %v5194_v0, %v4609_v63  ;;  %v5192_v4 = vld [vmem:[%s6070_s8 + $0xac] sm:$0xf] }
 0x416   : > { %2143 = vmatmul.bf16.vlgmr.msrb.gmra.mxu1 %v4390_v11  ;;  %2171 = vmatmul.bf16.vlgmr.msrb.gmra.mxu3 %v4390_v11  ;;  %v4386_v15 = vor.u32 %v5138_v14, %v4385_v13  ;;  %v6451_v12 = vsel %vm2194_vm3, %v5459_v46, %v2193_v10  ;;  %v4537_v10 = vld [vmem:[%s6070_s8 + $0x20] sm:$0xf]  ;;  %v5226_v3 = vld [vmem:[%s6070_s8 + $0x1b4] sm:$0xf0]  ;;  %v5176_v0 = vld [vmem:[%s6070_s8 + $0x2c] sm:$0xf] }
 0x417   : > { %2697 = vmatpush.bf16.msra.mxu3 %v4750_v9  ;;  %v4686_v9 = vor.u32 %v5211_v7, %v4683_v8 }
 0x418   : > { %2129 = vmatmul.bf16.vlgmr.msrb.gmra.mxu0 %v4386_v15  ;;  %2157 = vmatmul.bf16.vlgmr.msrb.gmra.mxu2 %v4386_v15 }
 0x493   : > { %v2144_v21 = vpop.f32.mrf.mxu1 }
 0x495   : > { %v2130_v18 = vpop.f32.mrf.mxu0 }
 0x496   : > { %v2131_v19 = vadd.f32 %v2130_v18, %v1947_v17 }
 0x498   : > { %v2145_v24 = vadd.f32 %v2144_v21, %v2131_v19 }
 0x499   : > { %v2172_v22 = vpop.f32.mrf.mxu3 }
 0x49a   : > { %v2177_v30 = vadd.f32 %v5500_v29, %v2145_v24 }
 0x49b   : > { %v2158_v23 = vpop.f32.mrf.mxu2  ;;  %v2146_v34 = vpop.f32.mrf.mxu1 }
 0x49c   : > { %v2159_v25 = vadd.f32 %v2158_v23, %v1948_v20 }
 0x49d   : > { %v2132_v26 = vpop.f32.mrf.mxu0 }
 0x49e   : > { %v2173_v27 = vadd.f32 %v2172_v22, %v2159_v25  ;;  %v2133_v28 = vadd.f32 %v2132_v26, %v1947_v17  ;;  %v4601_v26 = vld [vmem:[%s6070_s8 + $0xa0] sm:$0xf] }
 0x4a0   : > { %v2178_v32 = vadd.f32 %v5501_v31, %v2173_v27  ;;  %v2147_v36 = vadd.f32 %v2146_v34, %v2133_v28  ;;  %v5193_v27 = vld [vmem:[%s6070_s8 + $0xac] sm:$0xf0]  ;;  %v4729_v28 = vld [vmem:[%s6070_s8 + $0x1a0] sm:$0xf]  ;;  %v5191_v31 = vld [vmem:[%s6070_s8 + $0xa4] sm:$0xf] }
 0x4a1   : > { %v2174_v38 = vpop.f32.mrf.mxu3  ;;  %v4602_v29 = vor.u32 %v5193_v27, %v4601_v26  ;;  %v4521_v27 = vld [vmem:[%s6070_s8] sm:$0xf] }
 0x4a2   : > { %v2183_v33 = vadd.f32 %v2178_v32, %v2177_v30  ;;  %v2179_v42 = vadd.f32 %v5502_v41, %v2147_v36  ;;  %v4731_v36 = vld [vmem:[%s6070_s8 + $0x1b0] sm:$0xf0]  ;;  %v4713_v41 = vld [vmem:[%s6070_s8 + $0x180] sm:$0xf] }
 0x4a3   : > { %v2160_v35 = vpop.f32.mrf.mxu2  ;;  %2656 = vmatpush.bf16.msra.mxu0 %v4602_v29  ;;  %v4649_v29 = vld [vmem:[%s6070_s8 + $0x100] sm:$0xf] }
 0x4a4   : > { %v2161_v37 = vadd.f32 %v2160_v35, %v1948_v20  ;;  %2184 = vadd.xlane.f32.xlu2 %v2183_v33  ;;  %v5223_v35 = vld [vmem:[%s6070_s8 + $0x1a4] sm:$0xf] }
 0x4a6   : > { %v2175_v39 = vadd.f32 %v2174_v38, %v2161_v37  ;;  %v4734_v37 = vor.u32 %v5223_v35, %v4731_v36  ;;  %v4585_v38 = vld [vmem:[%s6070_s8 + $0x80] sm:$0xf]  ;;  %v5203_v36 = vld [vmem:[%s6070_s8 + $0x104] sm:$0xf] }
 0x4a8   : > { %v2180_v44 = vadd.f32 %v5503_v43, %v2175_v39  ;;  %v5189_v39 = vld [vmem:[%s6070_s8 + $0x8c] sm:$0xf0]  ;;  %2698 = vmatpush.bf16.msra.mxu3 %v4734_v37  ;;  %v4651_v37 = vld [vmem:[%s6070_s8 + $0x110] sm:$0xf0] }
 0x4a9   : > { %v5221_v43 = vld [vmem:[%s6070_s8 + $0x18c] sm:$0xf0] }
 0x4aa   : > { %v2186_v45 = vadd.f32 %v2180_v44, %v2179_v42  ;;  %v4714_v40 = vor.u32 %v5221_v43, %v4713_v41  ;;  %v5202_v41 = vld [vmem:[%s6070_s8 + $0xf4] sm:$0xf0] }
 0x4ab   : > { %v5234_v43 = vld [vmem:[%s6070_s8 + $0x1f4] sm:$0xf0] }
 0x4ac   : > { %2187 = vadd.xlane.f32.xlu0 %v2186_v45  ;;  %v4587_v45 = vld [vmem:[%s6070_s8 + $0x90] sm:$0xf0]  ;;  %2699 = vmatpush.bf16.msra.mxu3 %v4718_v49  ;;  %v4771_v49 = vld [vmem:[%s6070_s8 + $0x1f8] sm:$0xf0] }
 0x4ad   : > { %v4774_v52 = vor.u32 %v5232_v47, %v4771_v49  ;;  %v4689_v47 = vld [vmem:[%s6070_s8 + $0x148] sm:$0xf]  ;;  %v5180_v49 = vld [vmem:[%s6070_s8 + $0x4c] sm:$0xf] }
 0x4b0   : > { %2700 = vmatpush.bf16.msra.mxu3 %v4702_v61 }
 0x4b4   : > { %2701 = vmatpush.bf16.msra.mxu3 %v4686_v9  ;;  %v5224_v9 = vld [vmem:[%s6070_s8 + $0x1ac] sm:$0xf] }
 0x517   : > { %v2185_v11 = vpop.xlane.xlu2 %2184 }
 0x518   : > { %v2196_v13 = vmul.f32 %v6451_v12, %v2185_v11  ;;  %v5177_v11 = vld [vmem:[%s6070_s8 + $0x2c] sm:$0xf0] }
 0x51a   : > { %v6454_v14 = vsub.f32 %v2177_v30, %v2196_v13  ;;  %v6456_v15 = vsub.f32 %v2178_v32, %v2196_v13  ;;  %v5225_v30 = vld [vmem:[%s6070_s8 + $0x1ac] sm:$0xf0]  ;;  %v4603_v32 = vld [vmem:[%s6070_s8 + $0xb0] sm:$0xf0]  ;;  %v4665_v13 = vld [vmem:[%s6070_s8 + $0x120] sm:$0xf] }
 0x51b   : > { %v4730_v33 = vor.u32 %v5225_v30, %v4729_v28  ;;  %v4606_v34 = vor.u32 %v5191_v31, %v4603_v32  ;;  %v5173_v28 = vld [vmem:[%s6070_s8 + $0xc] sm:$0xf0]  ;;  %v5171_v32 = vld [vmem:[%s6070_s8 + $0x4] sm:$0xf] }
 0x51c   : > { %v2202_v16 = vmul.f32 %v6454_v14, %v6454_v14  ;;  %v2203_v17 = vmul.f32 %v6456_v15, %v6456_v15  ;;  %v4522_v30 = vor.u32 %v5173_v28, %v4521_v27  ;;  %v5205_v31 = vld [vmem:[%s6070_s8 + $0x10c] sm:$0xf0]  ;;  %v4723_v28 = vld [vmem:[%s6070_s8 + $0x198] sm:$0xf0] }
 0x51d   : > { %2670 = vmatpush.bf16.msra.mxu1 %v4730_v33  ;;  %2684 = vmatpush.bf16.msra.mxu2 %v4606_v34  ;;  %v4523_v33 = vld [vmem:[%s6070_s8 + $0x10] sm:$0xf0]  ;;  %v4650_v34 = vor.u32 %v5205_v31, %v4649_v29  ;;  %v4577_v31 = vld [vmem:[%s6070_s8 + $0x68] sm:$0xf] }
 0x51e   : > { %v2206_v18 = vadd.f32 %v2203_v17, %v2202_v16  ;;  %v4538_v16 = vor.u32 %v5177_v11, %v4537_v10  ;;  %v5209_v17 = vld [vmem:[%s6070_s8 + $0x12c] sm:$0xf0]  ;;  %v4526_v35 = vor.u32 %v5171_v32, %v4523_v33  ;;  %v4739_v10 = vld [vmem:[%s6070_s8 + $0x1b8] sm:$0xf0]  ;;  %v4593_v11 = vld [vmem:[%s6070_s8 + $0x88] sm:$0xf] }
 0x51f   : > { %v2188_v19 = vpop.xlane.xlu0 %2187  ;;  %v5186_v32 = vld [vmem:[%s6070_s8 + $0x74] sm:$0xf0]  ;;  %v4705_v33 = vld [vmem:[%s6070_s8 + $0x168] sm:$0xf] }
 0x520   : > { %v2197_v20 = vmul.f32 %v6451_v12, %v2188_v19  ;;  %2207 = vadd.xlane.f32.xlu1 %v2206_v18  ;;  %v5175_v18 = vld [vmem:[%s6070_s8 + $0x24] sm:$0xf]  ;;  %v4539_v19 = vld [vmem:[%s6070_s8 + $0x30] sm:$0xf0] }
 0x521   : > { %2671 = vmatpush.bf16.msra.mxu1 %v4714_v40  ;;  %v5200_v40 = vld [vmem:[%s6070_s8 + $0xec] sm:$0xf] }
 0x522   : > { %v6463_v21 = vsub.f32 %v2179_v42, %v2197_v20  ;;  %v6465_v22 = vsub.f32 %v2180_v44, %v2197_v20  ;;  %v4586_v42 = vor.u32 %v5189_v39, %v4585_v38  ;;  %v5187_v44 = vld [vmem:[%s6070_s8 + $0x84] sm:$0xf]  ;;  %v4666_v20 = vor.u32 %v5209_v17, %v4665_v13  ;;  %v4641_v38 = vld [vmem:[%s6070_s8 + $0xe8] sm:$0xf]  ;;  %v5190_v17 = vld [vmem:[%s6070_s8 + $0x94] sm:$0xf0] }
 0x523   : > { %v4590_v46 = vor.u32 %v5187_v44, %v4587_v45  ;;  %v4654_v39 = vor.u32 %v5203_v36, %v4651_v37  ;;  %v4642_v44 = vor.u32 %v5202_v41, %v4641_v38  ;;  %v5184_v36 = vld [vmem:[%s6070_s8 + $0x6c] sm:$0xf]  ;;  %v4579_v37 = vld [vmem:[%s6070_s8 + $0x78] sm:$0xf0] }
 0x524   : > { %v2204_v23 = vmul.f32 %v6463_v21, %v6463_v21  ;;  %v2205_v24 = vmul.f32 %v6465_v22, %v6465_v22  ;;  %2657 = vmatpush.bf16.msra.mxu0 %v4586_v42  ;;  %v4769_v42 = vld [vmem:[%s6070_s8 + $0x1e8] sm:$0xf]  ;;  %v4582_v41 = vor.u32 %v5184_v36, %v4579_v37 }
 0x525   : > { %2685 = vmatpush.bf16.msra.mxu2 %v4590_v46  ;;  %2672 = vmatpush.bf16.msra.mxu1 %v4698_v57  ;;  %v4770_v45 = vor.u32 %v5234_v43, %v4769_v42  ;;  %v4643_v46 = vld [vmem:[%s6070_s8 + $0xf8] sm:$0xf0]  ;;  %v4754_v57 = vor.u32 %v5230_v55, %v4753_v54  ;;  %v5216_v42 = vld [vmem:[%s6070_s8 + $0x16c] sm:$0xf] }
 0x526   : > { %v2209_v25 = vadd.f32 %v2205_v24, %v2204_v23  ;;  %v4542_v23 = vor.u32 %v5175_v18, %v4539_v19  ;;  %v5207_v24 = vld [vmem:[%s6070_s8 + $0x124] sm:$0xf]  ;;  %v4646_v48 = vor.u32 %v5200_v40, %v4643_v46  ;;  %v4721_v18 = vld [vmem:[%s6070_s8 + $0x188] sm:$0xf]  ;;  %v5222_v19 = vld [vmem:[%s6070_s8 + $0x194] sm:$0xf0] }
 0x527   : > { %v4722_v27 = vor.u32 %v5222_v19, %v4721_v18  ;;  %v4707_v43 = vld [vmem:[%s6070_s8 + $0x178] sm:$0xf0]  ;;  %v5182_v46 = vld [vmem:[%s6070_s8 + $0x54] sm:$0xf0] }
 0x528   : > { %2210 = vadd.xlane.f32.xlu2 %v2209_v25  ;;  %2658 = vmatpush.bf16.msra.mxu0 %v4570_v53  ;;  %v4667_v25 = vld [vmem:[%s6070_s8 + $0x130] sm:$0xf0]  ;;  %v4626_v53 = vor.u32 %v5198_v51, %v4625_v50  ;;  %v4710_v40 = vor.u32 %v5216_v42, %v4707_v43  ;;  %v4563_v50 = vld [vmem:[%s6070_s8 + $0x58] sm:$0xf0]  ;;  %v5212_v51 = vld [vmem:[%s6070_s8 + $0x14c] sm:$0xf] }
 0x529   : > { %2686 = vmatpush.bf16.msra.mxu2 %v4574_v58  ;;  %2673 = vmatpush.bf16.msra.mxu1 %v4682_v5  ;;  %v4670_v26 = vor.u32 %v5207_v24, %v4667_v25  ;;  %v4627_v58 = vld [vmem:[%s6070_s8 + $0xd8] sm:$0xf0]  ;;  %v5220_v24 = vld [vmem:[%s6070_s8 + $0x18c] sm:$0xf]  ;;  %v4566_v59 = vor.u32 %v5180_v49, %v4563_v50 }
 0x52a   : > { %v4630_v61 = vor.u32 %v5196_v56, %v4627_v58  ;;  %v4611_v5 = vld [vmem:[%s6070_s8 + $0xb8] sm:$0xf0] }
 0x52b   : > { %2702 = vmatpush.bf16.msra.mxu3 %v4670_v26  ;;  %v4614_v8 = vor.u32 %v5192_v4, %v4611_v5  ;;  %v4594_v26 = vor.u32 %v5190_v17, %v4593_v11  ;;  %v4691_v56 = vld [vmem:[%s6070_s8 + $0x158] sm:$0xf0]  ;;  %v4657_v11 = vld [vmem:[%s6070_s8 + $0x108] sm:$0xf]  ;;  %v5172_v17 = vld [vmem:[%s6070_s8 + $0xc] sm:$0xf] }
 0x52c   : > { %2659 = vmatpush.bf16.msra.mxu0 %v4554_v1  ;;  %v4737_v1 = vld [vmem:[%s6070_s8 + $0x1a8] sm:$0xf]  ;;  %v4694_v63 = vor.u32 %v5212_v51, %v4691_v56  ;;  %v4675_v4 = vld [vmem:[%s6070_s8 + $0x138] sm:$0xf0] }
 0x52d   : > { %2687 = vmatpush.bf16.msra.mxu2 %v4558_v6  ;;  %2674 = vmatpush.bf16.msra.mxu1 %v4666_v20  ;;  %v4738_v7 = vor.u32 %v5226_v3, %v4737_v1  ;;  %v5188_v20 = vld [vmem:[%s6070_s8 + $0x8c] sm:$0xf]  ;;  %v4547_v1 = vld [vmem:[%s6070_s8 + $0x38] sm:$0xf0] }
 0x52e   : > { %v5208_v3 = vld [vmem:[%s6070_s8 + $0x12c] sm:$0xf]  ;;  %v4531_v18 = vld [vmem:[%s6070_s8 + $0x18] sm:$0xf0] }
 0x52f   : > { %2703 = vmatpush.bf16.msra.mxu3 %v4654_v39 }
 0x530   : > { %2660 = vmatpush.bf16.msra.mxu0 %v4538_v16  ;;  %v4742_v16 = vor.u32 %v5224_v9, %v4739_v10  ;;  %v4550_v10 = vor.u32 %v5176_v0, %v4547_v1 }
 0x531   : > { %2688 = vmatpush.bf16.msra.mxu2 %v4542_v23  ;;  %2675 = vmatpush.bf16.msra.mxu1 %v4650_v34  ;;  %v4595_v23 = vld [vmem:[%s6070_s8 + $0x98] sm:$0xf0]  ;;  %v4578_v34 = vor.u32 %v5186_v32, %v4577_v31 }
 0x532   : > { %v4598_v29 = vor.u32 %v5188_v20, %v4595_v23  ;;  %v5204_v20 = vld [vmem:[%s6070_s8 + $0x10c] sm:$0xf]  ;;  %v4659_v23 = vld [vmem:[%s6070_s8 + $0x118] sm:$0xf0] }
 0x533   : > { %2752 = vmatpush.bf16.msrb.mxu3 %v4774_v52  ;;  %v4662_v31 = vor.u32 %v5204_v20, %v4659_v23 }
 0x534   : > { %2661 = vmatpush.bf16.msra.mxu0 %v4522_v30  ;;  %v4726_v30 = vor.u32 %v5220_v24, %v4723_v28 }
 0x535   : > { %2689 = vmatpush.bf16.msra.mxu2 %v4526_v35  ;;  %2724 = vmatpush.bf16.msrb.mxu1 %v4770_v45  ;;  %v5218_v35 = vld [vmem:[%s6070_s8 + $0x174] sm:$0xf0] }
 0x536   : > { %v4706_v39 = vor.u32 %v5218_v35, %v4705_v33  ;;  %v2181_v35 = vld [vmem:[%s807_s19] sm:$0x3] }
 0x537   : > { %2753 = vmatpush.bf16.msrb.mxu3 %v4758_v62  ;;  %v5210_v62 = vld [vmem:[%s6070_s8 + $0x134] sm:$0xf0] }
 0x538   : > { %2710 = vmatpush.bf16.msrb.mxu0 %v4642_v44  ;;  %v4561_v44 = vld [vmem:[%s6070_s8 + $0x48] sm:$0xf] }
 0x539   : > { %2738 = vmatpush.bf16.msrb.mxu2 %v4646_v48  ;;  %2725 = vmatpush.bf16.msrb.mxu1 %v4754_v57  ;;  %v5214_v48 = vld [vmem:[%s6070_s8 + $0x154] sm:$0xf0]  ;;  %v4562_v54 = vor.u32 %v5182_v46, %v4561_v44  ;;  %v4545_v57 = vld [vmem:[%s6070_s8 + $0x28] sm:$0xf] }
 0x53a   : > { %v4690_v55 = vor.u32 %v5214_v48, %v4689_v47  ;;  %v4546_v5 = vor.u32 %v5178_v60, %v4545_v57 }
 0x53b   : > { %2754 = vmatpush.bf16.msrb.mxu3 %v4742_v16  ;;  %v4678_v16 = vor.u32 %v5208_v3, %v4675_v4 }
 0x53c   : > { %2711 = vmatpush.bf16.msrb.mxu0 %v4626_v53 }
 0x53d   : > { %2739 = vmatpush.bf16.msrb.mxu2 %v4630_v61  ;;  %2726 = vmatpush.bf16.msrb.mxu1 %v4738_v7  ;;  %v4673_v61 = vld [vmem:[%s6070_s8 + $0x128] sm:$0xf] }
 0x53e   : > { %v4529_v7 = vld [vmem:[%s6070_s8 + $0x8] sm:$0xf] }
 0x53f   : > { %2755 = vmatpush.bf16.msrb.mxu3 %v4726_v30  ;;  %v4534_v30 = vor.u32 %v5172_v17, %v4531_v18 }
 0x540   : > { %2712 = vmatpush.bf16.msrb.mxu0 %v4610_v2 }
 0x541   : > { %2740 = vmatpush.bf16.msrb.mxu2 %v4614_v8  ;;  %2727 = vmatpush.bf16.msrb.mxu1 %v4722_v27  ;;  %v5174_v8 = vld [vmem:[%s6070_s8 + $0x14] sm:$0xf0] }
 0x543   : > { %2756 = vmatpush.bf16.msrb.mxu3 %v4710_v40 }
 0x544   : > { %2713 = vmatpush.bf16.msrb.mxu0 %v4594_v26  ;;  %v4530_v26 = vor.u32 %v5174_v8, %v4529_v7 }
 0x545   : > { %2741 = vmatpush.bf16.msrb.mxu2 %v4598_v29  ;;  %2728 = vmatpush.bf16.msrb.mxu1 %v4706_v39  ;;  %v2241_v39 = vperm.slane %v2181_v35, 0 }
 0x547   : > { %2757 = vmatpush.bf16.msrb.mxu3 %v4694_v63 }
 0x548   : > { %2714 = vmatpush.bf16.msrb.mxu0 %v4578_v34 }
 0x549   : > { %2742 = vmatpush.bf16.msrb.mxu2 %v4582_v41  ;;  %2729 = vmatpush.bf16.msrb.mxu1 %v4690_v55  ;;  %v2242_v41 = vperm.slane %v2181_v35, 1 }
 0x54b   : > { %2758 = vmatpush.bf16.msrb.mxu3 %v4678_v16 }
 0x54c   : > { %2715 = vmatpush.bf16.msrb.mxu0 %v4562_v54 }
 0x54d   : > { %2743 = vmatpush.bf16.msrb.mxu2 %v4566_v59 }
 0x54f   : > { %2759 = vmatpush.bf16.msrb.mxu3 %v4662_v31 }
 0x550   : > { %2716 = vmatpush.bf16.msrb.mxu0 %v4546_v5 }
 0x551   : > { %2744 = vmatpush.bf16.msrb.mxu2 %v4550_v10 }
 0x554   : > { %2717 = vmatpush.bf16.msrb.mxu0 %v4530_v26 }
 0x555   : > { %2745 = vmatpush.bf16.msrb.mxu2 %v4534_v30 }
 0x593   : > { %v2208_v6 = vpop.xlane.xlu1 %2207 }
 0x594   : > { %v2212_v13 = vmul.f32 %v2208_v6, %v6451_v12  ;;  %v4674_v6 = vor.u32 %v5210_v62, %v4673_v61 }
 0x596   : > { %v6551_v25 = vadd.f32 1e-05, %v2212_v13  ;;  %v5206_v13 = vld [vmem:[%s6070_s8 + $0x114] sm:$0xf0]  ;;  %2730 = vmatpush.bf16.msrb.mxu1 %v4674_v6 }
 0x597   : > { %v4658_v27 = vor.u32 %v5206_v13, %v4657_v11 }
 0x598   : > { %5460 = vrsqrt.f32 %v6551_v25  ;;  %vm2222_vm6 = vweird.f32 %v6551_v25 }
 0x59a   : > { %2731 = vmatpush.bf16.msrb.mxu1 %v4658_v27 }
 0x59b   : > { %v2211_v38 = vpop.xlane.xlu2 %2210 }
 0x59c   : > { %v2213_v45 = vmul.f32 %v2211_v38, %v6451_v12 }
 0x59e   : > { %v5461_v52 = vpop.eup %5460  ;;  %v6571_v53 = vadd.f32 1e-05, %v2213_v45 }
 0x59f   : > { %v2217_v58 = vmul.f32 %v5461_v52, %v6551_v25  ;;  %vm2223_vm5 = vweird.f32 %v5461_v52  ;;  %v2182_v25 = vld [vmem:[%s811_s0] sm:$0x3] }
 0x5a0   : > { %5462 = vrsqrt.f32 %v6571_v53  ;;  %vm2224_vm7 = vmor %vm2222_vm6, %vm2223_vm5  ;;  %vm2232_vm9 = vweird.f32 %v6571_v53  ;;  %v2250_v44 = vperm.slane %v2182_v25, 0  ;;  %v2251_v45 = vperm.slane %v2182_v25, 1 }
 0x5a1   : > { %v2218_v2 = vmul.f32 %v5461_v52, %v2217_v58 }
 0x5a3   : > { %v2219_v9 = vmul.f32 0.5, %v2218_v2 }
 0x5a5   : > { %v2220_v19 = vsub.f32 1.5, %v2219_v9 }
 0x5a6   : > { %v5463_v24 = vpop.eup %5462 }
 0x5a7   : > { %v2221_v28 = vmul.f32 %v5461_v52, %v2220_v19  ;;  %v2227_v29 = vmul.f32 %v5463_v24, %v6571_v53  ;;  %vm2233_vm8 = vweird.f32 %v5463_v24 }
 0x5a8   : > { %vm2234_vm10 = vmor %vm2232_vm9, %vm2233_vm8 }
 0x5a9   : > { %v2228_v32 = vmul.f32 %v5463_v24, %v2227_v29  ;;  %v2225_v33 = vsel %vm2224_vm7, %v5461_v52, %v2221_v28 }
 0x5aa   : > { %v2236_v37 = vmul.f32 %v2225_v33, %v6454_v14  ;;  %v2237_v38 = vmul.f32 %v2225_v33, %v6456_v15 }
 0x5ab   : > { %v2229_v34 = vmul.f32 0.5, %v2228_v32 }
 0x5ac   : > { %v2245_v46 = vmul.f32 %v2241_v39, %v2236_v37  ;;  %v2246_v15 = vmul.f32 %v2242_v41, %v2237_v38 }
 0x5ad   : > { %v2230_v36 = vsub.f32 1.5, %v2229_v34 }
 0x5ae   : > { %v6609_v49 = vadd.f32 %v2250_v44, %v2245_v46  ;;  %v6613_v51 = vadd.f32 %v2251_v45, %v2246_v15 }
 0x5af   : > { %v2231_v42 = vmul.f32 %v5463_v24, %v2230_v36 }
 0x5b1   : > { %v2235_v43 = vsel %vm2234_vm10, %v5463_v24, %v2231_v42 }
 0x5b2   : > { %v2238_v40 = vmul.f32 %v2235_v43, %v6463_v21  ;;  %v2239_v14 = vmul.f32 %v2235_v43, %v6465_v22  ;;  %v6622_v22 = vld [vmem:[%s6099_s5] sm:$0xf] }
 0x5b3   : > { %v2326_v54 = vperm.slane %v6622_v22, 0  ;;  %v2327_v59 = vperm.slane %v6622_v22, 1  ;;  %v2328_v10 = vperm.slane %v6622_v22, 2 }
 0x5b4   : > { %v2247_v47 = vmul.f32 %v2241_v39, %v2238_v40  ;;  %v2248_v48 = vmul.f32 %v2242_v41, %v2239_v14 }
 0x5b6   : > { %v6611_v50 = vadd.f32 %v2250_v44, %v2247_v47  ;;  %v6615_v52 = vadd.f32 %v2251_v45, %v2248_v48 }
 0x5b8   : > { %v2258_v53 = vpack.c.bf16 %v6611_v50, %v6609_v49  ;;  %v2259_v21 = vpack.c.bf16 %v6615_v52, %v6613_v51 }
 0x5ba   : > { %2662 = vmatmul.bf16.vlgmr.msra.gmra.mxu0 %v2258_v53  ;;  %2676 = vmatmul.bf16.vlgmr.msra.gmra.mxu1 %v2259_v21 }
 0x5bb   : > { %2690 = vmatmul.bf16.vlgmr.msra.gmra.mxu2 %v2258_v53  ;;  %2704 = vmatmul.bf16.vlgmr.msra.gmra.mxu3 %v2259_v21 }
 0x5ca   : > { %2718 = vmatmul.bf16.vlgmr.msrb.gmra.mxu0 %v2258_v53  ;;  %2732 = vmatmul.bf16.vlgmr.msrb.gmra.mxu1 %v2259_v21 }
 0x5cb   : > { %2746 = vmatmul.bf16.vlgmr.msrb.gmra.mxu2 %v2258_v53  ;;  %2760 = vmatmul.bf16.vlgmr.msrb.gmra.mxu3 %v2259_v21 }
 0x637   : > { %v2663_v55 = vpop.f32.mrf.mxu0  ;;  %v2677_v56 = vpop.f32.mrf.mxu1 }
 0x638   : > { %v2664_v57 = vadd.f32 %v2663_v55, %v2326_v54 }
 0x63a   : > { %v6625_v58 = vadd.f32 %v2677_v56, %v2664_v57 }
 0x63c   : > { %v6629_v60 = vmul.f32 0.70710677, %v6625_v58 }
 0x63e   : > { %v6632_v61 = vand.u32 2147483647, %v6629_v60  ;;  %v2691_v62 = vpop.f32.mrf.mxu2  ;;  %v2705_v63 = vpop.f32.mrf.mxu3 }
 0x63f   : > { %v2692_v0 = vadd.f32 %v2691_v62, %v2327_v59  ;;  %v2665_v1 = vpop.f32.mrf.mxu0  ;;  %v2679_v5 = vpop.f32.mrf.mxu1 }
 0x640   : > { %v2790_v2 = vmul.f32 0.3275911, %v6632_v61  ;;  %v2666_v3 = vadd.f32 %v2665_v1, %v2326_v54  ;;  %v2998_v40 = vsub.f32 0.0, %v6632_v61 }
 0x641   : > { %v6635_v4 = vadd.f32 %v2705_v63, %v2692_v0  ;;  %v2329_v0 = vperm.slane %v6622_v22, 3 }
 0x642   : > { %v2798_v6 = vadd.f32 1.0, %v2790_v2  ;;  %v6637_v7 = vadd.f32 %v2679_v5, %v2666_v3  ;;  %v3006_v62 = vmul.f32 %v2998_v40, %v6632_v61 }
 0x643   : > { %v6640_v8 = vmul.f32 0.70710677, %v6635_v4 }
 0x644   : > { %5464 = vrcp.f32 %v2798_v6  ;;  %v6647_v11 = vmul.f32 0.70710677, %v6637_v7  ;;  %v2817_v35 = vand.u32 2147483648, %v2798_v6  ;;  %v2815_v37 = vand.u32 2147483647, %v2798_v6 }
 0x645   : > { %v6643_v9 = vand.u32 2147483647, %v6640_v8  ;;  %vm2811_vm12 = vweird.f32 %v2798_v6 }
 0x646   : > { %v2693_v13 = vpop.f32.mrf.mxu2  ;;  %v6651_v19 = vand.u32 2147483647, %v6647_v11  ;;  %v2707_v20 = vpop.f32.mrf.mxu3  ;;  %v2818_v42 = vor.u32 1.1754944e-38, %v2817_v35  ;;  %vm2816_vm14 = vcmp.eq.f32.partialorder %v2815_v37, 8.507059e+37 }
 0x647   : > { %v2791_v16 = vmul.f32 0.3275911, %v6643_v9  ;;  %v2694_v17 = vadd.f32 %v2693_v13, %v2327_v59  ;;  %v2719_v18 = vpop.f32.mrf.mxu0  ;;  %v2733_v31 = vpop.f32.mrf.mxu1  ;;  %v2999_v63 = vsub.f32 0.0, %v6643_v9 }
 0x648   : > { %v2720_v26 = vadd.f32 %v2719_v18, %v2328_v10  ;;  %v2794_v28 = vmul.f32 0.3275911, %v6651_v19 }
 0x649   : > { %v2799_v23 = vadd.f32 1.0, %v2791_v16  ;;  %v6653_v24 = vadd.f32 %v2707_v20, %v2694_v17  ;;  %v6704_v35 = vmul.f32 %v2999_v63, %v6643_v9 }
 0x64a   : > { %v5465_v27 = vpop.eup %5464  ;;  %v6658_v30 = vadd.f32 1.0, %v2794_v28  ;;  %v6663_v34 = vadd.f32 %v2733_v31, %v2720_v26  ;;  %v6698_v28 = vmul.f32 1.442695, %v3006_v62 }
 0x64b   : > { %v2807_v29 = vmul.f32 %v5465_v27, %v2798_v6  ;;  %5466 = vrcp.f32 %v2799_v23  ;;  %v6661_v33 = vmul.f32 0.70710677, %v6653_v24  ;;  %vm2812_vm11 = vweird.f32 %v5465_v27 }
 0x64c   : > { %5468 = vrcp.f32 %v6658_v30  ;;  %v6670_v41 = vmul.f32 0.70710677, %v6663_v34  ;;  %vm2813_vm13 = vmor %vm2811_vm12, %vm2812_vm11  ;;  %v2830_v47 = vand.u32 2147483647, %v2799_v23  ;;  %v2832_v54 = vand.u32 2147483648, %v2799_v23 }
 0x64d   : > { %v2808_v32 = vsub.f32 1.0, %v2807_v29  ;;  %v6667_v38 = vand.u32 2147483647, %v6661_v33  ;;  %vm2826_vm0 = vweird.f32 %v2799_v23  ;;  %v2877_v16 = vand.u32 2147483648, %v6658_v30 }
 0x64e   : > { %v6675_v14 = vand.u32 2147483647, %v6670_v41  ;;  %v2747_v5 = vpop.f32.mrf.mxu2  ;;  %vm2831_vm2 = vcmp.eq.f32.partialorder %v2830_v47, 8.507059e+37  ;;  %v2833_v13 = vor.u32 1.1754944e-38, %v2832_v54  ;;  %v2875_v61 = vand.u32 2147483647, %v6658_v30 }
 0x64f   : > { %v2809_v36 = vmul.f32 %v5465_v27, %v2808_v32  ;;  %v2795_v44 = vmul.f32 0.3275911, %v6667_v38  ;;  %v2748_v26 = vadd.f32 %v2747_v5, %v2329_v0  ;;  %vm2871_vm3 = vweird.f32 %v6658_v30 }
 0x650   : > { %v2792_v55 = vmul.f32 0.3275911, %v6675_v14  ;;  %vm2876_vm6 = vcmp.eq.f32.partialorder %v2875_v61, 8.507059e+37  ;;  %v3002_v54 = vsub.f32 0.0, %v6651_v19  ;;  %v2721_v61 = vpop.f32.mrf.mxu0 }
 0x651   : > { %v5467_v25 = vpop.eup %5466  ;;  %v2810_v39 = vadd.f32 %v5465_v27, %v2809_v36  ;;  %v6679_v48 = vadd.f32 1.0, %v2795_v44  ;;  %v2878_v36 = vor.u32 1.1754944e-38, %v2877_v16 }
 0x652   : > { %v2822_v43 = vmul.f32 %v5467_v25, %v2799_v23  ;;  %v5469_v53 = vpop.eup %5468  ;;  %vm2827_vm15 = vweird.f32 %v5467_v25  ;;  %v6688_v3 = vadd.f32 1.0, %v2792_v55 }
 0x653   : > { %v2814_v45 = vsel %vm2813_vm13, %v5465_v27, %v2810_v39  ;;  %v2867_v57 = vmul.f32 %v5469_v53, %v6658_v30  ;;  %5470 = vrcp.f32 %v6679_v48  ;;  %vm2828_vm1 = vmor %vm2826_vm0, %vm2827_vm15  ;;  %vm2872_vm4 = vweird.f32 %v5469_v53  ;;  %v5250_v39 = vld [vmem:[%s6121_s16 + $0x74] sm:$0xf0] }
 0x654   : > { %v6677_v46 = vsel %vm2816_vm14, %v2818_v42, %v2814_v45  ;;  %v2823_v15 = vsub.f32 1.0, %v2822_v43  ;;  %5472 = vrcp.f32 %v6688_v3  ;;  %vm2873_vm5 = vmor %vm2871_vm3, %vm2872_vm4  ;;  %v2890_v44 = vand.u32 2147483647, %v6679_v48  ;;  %v2761_v45 = vpop.f32.mrf.mxu3 }
 0x655   : > { %v2926_v21 = vmul.f32 1.0614054, %v6677_v46  ;;  %v2868_v2 = vsub.f32 1.0, %v2867_v57  ;;  %v6713_v47 = vadd.f32 %v2761_v45, %v2748_v26  ;;  %vm2886_vm8 = vweird.f32 %v6679_v48 }
 0x656   : > { %v2824_v56 = vmul.f32 %v5467_v25, %v2823_v15  ;;  %v2892_v15 = vand.u32 2147483648, %v6679_v48  ;;  %vm2891_vm9 = vcmp.eq.f32.partialorder %v2890_v44, 8.507059e+37  ;;  %v2847_v26 = vand.u32 2147483648, %v6688_v3 }
 0x657   : > { %v2934_v59 = vadd.f32 -1.4531521, %v2926_v21  ;;  %v2869_v18 = vmul.f32 %v5469_v53, %v2868_v2  ;;  %vm2841_vm12 = vweird.f32 %v6688_v3  ;;  %vm3046_vm15 = vcmp.ge.f32.partialorder %v6629_v60, 0.0 }
 0x658   : > { %v2825_v1 = vadd.f32 %v5467_v25, %v2824_v56  ;;  %v2893_v5 = vor.u32 1.1754944e-38, %v2892_v15  ;;  %v2848_v15 = vor.u32 1.1754944e-38, %v2847_v26  ;;  %vm3050_vm3 = vcmp.ge.f32.partialorder %v6647_v11, 0.0  ;;  %v6874_v11 = vld [vmem:[%s6121_s16 + $0x20] sm:$0xf] }
 0x659   : > { %v2942_v6 = vmul.f32 %v2934_v59, %v6677_v46  ;;  %v5471_v27 = vpop.eup %5470  ;;  %v2870_v31 = vadd.f32 %v5469_v53, %v2869_v18  ;;  %v6719_v59 = vmul.f32 0.70710677, %v6713_v47  ;;  %v2845_v18 = vand.u32 2147483647, %v6688_v3 }
 0x65a   : > { %v2829_v17 = vsel %vm2828_vm1, %v5467_v25, %v2825_v1  ;;  %v2882_v37 = vmul.f32 %v5471_v27, %v6679_v48  ;;  %v4833_v25 = vld [vmem:[%s6121_s16 + $0x70] sm:$0xf]  ;;  %v5473_v56 = vpop.eup %5472  ;;  %vm2887_vm7 = vweird.f32 %v5471_v27 }
 0x65b   : > { %v2950_v20 = vadd.f32 1.4214138, %v2942_v6  ;;  %v6693_v23 = vsel %vm2831_vm2, %v2833_v13, %v2829_v17  ;;  %v2874_v43 = vsel %vm2873_vm5, %v5469_v53, %v2870_v31  ;;  %v4834_v55 = vor.u32 %v5250_v39, %v4833_v25  ;;  %vm2888_vm10 = vmor %vm2886_vm8, %vm2887_vm7 }
 0x65c   : > { %v2927_v29 = vmul.f32 1.0614054, %v6693_v23  ;;  %v6710_v40 = vsel %vm2876_vm6, %v2878_v36, %v2874_v43  ;;  %v2883_v30 = vsub.f32 1.0, %v2882_v37  ;;  %v2837_v1 = vmul.f32 %v5473_v56, %v6688_v3 }
 0x65d   : > { %v2958_v32 = vmul.f32 %v2950_v20, %v6677_v46  ;;  %v2930_v21 = vmul.f32 1.0614054, %v6710_v40  ;;  %3480 = vmatpush.bf16.msra.mxu0 %v4834_v55  ;;  %v6724_v6 = vand.u32 2147483647, %v6719_v59  ;;  %vm2842_vm11 = vweird.f32 %v5473_v56 }
 0x65e   : > { %v2935_v42 = vadd.f32 -1.4531521, %v2927_v29  ;;  %v2884_v57 = vmul.f32 %v5471_v27, %v2883_v30  ;;  %v2838_v17 = vsub.f32 1.0, %v2837_v1  ;;  %v3010_v37 = vmul.f32 %v3002_v54, %v6651_v19  ;;  %vm2843_vm13 = vmor %vm2841_vm12, %vm2842_vm11 }
 0x65f   : > { %v2966_v53 = vadd.f32 -0.28449672, %v2958_v32  ;;  %v2938_v63 = vadd.f32 -1.4531521, %v2930_v21  ;;  %v2793_v29 = vmul.f32 0.3275911, %v6724_v6 }
 0x660   : > { %v2943_v9 = vmul.f32 %v2935_v42, %v6693_v23  ;;  %v2885_v2 = vadd.f32 %v5471_v27, %v2884_v57  ;;  %v2839_v36 = vmul.f32 %v5473_v56, %v2838_v17  ;;  %v2722_v42 = vadd.f32 %v2721_v61, %v2328_v10  ;;  %v2735_v10 = vpop.f32.mrf.mxu1 }
 0x661   : > { %v2946_v16 = vmul.f32 %v2938_v63, %v6710_v40  ;;  %v2974_v48 = vmul.f32 %v2966_v53, %v6677_v46  ;;  %v6736_v39 = vadd.f32 1.0, %v2793_v29  ;;  %v3003_v30 = vsub.f32 0.0, %v6667_v38  ;;  %v4825_v53 = vld [vmem:[%s6121_s16 + $0x60] sm:$0xf] }
 0x662   : > { %v2951_v62 = vadd.f32 1.4214138, %v2943_v9  ;;  %v2889_v20 = vsel %vm2888_vm10, %v5471_v27, %v2885_v2  ;;  %v2840_v44 = vadd.f32 %v5473_v56, %v2839_v36  ;;  %vm2846_vm14 = vcmp.eq.f32.partialorder %v2845_v18, 8.507059e+37  ;;  %v5248_v2 = vld [vmem:[%s6121_s16 + $0x64] sm:$0xf0] }
 0x663   : > { %v2954_v31 = vadd.f32 1.4214138, %v2946_v16  ;;  %v6732_v32 = vsel %vm2891_vm9, %v2893_v5, %v2889_v20  ;;  %5474 = vrcp.f32 %v6736_v39  ;;  %v2982_v19 = vadd.f32 0.2548296, %v2974_v48 }
 0x664   : > { %v2959_v13 = vmul.f32 %v2951_v62, %v6693_v23  ;;  %v2931_v25 = vmul.f32 1.0614054, %v6732_v32  ;;  %v2844_v21 = vsel %vm2843_vm13, %v5473_v56, %v2840_v44  ;;  %5476 = vpow2.f32 %v6698_v28 }
 0x665   : > { %v2962_v27 = vmul.f32 %v2954_v31, %v6710_v40  ;;  %v6746_v55 = vsel %vm2846_vm14, %v2848_v15, %v2844_v21  ;;  %v6748_v3 = vadd.f32 %v2735_v10, %v2722_v42  ;;  %v3022_v63 = vmul.f32 1.442695, %v3010_v37 }
 0x666   : > { %v2967_v43 = vadd.f32 -0.28449672, %v2959_v13  ;;  %v2939_v45 = vadd.f32 -1.4531521, %v2931_v25  ;;  %v2928_v1 = vmul.f32 1.0614054, %v6746_v55  ;;  %v2990_v13 = vmul.f32 %v2982_v19, %v6677_v46  ;;  %v2749_v25 = vpop.f32.mrf.mxu2 }
 0x667   : > { %v2970_v9 = vadd.f32 -0.28449672, %v2962_v27  ;;  %v6756_v56 = vmul.f32 0.5, %v6625_v58  ;;  %v3016_v28 = vmul.f32 1.442695, %v6704_v35  ;;  %v3011_v16 = vmul.f32 %v3003_v30, %v6667_v38 }
 0x668   : > { %v2947_v54 = vmul.f32 %v2939_v45, %v6732_v32  ;;  %v2975_v57 = vmul.f32 %v2967_v43, %v6693_v23  ;;  %v2936_v17 = vadd.f32 -1.4531521, %v2928_v1  ;;  %v3000_v18 = vsub.f32 0.0, %v6675_v14  ;;  %v2763_v1 = vpop.f32.mrf.mxu3 }
 0x669   : > { %v2978_v62 = vmul.f32 %v2970_v9, %v6710_v40  ;;  %v5475_v61 = vpop.eup %5474  ;;  %v6764_v26 = vmul.f32 0.70710677, %v6748_v3  ;;  %v4826_v29 = vor.u32 %v5248_v2, %v4825_v53  ;;  %v6767_v58 = vmul.f32 0.5, %v6635_v4 }
 0x66a   : > { %v2955_v5 = vadd.f32 1.4214138, %v2947_v54  ;;  %v2983_v35 = vadd.f32 0.2548296, %v2975_v57  ;;  %5478 = vpow2.f32 %v3022_v63  ;;  %v2944_v46 = vmul.f32 %v2936_v17, %v6746_v55  ;;  %v5477_v31 = vpop.eup %5476 }
 0x66b   : > { %v2986_v48 = vadd.f32 0.2548296, %v2978_v62  ;;  %5480 = vpow2.f32 %v3016_v28  ;;  %v2852_v36 = vmul.f32 %v5475_v61, %v6736_v39  ;;  %v6772_v37 = vand.u32 2147483647, %v6764_v26  ;;  %3481 = vmatpush.bf16.msra.mxu0 %v4826_v29 }
 0x66c   : > { %v2963_v20 = vmul.f32 %v2955_v5, %v6732_v32  ;;  %v6774_v42 = vmul.f32 %v5477_v31, %v2990_v13  ;;  %v3024_v43 = vmul.f32 1.442695, %v3011_v16  ;;  %v2952_v27 = vadd.f32 1.4214138, %v2944_v46  ;;  %v4817_v46 = vld [vmem:[%s6121_s16 + $0x50] sm:$0xf] }
 0x66d   : > { %v3008_v4 = vmul.f32 %v3000_v18, %v6675_v14  ;;  %v2994_v44 = vmul.f32 %v2986_v48, %v6710_v40  ;;  %v2853_v30 = vsub.f32 1.0, %v2852_v36  ;;  %v2796_v15 = vmul.f32 0.3275911, %v6772_v37  ;;  %v4897_v18 = vld [vmem:[%s6121_s16 + $0xf0] sm:$0xf] }
 0x66e   : > { %v2971_v38 = vadd.f32 -0.28449672, %v2963_v20  ;;  %v2991_v19 = vmul.f32 %v2983_v35, %v6693_v23  ;;  %v2960_v9 = vmul.f32 %v2952_v27, %v6746_v55  ;;  %v2862_v21 = vand.u32 2147483648, %v6736_v39  ;;  %v5266_v35 = vld [vmem:[%s6121_s16 + $0xf4] sm:$0xf0] }
 0x66f   : > { %v2750_v10 = vadd.f32 %v2749_v25, %v2329_v0  ;;  %v2854_v54 = vmul.f32 %v5475_v61, %v2853_v30  ;;  %vm2857_vm0 = vweird.f32 %v5475_v61  ;;  %v2860_v14 = vand.u32 2147483647, %v6736_v39  ;;  %v5246_v36 = vld [vmem:[%s6121_s16 + $0x54] sm:$0xf0] }
 0x670   : > { %v2979_v45 = vmul.f32 %v2971_v38, %v6732_v32  ;;  %v6787_v40 = vadd.f32 1.0, %v2796_v15  ;;  %v5479_v53 = vpop.eup %5478  ;;  %v3038_v57 = vsub.f32 1.0, %v6774_v42  ;;  %5482 = vpow2.f32 %v3024_v43 }
 0x671   : > { %vm2856_vm1 = vweird.f32 %v6736_v39  ;;  %v3001_v23 = vsub.f32 0.0, %v6724_v6  ;;  %v5481_v62 = vpop.eup %5480  ;;  %v6792_v22 = vmul.f32 %v5479_v53, %v2994_v44  ;;  %v2855_v63 = vadd.f32 %v5475_v61, %v2854_v54  ;;  %v4881_v53 = vld [vmem:[%s6121_s16 + $0xd0] sm:$0xf] }
 0x672   : > { %v2987_v0 = vadd.f32 0.2548296, %v2979_v45  ;;  %5484 = vrcp.f32 %v6787_v40  ;;  %v6795_v2 = vmul.f32 %v5481_v62, %v2991_v19  ;;  %v2968_v28 = vadd.f32 -0.28449672, %v2960_v9  ;;  %vm2858_vm2 = vmor %vm2856_vm1, %vm2857_vm0 }
 0x673   : > { %v2863_v5 = vor.u32 1.1754944e-38, %v2862_v21  ;;  %v6798_v39 = vadd.f32 %v2763_v1, %v2750_v10  ;;  %v6801_v13 = vmul.f32 0.5, %v6637_v7  ;;  %v3018_v16 = vmul.f32 1.442695, %v3008_v4  ;;  %v5264_v4 = vld [vmem:[%s6121_s16 + $0xe4] sm:$0xf0] }
 0x674   : > { %v2859_v17 = vsel %vm2858_vm2, %v5475_v61, %v2855_v63  ;;  %vm2861_vm4 = vcmp.eq.f32.partialorder %v2860_v14, 8.507059e+37  ;;  %v3054_v48 = vsub.f32 0.0, %v3038_v57  ;;  %v3009_v29 = vmul.f32 %v3001_v23, %v6724_v6  ;;  %v5244_v10 = vld [vmem:[%s6121_s16 + $0x44] sm:$0xf0]  ;;  %v4801_v63 = vld [vmem:[%s6121_s16 + $0x30] sm:$0xf] }
 0x675   : > { %v6805_v20 = vsel %vm2861_vm4, %v2863_v5, %v2859_v17  ;;  %v3042_v31 = vsub.f32 1.0, %v6792_v22  ;;  %v6812_v7 = vmul.f32 0.5, %v6653_v24  ;;  %v2995_v61 = vmul.f32 %v2987_v0, %v6732_v32  ;;  %v4889_v24 = vld [vmem:[%s6121_s16 + $0xe0] sm:$0xf]  ;;  %v5242_v17 = vld [vmem:[%s6121_s16 + $0x34] sm:$0xf0] }
 0x676   : > { %v2929_v38 = vmul.f32 1.0614054, %v6805_v20  ;;  %v5483_v25 = vpop.eup %5482  ;;  %v3039_v42 = vsub.f32 1.0, %v6795_v2  ;;  %v6819_v43 = vmul.f32 0.5, %v6663_v34  ;;  %v2976_v6 = vmul.f32 %v2968_v28, %v6746_v55  ;;  %v4809_v34 = vld [vmem:[%s6121_s16 + $0x40] sm:$0xf] }
 0x677   : > { %v6823_v27 = vmul.f32 0.70710677, %v6798_v39  ;;  %5486 = vpow2.f32 %v3018_v16  ;;  %v6830_v45 = vmul.f32 0.5, %v6748_v3  ;;  %v4898_v30 = vor.u32 %v5266_v35, %v4897_v18  ;;  %v4961_v18 = vld [vmem:[%s6121_s16 + $0x170] sm:$0xf] }
 0x678   : > { %v6827_v44 = vpop.eup %5484  ;;  %v2937_v32 = vadd.f32 -1.4531521, %v2929_v38  ;;  %v3062_v15 = vsel %vm3046_vm15, %v3038_v57, %v3054_v48  ;;  %vm3047_vm5 = vcmp.ge.f32.partialorder %v6640_v8, 0.0  ;;  %v6836_v19 = vmul.f32 1.442695, %v3009_v29 }
 0x679   : > { %v2897_v9 = vmul.f32 %v6827_v44, %v6787_v40  ;;  %v6841_v21 = vand.u32 2147483647, %v6823_v27  ;;  %v3058_v54 = vsub.f32 0.0, %v3042_v31  ;;  %v6844_v3 = vmul.f32 %v5483_v25, %v2995_v61  ;;  %3494 = vmatpush.bf16.msra.mxu1 %v4898_v30  ;;  %v5262_v57 = vld [vmem:[%s6121_s16 + $0xd4] sm:$0xf0] }
 0x67a   : > { %v2945_v14 = vmul.f32 %v2937_v32, %v6805_v20  ;;  %v4818_v60 = vor.u32 %v5246_v36, %v4817_v46  ;;  %v3055_v23 = vsub.f32 0.0, %v3039_v42  ;;  %v2984_v62 = vadd.f32 0.2548296, %v2976_v6  ;;  %v5282_v46 = vld [vmem:[%s6121_s16 + $0x174] sm:$0xf0] }
 0x67b   : > { %v2898_v22 = vsub.f32 1.0, %v2897_v9  ;;  %v2797_v0 = vmul.f32 0.3275911, %v6841_v21  ;;  %v2907_v1 = vand.u32 2147483648, %v6787_v40  ;;  %v3004_v28 = vsub.f32 0.0, %v6772_v37 }
 0x67c   : > { %3482 = vmatpush.bf16.msra.mxu0 %v4818_v60  ;;  %v4890_v5 = vor.u32 %v5264_v4, %v4889_v24  ;;  %v4810_v16 = vor.u32 %v5244_v10, %v4809_v34  ;;  %vm3051_vm6 = vcmp.ge.f32.partialorder %v6661_v33, 0.0  ;;  %vm2902_vm7 = vweird.f32 %v6827_v44  ;;  %v4873_v24 = vld [vmem:[%s6121_s16 + $0xc0] sm:$0xf]  ;;  %v5260_v30 = vld [vmem:[%s6121_s16 + $0xc4] sm:$0xf0] }
 0x67d   : > { %v2899_v48 = vmul.f32 %v6827_v44, %v2898_v22  ;;  %v2905_v29 = vand.u32 2147483647, %v6787_v40  ;;  %v6861_v35 = vadd.f32 1.0, %v2797_v0  ;;  %v5487_v61 = vpop.eup %5486  ;;  %v3066_v38 = vsel %vm3050_vm3, %v3042_v31, %v3058_v54  ;;  %v5240_v31 = vld [vmem:[%s6121_s16 + $0x24] sm:$0xf0] }
 0x67e   : > { %v3043_v36 = vsub.f32 1.0, %v6844_v3  ;;  %v2953_v25 = vadd.f32 1.4214138, %v2945_v14  ;;  %3495 = vmatpush.bf16.msra.mxu1 %v4890_v5  ;;  %v4882_v6 = vor.u32 %v5262_v57, %v4881_v53  ;;  %v2992_v4 = vmul.f32 %v2984_v62, %v6746_v55  ;;  %v4953_v54 = vld [vmem:[%s6121_s16 + $0x160] sm:$0xf] }
 0x67f   : > { %v2900_v32 = vadd.f32 %v6827_v44, %v2899_v48  ;;  %vm2901_vm8 = vweird.f32 %v6787_v40  ;;  %5488 = vrcp.f32 %v6861_v35  ;;  %v3070_v34 = vadd.f32 1.0, %v3062_v15  ;;  %v5280_v3 = vld [vmem:[%s6121_s16 + $0x164] sm:$0xf0]  ;;  %v4865_v53 = vld [vmem:[%s6121_s16 + $0xb0] sm:$0xf] }
 0x680   : > { %vm6879_vm9 = vmor %vm2901_vm8, %vm2902_vm7  ;;  %v2908_v55 = vor.u32 1.1754944e-38, %v2907_v1  ;;  %v3012_v10 = vmul.f32 %v3004_v28, %v6772_v37  ;;  %3483 = vmatpush.bf16.msra.mxu0 %v4810_v16  ;;  %v4802_v40 = vor.u32 %v5242_v17, %v4801_v63  ;;  %v3074_v14 = vadd.f32 1.0, %v3066_v38  ;;  %v5258_v57 = vld [vmem:[%s6121_s16 + $0xb4] sm:$0xf0]  ;;  %v6904_v2 = vld [vmem:[%s6121_s16 + $0x10] sm:$0xf] }
 0x681   : > { %v2904_v15 = vsel %vm6879_vm9, %v6827_v44, %v2900_v32  ;;  %vm2906_vm10 = vcmp.eq.f32.partialorder %v2905_v29, 8.507059e+37  ;;  %v4962_v60 = vor.u32 %v5282_v46, %v4961_v18  ;;  %v3063_v37 = vsel %vm3047_vm5, %v3039_v42, %v3055_v23  ;;  %v5025_v44 = vld [vmem:[%s6121_s16 + $0x1f0] sm:$0xf]  ;;  %v5298_v63 = vld [vmem:[%s6121_s16 + $0x1f4] sm:$0xf0] }
 0x682   : > { %v3059_v62 = vsub.f32 0.0, %v3043_v36  ;;  %v2961_v22 = vmul.f32 %v2953_v25, %v6805_v20  ;;  %v6896_v0 = vsel %vm2906_vm10, %v2908_v55, %v2904_v15  ;;  %3496 = vmatpush.bf16.msra.mxu1 %v4882_v6  ;;  %v6900_v1 = vmul.f32 %v5487_v61, %v2992_v4  ;;  %v4945_v8 = vld [vmem:[%s6121_s16 + $0x150] sm:$0xf]  ;;  %v5278_v42 = vld [vmem:[%s6121_s16 + $0x154] sm:$0xf0] }
 0x683   : > { %v2932_v28 = vmul.f32 1.0614054, %v6896_v0  ;;  %3508 = vmatpush.bf16.msra.mxu2 %v4962_v60  ;;  %v4874_v5 = vor.u32 %v5260_v30, %v4873_v24  ;;  %v6909_v23 = vmul.f32 %v3070_v34, %v6756_v56  ;;  %v3026_v16 = vmul.f32 1.442695, %v3012_v10  ;;  %v5017_v48 = vld [vmem:[%s6121_s16 + $0x1e0] sm:$0xf] }
 0x684   : > { %3484 = vmatpush.bf16.msra.mxu0 %v4802_v40  ;;  %v4794_v17 = vor.u32 %v5240_v31, %v6874_v11  ;;  %v4954_v18 = vor.u32 %v5280_v3, %v4953_v54  ;;  %v5296_v29 = vld [vmem:[%s6121_s16 + $0x1e4] sm:$0xf0]  ;;  %v6916_v61 = vadd.f32 1.0, %v3063_v37  ;;  %v6919_v38 = vmul.f32 %v3074_v14, %v6801_v13  ;;  %v5238_v6 = vld [vmem:[%s6121_s16 + $0x14] sm:$0xf0] }
 0x685   : > { %v6914_v46 = vpop.eup %5488  ;;  %v2940_v25 = vadd.f32 -1.4531521, %v2932_v28  ;;  %v5026_v56 = vor.u32 %v5298_v63, %v5025_v44  ;;  %v3067_v24 = vsel %vm3051_vm6, %v3043_v36, %v3059_v62  ;;  %v2969_v4 = vadd.f32 -0.28449672, %v2961_v22  ;;  %v4857_v11 = vld [vmem:[%s6121_s16 + $0xa0] sm:$0xf] }
 0x686   : > { %v2912_v32 = vmul.f32 %v6914_v46, %v6861_v35  ;;  %3497 = vmatpush.bf16.msra.mxu1 %v4874_v5  ;;  %v4866_v30 = vor.u32 %v5258_v57, %v4865_v53  ;;  %v5256_v31 = vld [vmem:[%s6121_s16 + $0xa4] sm:$0xf0]  ;;  %v3040_v13 = vsub.f32 1.0, %v6900_v1  ;;  %v4946_v33 = vor.u32 %v5278_v42, %v4945_v8  ;;  %v6931_v9 = vld [vmem:[%s6121_s16] sm:$0xf] }
 0x687   : > { %v2948_v34 = vmul.f32 %v2940_v25, %v6896_v0  ;;  %3509 = vmatpush.bf16.msra.mxu2 %v4954_v18  ;;  %3522 = vmatpush.bf16.msra.mxu3 %v5026_v56  ;;  %v5018_v36 = vor.u32 %v5296_v29, %v5017_v48  ;;  %v6934_v55 = vld [vmem:[%s6121_s16 + $0x4] sm:$0xf0]  ;;  %v4937_v10 = vld [vmem:[%s6121_s16 + $0x140] sm:$0xf]  ;;  %5490 = vpow2.f32 %v3026_v16  ;;  %v3005_v3 = vsub.f32 0.0, %v6841_v21 }
 0x688   : > { %v5276_v40 = vld [vmem:[%s6121_s16 + $0x144] sm:$0xf0]  ;;  %v2913_v54 = vsub.f32 1.0, %v2912_v32  ;;  %3485 = vmatpush.bf16.msra.mxu0 %v4794_v17  ;;  %v4786_v14 = vor.u32 %v5238_v6, %v6904_v2  ;;  %v5249_v15 = vld [vmem:[%s6121_s16 + $0x74] sm:$0xf]  ;;  %v3075_v57 = vadd.f32 1.0, %v3067_v24  ;;  %v2977_v44 = vmul.f32 %v2969_v4, %v6805_v20 }
 0x689   : > { %v5009_v60 = vld [vmem:[%s6121_s16 + $0x1d0] sm:$0xf]  ;;  %v5294_v53 = vld [vmem:[%s6121_s16 + $0x1d4] sm:$0xf0]  ;;  %v2956_v37 = vadd.f32 1.4214138, %v2948_v34  ;;  %vm2917_vm11 = vweird.f32 %v6914_v46  ;;  %v4858_v28 = vor.u32 %v5256_v31, %v4857_v11  ;;  %v4938_v17 = vor.u32 %v5276_v40, %v4937_v10 }
 0x68a   : > { %v2920_v62 = vand.u32 2147483647, %v6861_v35  ;;  %v2922_v22 = vand.u32 2147483648, %v6861_v35  ;;  %v2914_v63 = vmul.f32 %v6914_v46, %v2913_v54  ;;  %3498 = vmatpush.bf16.msra.mxu1 %v4866_v30  ;;  %v4835_v5 = vld [vmem:[%s6121_s16 + $0x78] sm:$0xf0]  ;;  %v6953_v42 = vsub.f32 0.0, %v3040_v13 }
 0x68b   : > { %v4849_v2 = vld [vmem:[%s6121_s16 + $0x90] sm:$0xf]  ;;  %v5254_v8 = vld [vmem:[%s6121_s16 + $0x94] sm:$0xf0]  ;;  %v2964_v16 = vmul.f32 %v2956_v37, %v6896_v0  ;;  %3510 = vmatpush.bf16.msra.mxu2 %v4946_v33  ;;  %3523 = vmatpush.bf16.msra.mxu3 %v5018_v36  ;;  %v5010_v18 = vor.u32 %v5294_v53, %v5009_v60  ;;  %vm2916_vm12 = vweird.f32 %v6861_v35  ;;  %v3013_v56 = vmul.f32 %v3005_v3, %v6841_v21  ;;  %v5001_v24 = vld [vmem:[%s6121_s16 + $0x1c0] sm:$0xf] }
 0x68c   : > { %v4929_v48 = vld [vmem:[%s6121_s16 + $0x130] sm:$0xf]  ;;  %v5274_v29 = vld [vmem:[%s6121_s16 + $0x134] sm:$0xf0]  ;;  %v2915_v25 = vadd.f32 %v6914_v46, %v2914_v63  ;;  %3486 = vmatpush.bf16.msra.mxu0 %v4786_v14  ;;  %v4778_v6 = vor.u32 %v6934_v55, %v6931_v9  ;;  %v5292_v4 = vld [vmem:[%s6121_s16 + $0x1c4] sm:$0xf0]  ;;  %v4838_v35 = vor.u32 %v5249_v15, %v4835_v5  ;;  %v4850_v33 = vor.u32 %v5254_v8, %v4849_v2 }
 0x68d   : > { %vm3048_vm13 = vcmp.ge.f32.partialorder %v6670_v41, 0.0  ;;  %v2972_v32 = vadd.f32 -0.28449672, %v2964_v16  ;;  %vm2918_vm14 = vmor %vm2916_vm12, %vm2917_vm11  ;;  %vm2921_vm15 = vcmp.eq.f32.partialorder %v2920_v62, 8.507059e+37  ;;  %v2923_v30 = vor.u32 1.1754944e-38, %v2922_v22  ;;  %v5491_v11 = vpop.eup %5490 }
 0x68e   : > { %v5247_v21 = vld [vmem:[%s6121_s16 + $0x64] sm:$0xf]  ;;  %v2985_v31 = vadd.f32 0.2548296, %v2977_v44  ;;  %v2919_v34 = vsel %vm2918_vm14, %v6914_v46, %v2915_v25  ;;  %3499 = vmatpush.bf16.msra.mxu1 %v4858_v28  ;;  %v4930_v36 = vor.u32 %v5274_v29, %v4929_v48  ;;  %v4827_v9 = vld [vmem:[%s6121_s16 + $0x68] sm:$0xf0]  ;;  %v5002_v3 = vor.u32 %v5292_v4, %v5001_v24 }
 0x68f   : > { %v4841_v55 = vld [vmem:[%s6121_s16 + $0x80] sm:$0xf]  ;;  %v2980_v10 = vmul.f32 %v2972_v32, %v6896_v0  ;;  %v6973_v40 = vsel %vm2921_vm15, %v2923_v30, %v2919_v34  ;;  %3511 = vmatpush.bf16.msra.mxu2 %v4938_v17  ;;  %3524 = vmatpush.bf16.msra.mxu3 %v5010_v18  ;;  %v5252_v54 = vld [vmem:[%s6121_s16 + $0x84] sm:$0xf0]  ;;  %v5265_v14 = vld [vmem:[%s6121_s16 + $0xf4] sm:$0xf]  ;;  %v6980_v46 = vpack.c.bf16 %v6919_v38, %v6909_v23  ;;  %5492 = vpow2.f32 %v6836_v19 }
 0x690   : > { %v4899_v15 = vld [vmem:[%s6121_s16 + $0xf8] sm:$0xf0]  ;;  %v2933_v60 = vmul.f32 1.0614054, %v6973_v40  ;;  %3487 = vmatpush.bf16.msra.mxu0 %v4778_v6  ;;  %v4921_v53 = vld [vmem:[%s6121_s16 + $0x120] sm:$0xf]  ;;  %v3083_v62 = vmul.f32 %v3075_v57, %v6812_v7  ;;  %v4830_v44 = vor.u32 %v5247_v21, %v4827_v9  ;;  %v3079_v23 = vmul.f32 %v6916_v61, %v6767_v58 }
 0x691   : > { %v5272_v37 = vld [vmem:[%s6121_s16 + $0x124] sm:$0xf0]  ;;  %v2988_v22 = vadd.f32 0.2548296, %v2980_v10  ;;  %v4993_v63 = vld [vmem:[%s6121_s16 + $0x1b0] sm:$0xf]  ;;  %v2993_v19 = vmul.f32 %v2985_v31, %v6805_v20  ;;  %v4842_v5 = vor.u32 %v5252_v54, %v4841_v55  ;;  %v4902_v58 = vor.u32 %v5265_v14, %v4899_v15 }
 0x692   : > { %v5290_v28 = vld [vmem:[%s6121_s16 + $0x1b4] sm:$0xf0]  ;;  %vm3052_vm0 = vcmp.ge.f32.partialorder %v6764_v26, 0.0  ;;  %v2941_v38 = vadd.f32 -1.4531521, %v2933_v60  ;;  %3500 = vmatpush.bf16.msra.mxu1 %v4850_v33  ;;  %v4922_v20 = vor.u32 %v5272_v37, %v4921_v53  ;;  %v3064_v30 = vsel %vm3048_vm13, %v3040_v13, %v6953_v42 }
 0x693   : > { %v5245_v7 = vld [vmem:[%s6121_s16 + $0x54] sm:$0xf]  ;;  %v4819_v57 = vld [vmem:[%s6121_s16 + $0x58] sm:$0xf0]  ;;  %v2996_v2 = vmul.f32 %v2988_v22, %v6896_v0  ;;  %v3028_v8 = vmul.f32 1.442695, %v3013_v56  ;;  %3512 = vmatpush.bf16.msra.mxu2 %v4930_v36  ;;  %3525 = vmatpush.bf16.msra.mxu3 %v5002_v3  ;;  %v4994_v17 = vor.u32 %v5290_v28, %v4993_v63  ;;  %v7002_v0 = vpack.c.bf16 %v3083_v62, %v3079_v23 }
 0x694   : > { %3536 = vmatpush.bf16.msrb.mxu0 %v4838_v35  ;;  %v5263_v61 = vld [vmem:[%s6121_s16 + $0xe4] sm:$0xf]  ;;  %v2949_v16 = vmul.f32 %v2941_v38, %v6973_v40  ;;  %v4891_v18 = vld [vmem:[%s6121_s16 + $0xe8] sm:$0xf0]  ;;  %v4913_v48 = vld [vmem:[%s6121_s16 + $0x110] sm:$0xf]  ;;  %v4822_v56 = vor.u32 %v5245_v7, %v4819_v57 }
 0x695   : > { %v5270_v29 = vld [vmem:[%s6121_s16 + $0x114] sm:$0xf0]  ;;  %3488 = vmatmul.bf16.vlgmr.msra.gmra.mxu0 %v6980_v46  ;;  %v3036_v25 = vmul.f32 %v5491_v11, %v2996_v2  ;;  %v5243_v6 = vld [vmem:[%s6121_s16 + $0x44] sm:$0xf]  ;;  %v4985_v24 = vld [vmem:[%s6121_s16 + $0x1a0] sm:$0xf]  ;;  %v5493_v32 = vpop.eup %5492  ;;  %v4894_v33 = vor.u32 %v5263_v61, %v4891_v18  ;;  %5494 = vpow2.f32 %v3028_v8 }
 0x696   : > { %v5288_v4 = vld [vmem:[%s6121_s16 + $0x1a4] sm:$0xf0]  ;;  %v2957_v35 = vadd.f32 1.4214138, %v2949_v16  ;;  %3501 = vmatpush.bf16.msra.mxu1 %v4842_v5  ;;  %v4811_v21 = vld [vmem:[%s6121_s16 + $0x48] sm:$0xf0]  ;;  %v7014_v31 = vmul.f32 %v5493_v32, %v2993_v19  ;;  %v4914_v36 = vor.u32 %v5270_v29, %v4913_v48 }
 0x697   : > { %v5261_v11 = vld [vmem:[%s6121_s16 + $0xd4] sm:$0xf]  ;;  %v3044_v34 = vsub.f32 1.0, %v3036_v25  ;;  %3513 = vmatpush.bf16.msra.mxu2 %v4922_v20  ;;  %v4883_v1 = vld [vmem:[%s6121_s16 + $0xd8] sm:$0xf0]  ;;  %3526 = vmatpush.bf16.msra.mxu3 %v4994_v17  ;;  %v4986_v13 = vor.u32 %v5288_v4, %v4985_v24  ;;  %v3072_v54 = vadd.f32 1.0, %v3064_v30  ;;  %v4814_v14 = vor.u32 %v5243_v6, %v4811_v21 }
 0x698   : > { %3537 = vmatpush.bf16.msrb.mxu0 %v4830_v44  ;;  %v4905_v9 = vld [vmem:[%s6121_s16 + $0x100] sm:$0xf]  ;;  %v2965_v41 = vmul.f32 %v2957_v35, %v6973_v40  ;;  %v5268_v42 = vld [vmem:[%s6121_s16 + $0x104] sm:$0xf0]  ;;  %v5281_v55 = vld [vmem:[%s6121_s16 + $0x174] sm:$0xf]  ;;  %v4886_v63 = vor.u32 %v5261_v11, %v4883_v1 }
 0x699   : > { %v4963_v10 = vld [vmem:[%s6121_s16 + $0x178] sm:$0xf0]  ;;  %v3060_v3 = vsub.f32 0.0, %v3044_v34  ;;  %v4977_v15 = vld [vmem:[%s6121_s16 + $0x190] sm:$0xf]  ;;  %3502 = vmatmul.bf16.vlgmr.msra.gmra.mxu1 %v7002_v0  ;;  %v3041_v22 = vsub.f32 1.0, %v7014_v31  ;;  %v4906_v28 = vor.u32 %v5268_v42, %v4905_v9  ;;  %v3080_v17 = vmul.f32 %v3072_v54, %v6819_v43 }
 0x69a   : > { %3550 = vmatpush.bf16.msrb.mxu1 %v4902_v58  ;;  %v5286_v60 = vld [vmem:[%s6121_s16 + $0x194] sm:$0xf0]  ;;  %v2973_v53 = vadd.f32 -0.28449672, %v2965_v41  ;;  %v5241_v37 = vld [vmem:[%s6121_s16 + $0x34] sm:$0xf]  ;;  %v4966_v7 = vor.u32 %v5281_v55, %v4963_v10 }
 0x69b   : > { %v4803_v62 = vld [vmem:[%s6121_s16 + $0x38] sm:$0xf0]  ;;  %v3068_v44 = vsel %vm3052_vm0, %v3044_v34, %v3060_v3  ;;  %3514 = vmatpush.bf16.msra.mxu2 %v4914_v36  ;;  %v5259_v23 = vld [vmem:[%s6121_s16 + $0xc4] sm:$0xf]  ;;  %v4875_v19 = vld [vmem:[%s6121_s16 + $0xc8] sm:$0xf0]  ;;  %3527 = vmatpush.bf16.msra.mxu3 %v4986_v13  ;;  %v4978_v57 = vor.u32 %v5286_v60, %v4977_v15  ;;  %v5495_v24 = vpop.eup %5494 }
 0x69c   : > { %3538 = vmatpush.bf16.msrb.mxu0 %v4822_v56  ;;  %v3076_v38 = vadd.f32 1.0, %v3068_v44  ;;  %v2981_v5 = vmul.f32 %v2973_v53, %v6973_v40  ;;  %v5239_v2 = vld [vmem:[%s6121_s16 + $0x24] sm:$0xf]  ;;  %v4955_v8 = vld [vmem:[%s6121_s16 + $0x168] sm:$0xf0]  ;;  %v4806_v58 = vor.u32 %v5241_v37, %v4803_v62  ;;  %v4878_v56 = vor.u32 %v5259_v23, %v4875_v19 }
 0x69d   : > { %v5279_v26 = vld [vmem:[%s6121_s16 + $0x164] sm:$0xf]  ;;  %v4795_v20 = vld [vmem:[%s6121_s16 + $0x28] sm:$0xf0]  ;;  %v4969_v61 = vld [vmem:[%s6121_s16 + $0x180] sm:$0xf] }
 0x69e   : > { %3551 = vmatpush.bf16.msrb.mxu1 %v4894_v33  ;;  %v5284_v16 = vld [vmem:[%s6121_s16 + $0x184] sm:$0xf0]  ;;  %v3084_v18 = vmul.f32 %v3076_v38, %v6830_v45  ;;  %v2989_v48 = vadd.f32 0.2548296, %v2981_v5  ;;  %v5297_v29 = vld [vmem:[%s6121_s16 + $0x1f4] sm:$0xf]  ;;  %v4958_v6 = vor.u32 %v5279_v26, %v4955_v8  ;;  %v4798_v21 = vor.u32 %v5239_v2, %v4795_v20 }
 0x69f   : > { %v5027_v25 = vld [vmem:[%s6121_s16 + $0x1f8] sm:$0xf0]  ;;  %3515 = vmatpush.bf16.msra.mxu2 %v4906_v28  ;;  %v3057_v4 = vsub.f32 0.0, %v3041_v22  ;;  %3528 = vmatpush.bf16.msra.mxu3 %v4978_v57  ;;  %v4970_v45 = vor.u32 %v5284_v16, %v4969_v61  ;;  %v5257_v30 = vld [vmem:[%s6121_s16 + $0xb4] sm:$0xf]  ;;  %vm3049_vm1 = vcmp.ge.f32.partialorder %v6719_v59, 0.0 }
 0x6a0   : > { %3539 = vmatpush.bf16.msrb.mxu0 %v4814_v14  ;;  %v7043_v32 = vpack.c.bf16 %v3084_v18, %v3080_v17  ;;  %v2997_v43 = vmul.f32 %v2989_v48, %v6973_v40  ;;  %v4867_v35 = vld [vmem:[%s6121_s16 + $0xb8] sm:$0xf0]  ;;  %v5030_v11 = vor.u32 %v5297_v29, %v5027_v25  ;;  %v5237_v31 = vld [vmem:[%s6121_s16 + $0x14] sm:$0xf]  ;;  %v5295_v9 = vld [vmem:[%s6121_s16 + $0x1e4] sm:$0xf] }
 0x6a1   : > { %v5277_v34 = vld [vmem:[%s6121_s16 + $0x154] sm:$0xf]  ;;  %v4947_v33 = vld [vmem:[%s6121_s16 + $0x158] sm:$0xf0]  ;;  %v5019_v41 = vld [vmem:[%s6121_s16 + $0x1e8] sm:$0xf0]  ;;  %v4870_v40 = vor.u32 %v5257_v30, %v4867_v35  ;;  %v3065_v42 = vsel %vm3049_vm1, %v3041_v22, %v3057_v4 }
 0x6a2   : > { %3552 = vmatpush.bf16.msrb.mxu1 %v4886_v63  ;;  %v3037_v36 = vmul.f32 %v5495_v24, %v2997_v43  ;;  %v4787_v1 = vld [vmem:[%s6121_s16 + $0x18] sm:$0xf0]  ;;  %3516 = vmatmul.bf16.vlgmr.msra.gmra.mxu2 %v7043_v32  ;;  %v5255_v13 = vld [vmem:[%s6121_s16 + $0xa4] sm:$0xf]  ;;  %v4950_v10 = vor.u32 %v5277_v34, %v4947_v33  ;;  %v4859_v54 = vld [vmem:[%s6121_s16 + $0xa8] sm:$0xf0]  ;;  %v5022_v15 = vor.u32 %v5295_v9, %v5019_v41 }
 0x6a3   : > { %3564 = vmatpush.bf16.msrb.mxu2 %v4966_v7  ;;  %3529 = vmatpush.bf16.msra.mxu3 %v4970_v45  ;;  %v5235_v3 = vld [vmem:[%s6121_s16 + $0x4] sm:$0xf]  ;;  %v4790_v14 = vor.u32 %v5237_v31, %v4787_v1  ;;  %v4779_v59 = vld [vmem:[%s6121_s16 + $0x8] sm:$0xf0]  ;;  %v5293_v62 = vld [vmem:[%s6121_s16 + $0x1d4] sm:$0xf]  ;;  %v4862_v63 = vor.u32 %v5255_v13, %v4859_v54 }
 0x6a4   : > { %3540 = vmatpush.bf16.msrb.mxu0 %v4806_v58  ;;  %v3045_v55 = vsub.f32 1.0, %v3037_v36  ;;  %v5275_v60 = vld [vmem:[%s6121_s16 + $0x144] sm:$0xf]  ;;  %v4939_v53 = vld [vmem:[%s6121_s16 + $0x148] sm:$0xf0]  ;;  %v3073_v22 = vadd.f32 1.0, %v3065_v42 }
 0x6a5   : > { %v5011_v44 = vld [vmem:[%s6121_s16 + $0x1d8] sm:$0xf0]  ;;  %vm3053_vm2 = vcmp.ge.f32.partialorder %v6823_v27, 0.0  ;;  %v2769_v28 = vmul.f32 0.5, %v6713_v47  ;;  %v4942_v19 = vor.u32 %v5275_v60, %v4939_v53  ;;  %v5253_v38 = vld [vmem:[%s6121_s16 + $0x94] sm:$0xf]  ;;  %v4782_v27 = vor.u32 %v5235_v3, %v4779_v59 }
 0x6a6   : > { %3553 = vmatpush.bf16.msrb.mxu1 %v4878_v56  ;;  %v3061_v37 = vsub.f32 0.0, %v3045_v55  ;;  %v4851_v5 = vld [vmem:[%s6121_s16 + $0x98] sm:$0xf0]  ;;  %v2773_v7 = vmul.f32 0.5, %v6798_v39  ;;  %v5014_v2 = vor.u32 %v5293_v62, %v5011_v44  ;;  %v5273_v26 = vld [vmem:[%s6121_s16 + $0x134] sm:$0xf] }
 0x6a7   : > { %3565 = vmatpush.bf16.msrb.mxu2 %v4958_v6  ;;  %3578 = vmatpush.bf16.msrb.mxu3 %v5030_v11  ;;  %v4931_v8 = vld [vmem:[%s6121_s16 + $0x138] sm:$0xf0]  ;;  %v5291_v58 = vld [vmem:[%s6121_s16 + $0x1c4] sm:$0xf]  ;;  %v5003_v47 = vld [vmem:[%s6121_s16 + $0x1c8] sm:$0xf0]  ;;  %v3081_v20 = vmul.f32 %v3073_v22, %v2769_v28  ;;  %v4854_v16 = vor.u32 %v5253_v38, %v4851_v5 }
 0x6a8   : > { %3541 = vmatpush.bf16.msrb.mxu0 %v4798_v21  ;;  %v3069_v23 = vsel %vm3053_vm2, %v3045_v55, %v3061_v37  ;;  %v4934_v39 = vor.u32 %v5273_v26, %v4931_v8  ;;  %v5251_v17 = vld [vmem:[%s6121_s16 + $0x84] sm:$0xf]  ;;  %v4843_v18 = vld [vmem:[%s6121_s16 + $0x88] sm:$0xf0]  ;;  %v5006_v29 = vor.u32 %v5291_v58, %v5003_v47  ;;  %v5289_v6 = vld [vmem:[%s6121_s16 + $0x1b4] sm:$0xf] }
 0x6a9   : > { %v3077_v57 = vadd.f32 1.0, %v3069_v23  ;;  %v5271_v25 = vld [vmem:[%s6121_s16 + $0x124] sm:$0xf]  ;;  %v4923_v56 = vld [vmem:[%s6121_s16 + $0x128] sm:$0xf0]  ;;  %v4846_v4 = vor.u32 %v5251_v17, %v4843_v18 }
 0x6aa   : > { %3554 = vmatpush.bf16.msrb.mxu1 %v4870_v40  ;;  %v4995_v24 = vld [vmem:[%s6121_s16 + $0x1b8] sm:$0xf0]  ;;  %v4926_v43 = vor.u32 %v5271_v25, %v4923_v56  ;;  %v5269_v30 = vld [vmem:[%s6121_s16 + $0x114] sm:$0xf]  ;;  %v5287_v21 = vld [vmem:[%s6121_s16 + $0x1a4] sm:$0xf] }
 0x6ab   : > { %3566 = vmatpush.bf16.msrb.mxu2 %v4950_v10  ;;  %3579 = vmatpush.bf16.msrb.mxu3 %v5022_v15  ;;  %v3085_v61 = vmul.f32 %v3077_v57, %v2773_v7  ;;  %v4998_v45 = vor.u32 %v5289_v6, %v4995_v24  ;;  %v4915_v35 = vld [vmem:[%s6121_s16 + $0x118] sm:$0xf0]  ;;  %v4987_v11 = vld [vmem:[%s6121_s16 + $0x1a8] sm:$0xf0]  ;;  %v5267_v33 = vld [vmem:[%s6121_s16 + $0x104] sm:$0xf] }
 0x6ac   : > { %3542 = vmatpush.bf16.msrb.mxu0 %v4790_v14  ;;  %v4918_v31 = vor.u32 %v5269_v30, %v4915_v35  ;;  %v4990_v34 = vor.u32 %v5287_v21, %v4987_v11  ;;  %v4907_v36 = vld [vmem:[%s6121_s16 + $0x108] sm:$0xf0]  ;;  %v4979_v1 = vld [vmem:[%s6121_s16 + $0x198] sm:$0xf0]  ;;  %v5283_v40 = vld [vmem:[%s6121_s16 + $0x184] sm:$0xf] }
 0x6ad   : > { %v3089_v48 = vpack.c.bf16 %v3085_v61, %v3081_v20  ;;  %v4910_v9 = vor.u32 %v5267_v33, %v4907_v36  ;;  %v4971_v13 = vld [vmem:[%s6121_s16 + $0x188] sm:$0xf0]  ;;  %v3154_v59 = vld [vmem:[%s803_s18] sm:$0x3] }
 0x6ae   : > { %3555 = vmatpush.bf16.msrb.mxu1 %v4862_v63  ;;  %v4974_v42 = vor.u32 %v5283_v40, %v4971_v13  ;;  %v3156_v60 = vperm.slane %v3154_v59, 0  ;;  %v3157_v62 = vperm.slane %v3154_v59, 1 }
 0x6af   : > { %3567 = vmatpush.bf16.msrb.mxu2 %v4942_v19  ;;  %3580 = vmatpush.bf16.msrb.mxu3 %v5014_v2 }
 0x6b0   : > { %3543 = vmatpush.bf16.msrb.mxu0 %v4782_v27  ;;  %3530 = vmatmul.bf16.vlgmr.msra.gmra.mxu3 %v3089_v48 }
 0x6b2   : > { %3556 = vmatpush.bf16.msrb.mxu1 %v4854_v16 }
 0x6b3   : > { %3544 = vmatmul.bf16.vlgmr.msrb.gmra.mxu0 %v6980_v46  ;;  %3568 = vmatpush.bf16.msrb.mxu2 %v4934_v39  ;;  %v5285_v46 = vld [vmem:[%s6121_s16 + $0x194] sm:$0xf] }
 0x6b4   : > { %3581 = vmatpush.bf16.msrb.mxu3 %v5006_v29  ;;  %v4982_v41 = vor.u32 %v5285_v46, %v4979_v1 }
 0x6b6   : > { %3557 = vmatpush.bf16.msrb.mxu1 %v4846_v4 }
 0x6b7   : > { %3569 = vmatpush.bf16.msrb.mxu2 %v4926_v43 }
 0x6b8   : > { %3582 = vmatpush.bf16.msrb.mxu3 %v4998_v45 }
 0x6b9   : > { %3558 = vmatmul.bf16.vlgmr.msrb.gmra.mxu1 %v7002_v0 }
 0x6bb   : > { %3570 = vmatpush.bf16.msrb.mxu2 %v4918_v31 }
 0x6bc   : > { %3583 = vmatpush.bf16.msrb.mxu3 %v4990_v34 }
 0x6bf   : > { %3571 = vmatpush.bf16.msrb.mxu2 %v4910_v9 }
 0x6c0   : > { %3584 = vmatpush.bf16.msrb.mxu3 %v4982_v41 }
 0x6c2   : > { %3572 = vmatmul.bf16.vlgmr.msrb.gmra.mxu2 %v7043_v32 }
 0x6c4   : > { %3585 = vmatpush.bf16.msrb.mxu3 %v4974_v42 }
 0x6c7   : > { %3586 = vmatmul.bf16.vlgmr.msrb.gmra.mxu3 %v3089_v48 }
 0x712   : > { %v3489_v55 = vpop.f32.mrf.mxu0 }
 0x713   : > { %v3490_v32 = vadd.f32 %v3489_v55, %v3156_v60 }
 0x716   : > { %v3503_v10 = vpop.f32.mrf.mxu1 }
 0x717   : > { %v3504_v22 = vadd.f32 %v3503_v10, %v3490_v32 }
 0x71a   : > { %v3491_v0 = vpop.f32.mrf.mxu0 }
 0x71b   : > { %v3492_v27 = vadd.f32 %v3491_v0, %v3156_v60 }
 0x71e   : > { %v3505_v14 = vpop.f32.mrf.mxu1 }
 0x71f   : > { %v3506_v8 = vadd.f32 %v3505_v14, %v3492_v27  ;;  %v3597_v14 = vld [vmem:[%s819_s10] sm:$0x3] }
 0x725   : > { %v3517_v54 = vpop.f32.mrf.mxu2 }
 0x726   : > { %v3518_v23 = vadd.f32 %v3517_v54, %v3504_v22  ;;  %v3596_v54 = vld [vmem:[%s815_s13] sm:$0x3] }
 0x727   : > { %v3649_v59 = vperm.slane %v3596_v54, 0  ;;  %v3650_v60 = vperm.slane %v3596_v54, 1 }
 0x72d   : > { %v3519_v15 = vpop.f32.mrf.mxu2 }
 0x72e   : > { %v3520_v16 = vadd.f32 %v3519_v15, %v3506_v8 }
 0x730   : > { %v3545_v53 = vpop.f32.mrf.mxu0 }
 0x731   : > { %v3546_v63 = vadd.f32 %v3545_v53, %v3157_v62 }
 0x733   : > { %v3531_v3 = vpop.f32.mrf.mxu3 }
 0x734   : > { %v3532_v38 = vadd.f32 %v3531_v3, %v3518_v23 }
 0x736   : > { %v3559_v44 = vpop.f32.mrf.mxu1  ;;  %v3592_v47 = vadd.f32 %v3532_v38, %v6609_v49 }
 0x737   : > { %v3560_v19 = vadd.f32 %v3559_v44, %v3546_v63  ;;  %v3659_v44 = vperm.slane %v3597_v14, 1 }
 0x738   : > { %v3547_v7 = vpop.f32.mrf.mxu0 }
 0x739   : > { %v3548_v58 = vadd.f32 %v3547_v7, %v3157_v62  ;;  %v3658_v62 = vperm.slane %v3597_v14, 0 }
 0x73b   : > { %v3533_v37 = vpop.f32.mrf.mxu3 }
 0x73c   : > { %v3534_v18 = vadd.f32 %v3533_v37, %v3520_v16 }
 0x73e   : > { %v3561_v26 = vpop.f32.mrf.mxu1  ;;  %v3594_v56 = vadd.f32 %v3534_v18, %v6611_v50 }
 0x73f   : > { %v3562_v39 = vadd.f32 %v3561_v26, %v3548_v58 }
 0x745   : > { %v3573_v28 = vpop.f32.mrf.mxu2 }
 0x746   : > { %v3574_v5 = vadd.f32 %v3573_v28, %v3560_v19 }
 0x74a   : > { %v3587_v57 = vpop.f32.mrf.mxu3 }
 0x74b   : > { %v3588_v2 = vadd.f32 %v3587_v57, %v3574_v5 }
 0x74d   : > { %v3593_v20 = vadd.f32 %v3588_v2, %v6613_v51  ;;  %v3575_v61 = vpop.f32.mrf.mxu2 }
 0x74e   : > { %v3576_v48 = vadd.f32 %v3575_v61, %v3562_v39 }
 0x74f   : > { %v3598_v17 = vadd.f32 %v3593_v20, %v3592_v47 }
 0x751   : > { %3599 = vadd.xlane.f32.xlu0 %v3598_v17 }
 0x752   : > { %v3589_v29 = vpop.f32.mrf.mxu3 }
 0x753   : > { %v3590_v25 = vadd.f32 %v3589_v29, %v3576_v48 }
 0x755   : > { %v3595_v6 = vadd.f32 %v3590_v25, %v6615_v52 }
 0x757   : > { %v3601_v24 = vadd.f32 %v3595_v6, %v3594_v56 }
 0x759   : > { %3602 = vadd.xlane.f32.xlu1 %v3601_v24 }
 0x7c4   : > { %v3600_v4 = vpop.xlane.xlu0 %3599 }
 0x7c5   : > { %v3604_v49 = vmul.f32 %v3600_v4, %v6451_v12 }
 0x7c7   : > { %v3606_v43 = vsub.f32 %v3592_v47, %v3604_v49  ;;  %v3607_v51 = vsub.f32 %v3593_v20, %v3604_v49 }
 0x7c9   : > { %v3610_v45 = vmul.f32 %v3606_v43, %v3606_v43  ;;  %v3611_v30 = vmul.f32 %v3607_v51, %v3607_v51 }
 0x7cb   : > { %v3614_v35 = vadd.f32 %v3611_v30, %v3610_v45 }
 0x7cc   : > { %v3603_v21 = vpop.xlane.xlu1 %3602 }
 0x7cd   : > { %v3605_v11 = vmul.f32 %v3603_v21, %v6451_v12  ;;  %3615 = vadd.xlane.f32.xlu2 %v3614_v35 }
 0x7cf   : > { %v3608_v31 = vsub.f32 %v3594_v56, %v3605_v11  ;;  %v3609_v34 = vsub.f32 %v3595_v6, %v3605_v11 }
 0x7d1   : > { %v3612_v33 = vmul.f32 %v3608_v31, %v3608_v31  ;;  %v3613_v50 = vmul.f32 %v3609_v34, %v3609_v34 }
 0x7d3   : > { %v3617_v52 = vadd.f32 %v3613_v50, %v3612_v33 }
 0x7d5   : > { %3618 = vadd.xlane.f32.xlu0 %v3617_v52 }
 0x840   : > { %v3616_v36 = vpop.xlane.xlu2 %3615 }
 0x841   : > { %v3620_v46 = vmul.f32 %v3616_v36, %v6451_v12 }
 0x843   : > { %v3622_v1 = vadd.f32 1e-05, %v3620_v46 }
 0x845   : > { %5496 = vrsqrt.f32 %v3622_v1  ;;  %vm3630_vm3 = vweird.f32 %v3622_v1 }
 0x848   : > { %v3619_v9 = vpop.xlane.xlu0 %3618 }
 0x849   : > { %v3621_v41 = vmul.f32 %v3619_v9, %v6451_v12 }
 0x84b   : > { %v5497_v40 = vpop.eup %5496  ;;  %v3623_v13 = vadd.f32 1e-05, %v3621_v41 }
 0x84c   : > { %v3625_v42 = vmul.f32 %v5497_v40, %v3622_v1  ;;  %vm3631_vm4 = vweird.f32 %v5497_v40 }
 0x84d   : > { %5498 = vrsqrt.f32 %v3623_v13  ;;  %vm3632_vm5 = vmor %vm3630_vm3, %vm3631_vm4  ;;  %vm3640_vm7 = vweird.f32 %v3623_v13 }
 0x84e   : > { %v3626_v55 = vmul.f32 %v5497_v40, %v3625_v42 }
 0x850   : > { %v3627_v10 = vmul.f32 0.5, %v3626_v55 }
 0x852   : > { %v3628_v0 = vsub.f32 1.5, %v3627_v10 }
 0x853   : > { %v5499_v3 = vpop.eup %5498 }
 0x854   : > { %v3629_v12 = vmul.f32 %v5497_v40, %v3628_v0  ;;  %v3635_v15 = vmul.f32 %v5499_v3, %v3623_v13  ;;  %vm3641_vm6 = vweird.f32 %v5499_v3 }
 0x855   : > { %vm3642_vm8 = vmor %vm3640_vm7, %vm3641_vm6 }
 0x856   : > { %v3633_v53 = vsel %vm3632_vm5, %v5497_v40, %v3629_v12  ;;  %v3636_v37 = vmul.f32 %v5499_v3, %v3635_v15 }
 0x857   : > { %v3644_v32 = vmul.f32 %v3633_v53, %v3606_v43  ;;  %v3645_v22 = vmul.f32 %v3633_v53, %v3607_v51 }
 0x858   : > { %v3637_v63 = vmul.f32 0.5, %v3636_v37 }
 0x859   : > { %v3653_v28 = vmul.f32 %v3649_v59, %v3644_v32  ;;  %v3654_v23 = vmul.f32 %v3650_v60, %v3645_v22 }
 0x85a   : > { %v3638_v19 = vsub.f32 1.5, %v3637_v63 }
 0x85b   : > { %v3662_v38 = vadd.f32 %v3658_v62, %v3653_v28  ;;  %v3663_v5 = vadd.f32 %v3659_v44, %v3654_v23 }
 0x85c   : > { %v3639_v7 = vmul.f32 %v5499_v3, %v3638_v19 }
 0x85d   : > { %3666 = vst [vmem:[#allocation2 + $0x10] sm:$0xff] %v3662_v38 }
 0x85e   : > { %3667 = vst [vmem:[#allocation2] sm:$0xff] %v3663_v5  ;;  %v3643_v57 = vsel %vm3642_vm8, %v5499_v3, %v3639_v7 }
 0x85f   : > { %v3646_v27 = vmul.f32 %v3643_v57, %v3608_v31  ;;  %v3647_v2 = vmul.f32 %v3643_v57, %v3609_v34 }
 0x861   : > { %v3655_v26 = vmul.f32 %v3649_v59, %v3646_v27  ;;  %v3656_v8 = vmul.f32 %v3650_v60, %v3647_v2 }
 0x862   : > { %3673 = sbr.rel (%p5031_p12) target bundleno = 2155 (0x86b), region = 108 }
 0x863   : > { %v3664_v58 = vadd.f32 %v3658_v62, %v3655_v26  ;;  %v3665_v47 = vadd.f32 %v3659_v44, %v3656_v8 }
 0x865   : > { %3668 = vst [vmem:[#allocation2 + $0x18] sm:$0xff] %v3664_v58 }
 0x866   : > { %3669 = vst [vmem:[#allocation2 + $0x8] sm:$0xff] %v3665_v47 }
 0x867   : > { %3674 = vst [vmem:[%s6123_s22] sm:$0xff] %v3662_v38 }
 0x868   : > { %3675 = vst [vmem:[%s6123_s22 + $0x8] sm:$0xff] %v3663_v5 }
 0x869   : > { %3676 = vst [vmem:[%s6123_s22 + $0x10] sm:$0xff] %v3664_v58 }
 0x86a   : > { %3677 = vst [vmem:[%s6123_s22 + $0x18] sm:$0xff] %v3665_v47 }
 0x86b PF: > { %s7272_s27 = sld [smem:[#allocation24_spill]]  ;;  %s3692_s28 = sshll.u32 %s6123_s22, 4  ;;  %s3693_s28 = int_to_ptr.vmem [resolvable:$true] %s3692_s28 }
 0x86c   : > { %s7273_s15 = sld [smem:[#allocation19_spill]] }
 0x86d   : > { %s7275_s16 = sld [smem:[#allocation49_spill]] }
 0x871   : > { %s5300_s14 = sshll.u32 %s7272_s27, 5 }
 0x872   : > { %s7276_s25 = sand.u32 1, %s7273_s15  }
 0x873   : > { %s3691_s26 = scalar_lea.hbm %s7275_s16, %s5300_s14  ;;  %s3679_s6 = scalar_lea.sflag [#allocation6], %s7276_s25 }
 0x874   : > { %s3694_s21 = sshll.u32 %s3691_s26, 4  ;;  %s5674_s12 = scalar_lea.hbm %s7275_s16, 64  ;;  %s3695_s21 = int_to_ptr.hbm [resolvable:$true] %s3694_s21 }
 0x875   : > { %s5668_s2 = sshra.s32 %s3695_s21, 4  ;;  %s5669_s2 = int_to_ptr.hbm [resolvable:$true] %s5668_s2 }
 0x876   : > { %s5670_s20 = scalar_lea.hbm %s5669_s2, 32  ;;  %p5675_p3 = scmp.lt.s32.totalorder %s5669_s2, %s7275_s16 }
 0x877   : > { %p5671_p0 = scmp.ne.s32.totalorder %s5669_s2, %s5670_s20  ;;  %p5676_p5 = scmp.lt.s32.totalorder %s5674_s12, %s5670_s20 }
 0x879   : > { %p5672_p1 = pnand %p5671_p0, %p6008_p13  ;;  %p5677_p7 = por %p5676_p5, %p5675_p3 }
 0x87b   : > { %p5673_p2 = pneg %p5672_p1 }
 0x87d   : > { %p5678_p9 = pnand %p5677_p7, %p5673_p2 }
 0x87f   : > { %5681 = shalt.err (!%p5678_p9)
}
 0x880   : > { %s5794_s22 = smov 256   ;;  %s5795_s4 = smov 16  }
 0x881   : > { %5317 = dma.vmem_to_hbm [thread:$0]  (%p6008_p13), %s3693_s28, 512, %s3695_s21, %s3679_s6, %s5794_s22, %s5794_s22, %s5795_s4  }
 0x882 PF: > { %s7277_s5 = sld [smem:[#allocation27_spill]] }
 0x883   : > { %s7278_s19 = sld [smem:[#allocation18_spill]] }
 0x888   : > { %p5343_p10 = scmp.ge.s32.totalorder %s7277_s5, 2 }
 0x889   : > { %s3709_s18 = sand.u32 1, %s7278_s19  }
 0x88a   : > { %p5337_p6 = pnand %p5343_p10, %p6017_p4  ;;  %s3710_s3 = scalar_lea.sflag [#allocation6], %s3709_s18 }
 0x88c   : > { %p5338_p8 = pneg %p5337_p6 }
 0x88e   : > { %5739 = dma.done.wait (%p5338_p8), %s3710_s3, 512  }
 0x88f   : > { %5741 = vsyncadd (%p5338_p8), %s3710_s3, 4294966784  ;;  %s35_s28 = sadd.s32 1, %s7277_s5   ;;  %s7280_s18 = sld [smem:[#allocation19_spill]] }
 0x890   : > { %p32_p11 = scmp.ge.s32.totalorder %s35_s28, 6   ;;  %s7281_s19 = sld [smem:[#allocation20_spill]] }
 0x891   : > { %s7282_s20 = sld [smem:[#allocation33_spill]] }
 0x892   : > { %s7283_s21 = sld [smem:[#allocation21_spill]] }
 0x893   : > { %s7284_s22 = sld [smem:[#allocation22_spill]] }
 0x894   : > { %s7285_s23 = sld [smem:[#allocation29_spill]]  ;;  %34 = sbr.rel (!%p32_p11) target bundleno = 29 (0x1d), region = 200 }
 0x895   : > { %s7286_s24 = sld [smem:[#allocation25_spill]] }
 0x896   : > { %s7287_s25 = sld [smem:[#allocation26_spill]] }
 0x897   : > { %s7288_s26 = sld [smem:[#allocation28_spill]] }
 0x898   : > { %s7289_s27 = sld [smem:[#allocation30_spill]] }
 0x899   :  { %3716 = vsyncpa [#allocation5], 1 }
 0x89a   :  { %3718 = vsyncpa [#allocation5 + $0x1], 1 }
 0x89b   :  { %3719 = vsyncpa [#allocation8], 1 }
 0x89c   :  { %3721 = vsyncpa [#allocation8 + $0x1], 1 }
 0x89d   :  { %3722 = vsyncpa [#allocation11], 1 }
 0x89e   :  { %3724 = vsyncpa [#allocation11 + $0x1], 1 }
 0x89f   :  { %3725 = vsyncpa [#allocation6], 1 }
 0x8a0   :  { %3727 = vsyncpa [#allocation6 + $0x1], 1 }

</bundles_post_ra>
